<compile_context>
chip_gen: v7x
topology: tpu7x:2x2x1
jax: 0.10.0
libtpu: 0.0.40
codegen_flags: <defaults>
</compile_context>

<pallas_src>
import functools

import numpy as np
import jax
import jax.numpy as jnp
from jax import lax
from jax.experimental import pallas as pl
from jax.experimental.pallas import tpu as pltpu

LOG2PI = float(np.log(2.0 * np.pi))


# ----------------------------------------------------------------------------
# Pallas kernel.  Grid: (batch_tiles, 2 * item_tiles), ("parallel","arbitrary").
# For a fixed batch tile i, the inner axis j runs:
#   j in [0, nm)    : encoder reduction   acc += x[:, j] @ qW1[j, :],
#                     ssq += sum(x[:, j]^2, axis=1)
#   j == nm - 1     : finalize encoder (L2-normalize fold), run the flow stack,
#                     emit the KLD partial sum, compute the decoder hidden hp
#   j in [nm, 2*nm) : decoder output      logits[:, j-nm] = hp @ pW2[:, j-nm]
# ----------------------------------------------------------------------------
def sinkhorn_vae_kernel(nm,
                        x_ref,
                        qW1, qb1, qW2mu, qb2mu, qW2lv, qb2lv,
                        f1Wh, f1bh, f1Wm, f1bm, f1Ws, f1bs,
                        f2Wh, f2bh, f2Wm, f2bm, f2Ws, f2bs,
                        pW1, pb1, pW2, pb2,
                        logits_ref, kld_ref,
                        acc_ref, ssq_ref, hp_ref):
    j = pl.program_id(1)

    # ---------------- encoder reduction phase ----------------
    @pl.when(j == 0)
    def _():
        acc_ref[...] = jnp.zeros_like(acc_ref)
        ssq_ref[...] = jnp.zeros_like(ssq_ref)

    @pl.when(j < nm)
    def _():
        x = x_ref[...]
        xf = x.astype(jnp.float32)
        ssq_ref[...] += jnp.sum(xf * xf, axis=1, keepdims=True)
        acc_ref[...] += jnp.dot(x.astype(qW1.dtype), qW1[...],
                                preferred_element_type=jnp.float32)

    # ---------------- encoder head + flows + KLD + decoder hidden ------------
    @pl.when(j == nm - 1)
    def _():
        # F.normalize(x, dim=1): (x @ W) * rsqrt(max(||x||^2, eps^2)) == (x/||x||) @ W
        inv_norm = lax.rsqrt(jnp.maximum(ssq_ref[...], 1e-24))
        h1 = jnp.maximum(acc_ref[...] * inv_norm + qb1[...], 0.0)
        # (dropout = identity in eval mode)

        # Encoder head.  The Reverse permutation is pre-folded into the weights,
        # so z is flip(mu); eval-mode reparameterize gives z == mu.
        z = jnp.dot(h1, qW2mu[...], preferred_element_type=jnp.float32) + qb2mu[...]
        logvar = jnp.dot(h1, qW2lv[...], preferred_element_type=jnp.float32) + qb2lv[...]

        def affine_autoregressive(u, Wh, bh, Wm, bm, Ws, bs):
            hf = jnp.maximum(
                jnp.dot(u, Wh[...], preferred_element_type=jnp.float32) + bh[...], 0.0)
            mean = jnp.dot(hf, Wm[...], preferred_element_type=jnp.float32) + bm[...]
            logs = jnp.clip(
                jnp.dot(hf, Ws[...], preferred_element_type=jnp.float32) + bs[...],
                -5.0, 3.0)                       # pyro default log-scale clamp
            return jnp.exp(logs) * u + mean, logs

        u, logs1 = affine_autoregressive(z, f1Wh, f1bh, f1Wm, f1bm, f1Ws, f1bs)
        y, logs2 = affine_autoregressive(u, f2Wh, f2bh, f2Wm, f2bm, f2Ws, f2bs)

        # log_q - log_prior per sample: the 0.5*log(2*pi) constants of the base
        # and prior log-probs cancel exactly (Reverse has zero log|det J|), so a
        # single elementwise expression + one reduction suffices.
        contrib = 0.5 * (y * y - logvar) - logs1 - logs2          # (TB, L)
        per_row = jnp.sum(contrib, axis=1, keepdims=True)         # (TB, 1)
        tile_sum = jnp.sum(per_row, axis=0, keepdims=True)        # (1, 1)
        kld_ref[...] = jnp.broadcast_to(tile_sum, kld_ref.shape)  # lane-dense store

        # Decoder hidden layer (small), kept in scratch for the output phase.
        hp_ref[...] = jnp.maximum(
            jnp.dot(y, pW1[...], preferred_element_type=jnp.float32) + pb1[...], 0.0)

    # ---------------- decoder output phase ----------------
    @pl.when(j >= nm)
    def _():
        logits_ref[...] = (
            jnp.dot(hp_ref[...].astype(pW2.dtype), pW2[...],
                    preferred_element_type=jnp.float32) + pb2[...]
        ).astype(logits_ref.dtype)


# ----------------------------------------------------------------------------
# Parameter preparation: fold the Reverse permutation into the weights, keep the
# mu/logvar and mean/log-scale heads separate (lane alignment), pad the flow
# hidden width, optionally cast the two big weights to bf16.
# ----------------------------------------------------------------------------
def _fold_params(params, matmul_dtype):
    (qW1, qb1, qW2, qb2,
     f1Wh, f1bh, f1Wm, f1bm, f1Ws, f1bs,
     f2Wh, f2bh, f2Wm, f2bm, f2Ws, f2bs,
     pW1, pb1, pW2, pb2) = params
    L = f1Wh.shape[0]
    Hf = f1Wh.shape[1]
    Hfp = ((Hf + 7) // 8) * 8            # pad flow hidden width to sublane multiple

    pad_cols = lambda W: jnp.pad(W, ((0, 0), (0, Hfp - Hf)))
    pad_rows = lambda W: jnp.pad(W, ((0, Hfp - Hf), (0, 0)))

    # Fold Reverse (latent flip):
    #   * encoder mu-head emits flip(mu)            (flip its output columns)
    #   * flow-1 conditioner reads flip(mu)         (flip Wh rows)
    #     and emits flip(mean)/flip(log-scale)      (flip Wm/Ws output columns)
    #   flow-2 then sees exactly Reverse(flow-1(mu)); all latent sums are
    #   permutation-invariant and Reverse's log|det J| is zero.
    qW2mu = qW2[:, :L][:, ::-1]
    qb2mu = qb2[:, :L][:, ::-1]
    qW2lv = qW2[:, L:]
    qb2lv = qb2[:, L:]

    f1Wh_f = pad_cols(f1Wh[::-1, :])
    f1bh_f = pad_cols(f1bh)
    f1Wm_f = pad_rows(f1Wm[:, ::-1])
    f1bm_f = f1bm[:, ::-1]
    f1Ws_f = pad_rows(f1Ws[:, ::-1])
    f1bs_f = f1bs[:, ::-1]

    f2Wh_p = pad_cols(f2Wh)
    f2bh_p = pad_cols(f2bh)
    f2Wm_p = pad_rows(f2Wm)
    f2Ws_p = pad_rows(f2Ws)

    return [qW1.astype(matmul_dtype), qb1, qW2mu, qb2mu, qW2lv, qb2lv,
            f1Wh_f, f1bh_f, f1Wm_f, f1bm_f, f1Ws_f, f1bs_f,
            f2Wh_p, f2bh_p, f2Wm_p, f2bm, f2Ws_p, f2bs,
            pW1, pb1, pW2.astype(matmul_dtype), pb2]


def _nbytes(a):
    return int(np.prod(a.shape)) * jnp.dtype(a.dtype).itemsize


def _vmem_budget():
    """~75% of per-core physical VMEM; conservative (v7x, 64 MiB) fallback."""
    try:
        phys = int(pltpu.get_tpu_info().vmem_capacity_bytes)
    except Exception:
        phys = 64 << 20
    return (phys * 3) // 4


def _pick_batch_tile(B):
    # Largest tile that (a) divides B, (b) leaves >= 2 batch tiles so both v7x
    # TensorCores get work on the "parallel" axis, (c) can fill a 256-wide MXU
    # on v6e/v7x when the batch allows it.
    for tb in (256, 128, 64, 32, 16, 8):
        if B % tb == 0 and B // tb >= 2:
            return tb
    return B          # tiny batch: single tile (no megacore split possible)


def _pick_items_tile(M, Hq, Hp, mm_bytes, budget):
    # Keep the two big weights fully VMEM-resident (fetched once) only if their
    # double-buffered footprint is a small fraction of the budget; otherwise
    # stream lane-dense item tiles (multiples of 128).
    if 2 * (M * Hq + Hp * M) * mm_bytes <= budget // 3:
        return M
    for tm in (2048, 1024, 512, 256, 128):
        if M % tm == 0:
            return tm
    return M          # irregular M: fall back to resident weights


# ----------------------------------------------------------------------------
# Wrapper
# ----------------------------------------------------------------------------
def sinkhorn_vae_forward(x, params, *, block_batch=None, block_items=None,
                         matmul_dtype=jnp.float32, io_dtype=None):
    """Eval-mode SinkhornVAE forward.  Returns (logits, KLD)."""
    if io_dtype is None:
        io_dtype = jnp.float32
    B, M = x.shape
    kparams = _fold_params(params, matmul_dtype)
    Hq = kparams[0].shape[1]          # q hidden width  (qW1: (M, Hq))
    Hp = kparams[20].shape[0]         # p hidden width  (pW2: (Hp, M))

    budget = _vmem_budget()
    mm_bytes = jnp.dtype(matmul_dtype).itemsize
    io_bytes = jnp.dtype(io_dtype).itemsize

    TB = block_batch if block_batch is not None else _pick_batch_tile(B)
    assert B % TB == 0, "batch must be divisible by the batch tile"
    nt = B // TB

    TM = block_items if block_items is not None else _pick_items_tile(
        M, Hq, Hp, mm_bytes, budget)
    assert M % TM == 0, "n_items must be divisible by the item tile"
    assert TM == M or TM % 128 == 0, "item tile must be lane-aligned (x128)"
    nm = M // TM

    x = x.astype(io_dtype)            # stream bf16 (TB, TM) tiles when requested

    # ---------------- BlockSpecs ----------------
    x_spec = pl.BlockSpec((TB, TM), lambda i, j: (i, jnp.minimum(j, nm - 1)))

    w_specs = []
    for idx, w in enumerate(kparams):
        if idx == 0:        # qW1 (M, Hq): row tiles follow the encoder phase
            w_specs.append(pl.BlockSpec(
                (TM, Hq), lambda i, j: (jnp.minimum(j, nm - 1), 0)))
        elif idx == 20:     # pW2 (Hp, M): column tiles follow the decoder phase
            w_specs.append(pl.BlockSpec(
                (Hp, TM), lambda i, j: (0, jnp.maximum(j - nm, 0))))
        elif idx == 21:     # pb2 (1, M)
            w_specs.append(pl.BlockSpec(
                (1, TM), lambda i, j: (0, jnp.maximum(j - nm, 0))))
        else:               # small weights: constant block index -> fetched once
            w_specs.append(pl.BlockSpec(w.shape, lambda i, j: (0, 0)))

    out_shape = (jax.ShapeDtypeStruct((B, M), io_dtype),
                 jax.ShapeDtypeStruct((1, 128 * nt), jnp.float32))
    out_specs = (pl.BlockSpec((TB, TM), lambda i, j: (i, jnp.maximum(j - nm, 0))),
                 pl.BlockSpec((1, 128), lambda i, j: (0, i)))

    scratch_shapes = [pltpu.VMEM((TB, Hq), jnp.float32),   # encoder accumulator
                      pltpu.VMEM((TB, 1), jnp.float32),    # ||x||^2 accumulator
                      pltpu.VMEM((TB, Hp), jnp.float32)]   # decoder hidden

    # ---------------- cost / VMEM hints ----------------
    mm_shapes = [kparams[i].shape for i in (0, 2, 4, 6, 8, 10, 12, 14, 16, 18, 20)]
    flops = 2 * B * sum(a * b for a, b in mm_shapes)
    L = kparams[18].shape[0]
    transcendentals = B * (1 + 2 * L)            # rsqrt + exp(logs) per flow
    big_w = _nbytes(kparams[0]) + _nbytes(kparams[20]) + _nbytes(kparams[21])
    small_w = sum(_nbytes(w) for i, w in enumerate(kparams) if i not in (0, 20, 21))
    bytes_accessed = (B * M * io_bytes * 2                   # x in + logits out
                      + small_w + big_w * (1 if nm == 1 else nt)
                      + 128 * nt * 4)
    cost = pl.CostEstimate(flops=int(flops),
                           transcendentals=int(transcendentals),
                           bytes_accessed=int(bytes_accessed))

    # Double-buffered pipeline tiles + single-copy scratch + margin, clamped to
    # the generation-aware budget (~48 MiB on v7x, ~96 MiB on v5e/v6e).
    tile_bytes = (2 * TB * TM * io_bytes                       # x + logits tiles
                  + TM * Hq * mm_bytes + Hp * TM * mm_bytes + TM * 4
                  + small_w + 128 * 4)
    scratch_bytes = TB * (Hq + Hp + 1) * 4
    est = 2 * tile_bytes + scratch_bytes + (4 << 20)
    vmem_limit = int(min(max(est, 16 << 20), budget))

    fn = pl.pallas_call(
        functools.partial(sinkhorn_vae_kernel, nm),
        out_shape=out_shape,
        grid_spec=pltpu.PrefetchScalarGridSpec(
            num_scalar_prefetch=0,
            grid=(nt, 2 * nm),
            in_specs=[x_spec] + w_specs,
            out_specs=out_specs,
            scratch_shapes=scratch_shapes),
        compiler_params=pltpu.CompilerParams(
            dimension_semantics=("parallel", "arbitrary"),
            vmem_limit_bytes=vmem_limit),
        cost_estimate=cost,
    )
    logits, kld_partial = fn(x, *kparams)
    # Each batch tile wrote its partial sum replicated across 128 lanes.
    kld = jnp.sum(kld_partial) / (128.0 * B)
    return logits, kld


# ----------------------------------------------------------------------------
# Deterministic parameter initialization (matches module __init__ shapes)
# ----------------------------------------------------------------------------
def init_params(key, p_dims):
    q_dims = p_dims[::-1]
    D = p_dims[0]                 # latent dim (flow dim)
    Hf = 3 * D + 1                # pyro affine_autoregressive default hidden size
    keys = jax.random.split(key, 10)

    def xavier(k, fi, fo):
        lim = float(np.sqrt(6.0 / (fi + fo)))
        return jax.random.uniform(k, (fi, fo), jnp.float32, -lim, lim)

    qW1 = xavier(keys[0], q_dims[0], q_dims[1])
    qb1 = jnp.zeros((1, q_dims[1]), jnp.float32)
    qW2 = xavier(keys[1], q_dims[1], 2 * q_dims[2])
    qb2 = jnp.zeros((1, 2 * q_dims[2]), jnp.float32)

    pW1 = xavier(keys[2], p_dims[0], p_dims[1])
    pb1 = jnp.zeros((1, p_dims[1]), jnp.float32)
    pW2 = xavier(keys[3], p_dims[1], p_dims[2])
    pb2 = jnp.zeros((1, p_dims[2]), jnp.float32)

    # MADE masks (identity permutation), pre-multiplied into the flow weights.
    in_deg = np.arange(1, D + 1, dtype=np.float32)
    hid_deg = np.round(np.linspace(1.0, D - 1.0, Hf)).astype(np.float32)
    mask_h = jnp.asarray((hid_deg[None, :] >= in_deg[:, None]).astype(np.float32))
    mask_o = jnp.asarray((in_deg[None, :] > hid_deg[:, None]).astype(np.float32))

    def flow(k0, k1, k2):
        Wh = xavier(k0, D, Hf) * mask_h
        Wm = xavier(k1, Hf, D) * mask_o
        Ws = xavier(k2, Hf, D) * mask_o
        return [Wh, jnp.zeros((1, Hf), jnp.float32),
                Wm, jnp.zeros((1, D), jnp.float32),
                Ws, jnp.zeros((1, D), jnp.float32)]

    f1 = flow(keys[4], keys[5], keys[6])
    f2 = flow(keys[7], keys[8], keys[9])

    return [qW1, qb1, qW2, qb2] + f1 + f2 + [pW1, pb1, pW2, pb2]


# ----------------------------------------------------------------------------
# Pure-JAX reference (faithful to the PyTorch eval-mode forward)
# ----------------------------------------------------------------------------
def reference_forward(x, params):
    (qW1, qb1, qW2, qb2,
     f1Wh, f1bh, f1Wm, f1bm, f1Ws, f1bs,
     f2Wh, f2bh, f2Wm, f2bm, f2Ws, f2bs,
     pW1, pb1, pW2, pb2) = params

    nrm = jnp.sqrt(jnp.sum(x * x, axis=1, keepdims=True))
    h = x / jnp.maximum(nrm, 1e-12)
    h1 = jnp.maximum(h @ qW1 + qb1, 0.0)
    o = h1 @ qW2 + qb2
    L = o.shape[1] // 2
    mu, logvar = o[:, :L], o[:, L:]
    sigma = jnp.exp(0.5 * logvar)
    z0 = mu
    base_lp = jnp.sum(-0.5 * logvar - 0.5 * ((z0 - mu) / sigma) ** 2
                      - 0.5 * LOG2PI, axis=1, keepdims=True)

    def aa(u, Wh, bh, Wm, bm, Ws, bs):
        hf = jnp.maximum(u @ Wh + bh, 0.0)
        mean = hf @ Wm + bm
        logs = jnp.clip(hf @ Ws + bs, -5.0, 3.0)
        return jnp.exp(logs) * u + mean, jnp.sum(logs, axis=1, keepdims=True)

    u, J1 = aa(z0, f1Wh, f1bh, f1Wm, f1bm, f1Ws, f1bs)
    u = u[:, ::-1]                                   # Reverse transform
    u, J2 = aa(u, f2Wh, f2bh, f2Wm, f2bm, f2Ws, f2bs)
    log_q = base_lp - (J1 + J2)
    prior_lp = jnp.sum(-0.5 * u * u - 0.5 * LOG2PI, axis=1, keepdims=True)
    kld = jnp.mean(log_q - prior_lp)
    hp = jnp.maximum(u @ pW1 + pb1, 0.0)
    logits = hp @ pW2 + pb2
    return logits, kld


if __name__ == "__main__":
    # p_dims = [latent, hidden, n_items]; q_dims = reversed
    p_dims = [16, 64, 256]
    B = 256

    key = jax.random.PRNGKey(0)
    kx, kp = jax.random.split(key)
    x = jax.random.uniform(kx, (B, p_dims[2]), jnp.float32)
    params = init_params(kp, p_dims)

    ref_logits, ref_kld = reference_forward(x, params)

    # --- f32, weights VMEM-resident (auto item tile == n_items, nt=2 tiles) ----
    logits, kld = sinkhorn_vae_forward(x, params)
    jax.block_until_ready((logits, kld))
    assert logits.shape == (B, p_dims[2])
    np.testing.assert_allclose(np.asarray(logits), np.asarray(ref_logits),
                               rtol=5e-5, atol=5e-5)
    np.testing.assert_allclose(float(kld), float(ref_kld), rtol=5e-5, atol=5e-5)
    assert np.isfinite(np.asarray(logits)).all() and np.isfinite(float(kld))

    # --- f32, item-tiled path (nm=2: exercises the encoder-reduction /
    #     decoder-output phases used at recommender-scale n_items) --------------
    logits_t, kld_t = sinkhorn_vae_forward(x, params, block_items=128)
    jax.block_until_ready((logits_t, kld_t))
    np.testing.assert_allclose(np.asarray(logits_t), np.asarray(ref_logits),
                               rtol=5e-5, atol=5e-5)
    np.testing.assert_allclose(float(kld_t), float(ref_kld), rtol=5e-5, atol=5e-5)

    # --- bf16 weights for the two big matmuls + bf16 x/logits streaming --------
    logits16, kld16 = sinkhorn_vae_forward(x, params,
                                           matmul_dtype=jnp.bfloat16,
                                           io_dtype=jnp.bfloat16)
    jax.block_until_ready((logits16, kld16))
    np.testing.assert_allclose(np.asarray(logits16.astype(jnp.float32)),
                               np.asarray(ref_logits), rtol=5e-2, atol=5e-2)
    np.testing.assert_allclose(float(kld16), float(ref_kld), rtol=1e-1, atol=1e-1)
    assert np.isfinite(np.asarray(logits16.astype(jnp.float32))).all()
    assert np.isfinite(float(kld16))

    print("KERNEL_OK")
</pallas_src>

<mosaic_0001>
module attributes {stable_mosaic.version = 11 : i64} {
  func.func @sinkhorn_vae_kernel(%arg0: i32, %arg1: i32, %arg2: memref<128x256xf32, #tpu.memory_space<vmem>>, %arg3: memref<256x64xf32, #tpu.memory_space<vmem>>, %arg4: memref<1x64xf32, #tpu.memory_space<vmem>>, %arg5: memref<64x16xf32, #tpu.memory_space<vmem>>, %arg6: memref<1x16xf32, #tpu.memory_space<vmem>>, %arg7: memref<64x16xf32, #tpu.memory_space<vmem>>, %arg8: memref<1x16xf32, #tpu.memory_space<vmem>>, %arg9: memref<16x56xf32, #tpu.memory_space<vmem>>, %arg10: memref<1x56xf32, #tpu.memory_space<vmem>>, %arg11: memref<56x16xf32, #tpu.memory_space<vmem>>, %arg12: memref<1x16xf32, #tpu.memory_space<vmem>>, %arg13: memref<56x16xf32, #tpu.memory_space<vmem>>, %arg14: memref<1x16xf32, #tpu.memory_space<vmem>>, %arg15: memref<16x56xf32, #tpu.memory_space<vmem>>, %arg16: memref<1x56xf32, #tpu.memory_space<vmem>>, %arg17: memref<56x16xf32, #tpu.memory_space<vmem>>, %arg18: memref<1x16xf32, #tpu.memory_space<vmem>>, %arg19: memref<56x16xf32, #tpu.memory_space<vmem>>, %arg20: memref<1x16xf32, #tpu.memory_space<vmem>>, %arg21: memref<16x64xf32, #tpu.memory_space<vmem>>, %arg22: memref<1x64xf32, #tpu.memory_space<vmem>>, %arg23: memref<64x256xf32, #tpu.memory_space<vmem>>, %arg24: memref<1x256xf32, #tpu.memory_space<vmem>>, %arg25: memref<128x256xf32, #tpu.memory_space<vmem>>, %arg26: memref<1x128xf32, #tpu.memory_space<vmem>>, %arg27: memref<128x64xf32, #tpu.memory_space<vmem>>, %arg28: memref<128x1xf32, #tpu.memory_space<vmem>>, %arg29: memref<128x64xf32, #tpu.memory_space<vmem>>) attributes {dimension_semantics = [#tpu.dimension_semantics<parallel>, #tpu.dimension_semantics<arbitrary>], iteration_bounds = array<i64: 2, 2>, scalar_prefetch = 0 : i64, scratch_operands = 3 : i64, tpu.core_type = #tpu.core_type<tc>, window_params = [{transform_indices = @transform_0, window_bounds = array<i64: 128, 256>}, {transform_indices = @transform_1, window_bounds = array<i64: 256, 64>}, {pipeline_mode = #tpu.pipeline_mode<synchronous>, transform_indices = @transform_2, window_bounds = array<i64: 1, 64>}, {pipeline_mode = #tpu.pipeline_mode<synchronous>, transform_indices = @transform_3, window_bounds = array<i64: 64, 16>}, {pipeline_mode = #tpu.pipeline_mode<synchronous>, transform_indices = @transform_4, window_bounds = array<i64: 1, 16>}, {pipeline_mode = #tpu.pipeline_mode<synchronous>, transform_indices = @transform_5, window_bounds = array<i64: 64, 16>}, {pipeline_mode = #tpu.pipeline_mode<synchronous>, transform_indices = @transform_6, window_bounds = array<i64: 1, 16>}, {pipeline_mode = #tpu.pipeline_mode<synchronous>, transform_indices = @transform_7, window_bounds = array<i64: 16, 56>}, {pipeline_mode = #tpu.pipeline_mode<synchronous>, transform_indices = @transform_8, window_bounds = array<i64: 1, 56>}, {pipeline_mode = #tpu.pipeline_mode<synchronous>, transform_indices = @transform_9, window_bounds = array<i64: 56, 16>}, {pipeline_mode = #tpu.pipeline_mode<synchronous>, transform_indices = @transform_10, window_bounds = array<i64: 1, 16>}, {pipeline_mode = #tpu.pipeline_mode<synchronous>, transform_indices = @transform_11, window_bounds = array<i64: 56, 16>}, {pipeline_mode = #tpu.pipeline_mode<synchronous>, transform_indices = @transform_12, window_bounds = array<i64: 1, 16>}, {pipeline_mode = #tpu.pipeline_mode<synchronous>, transform_indices = @transform_13, window_bounds = array<i64: 16, 56>}, {pipeline_mode = #tpu.pipeline_mode<synchronous>, transform_indices = @transform_14, window_bounds = array<i64: 1, 56>}, {pipeline_mode = #tpu.pipeline_mode<synchronous>, transform_indices = @transform_15, window_bounds = array<i64: 56, 16>}, {pipeline_mode = #tpu.pipeline_mode<synchronous>, transform_indices = @transform_16, window_bounds = array<i64: 1, 16>}, {pipeline_mode = #tpu.pipeline_mode<synchronous>, transform_indices = @transform_17, window_bounds = array<i64: 56, 16>}, {pipeline_mode = #tpu.pipeline_mode<synchronous>, transform_indices = @transform_18, window_bounds = array<i64: 1, 16>}, {pipeline_mode = #tpu.pipeline_mode<synchronous>, transform_indices = @transform_19, window_bounds = array<i64: 16, 64>}, {pipeline_mode = #tpu.pipeline_mode<synchronous>, transform_indices = @transform_20, window_bounds = array<i64: 1, 64>}, {transform_indices = @transform_21, window_bounds = array<i64: 64, 256>}, {transform_indices = @transform_22, window_bounds = array<i64: 1, 256>}, {transform_indices = @transform_23, window_bounds = array<i64: 128, 256>}, {transform_indices = @transform_24, window_bounds = array<i64: 1, 128>}]} {
    %c0_i32 = arith.constant 0 : i32
    %0 = arith.cmpi eq, %arg1, %c0_i32 : i32
    %1 = arith.extui %0 : i1 to i32
    %c0_i32_0 = arith.constant 0 : i32
    %2 = arith.cmpi ne, %1, %c0_i32_0 : i32
    scf.if %2 {
      %cst = arith.constant 0.000000e+00 : f32
      %12 = vector.broadcast %cst : f32 to vector<128x64xf32>
      %c0 = arith.constant 0 : index
      %c0_6 = arith.constant 0 : index
      %13 = vector.load %arg27[%c0, %c0_6] : memref<128x64xf32, #tpu.memory_space<vmem>>, vector<128x64xf32>
      tpu.vector_store %arg27[%c0, %c0_6], %12 {strides = array<i32>} : memref<128x64xf32, #tpu.memory_space<vmem>>, vector<128x64xf32>,
      %cst_7 = arith.constant 0.000000e+00 : f32
      %14 = vector.broadcast %cst_7 : f32 to vector<128x1xf32>
      %c0_8 = arith.constant 0 : index
      %c0_9 = arith.constant 0 : index
      %15 = vector.load %arg28[%c0_8, %c0_9] : memref<128x1xf32, #tpu.memory_space<vmem>>, vector<128x1xf32>
      tpu.vector_store %arg28[%c0_8, %c0_9], %14 {strides = array<i32>} : memref<128x1xf32, #tpu.memory_space<vmem>>, vector<128x1xf32>,
    } else {
    }
    %c1_i32 = arith.constant 1 : i32
    %3 = arith.cmpi slt, %arg1, %c1_i32 : i32
    %4 = arith.extui %3 : i1 to i32
    %c0_i32_1 = arith.constant 0 : i32
    %5 = arith.cmpi ne, %4, %c0_i32_1 : i32
    scf.if %5 {
      %c0 = arith.constant 0 : index
      %c0_6 = arith.constant 0 : index
      %12 = vector.load %arg2[%c0, %c0_6] : memref<128x256xf32, #tpu.memory_space<vmem>>, vector<128x256xf32>
      %c0_7 = arith.constant 0 : index
      %c0_8 = arith.constant 0 : index
      %13 = vector.load %arg28[%c0_7, %c0_8] : memref<128x1xf32, #tpu.memory_space<vmem>>, vector<128x1xf32>
      %14 = arith.mulf %12, %12 : vector<128x256xf32>
      %cst = arith.constant dense<0.000000e+00> : vector<128xf32>
      %15 = vector.multi_reduction <add>, %14, %cst [1] : vector<128x256xf32> to vector<128xf32>
      %16 = vector.shape_cast %15 : vector<128xf32> to vector<128x1xf32>
      %17 = arith.addf %13, %16 : vector<128x1xf32>
      %c0_9 = arith.constant 0 : index
      %c0_10 = arith.constant 0 : index
      %18 = vector.load %arg28[%c0_9, %c0_10] : memref<128x1xf32, #tpu.memory_space<vmem>>, vector<128x1xf32>
      tpu.vector_store %arg28[%c0_9, %c0_10], %17 {strides = array<i32>} : memref<128x1xf32, #tpu.memory_space<vmem>>, vector<128x1xf32>,
      %c0_11 = arith.constant 0 : index
      %c0_12 = arith.constant 0 : index
      %19 = vector.load %arg27[%c0_11, %c0_12] : memref<128x64xf32, #tpu.memory_space<vmem>>, vector<128x64xf32>
      %c0_13 = arith.constant 0 : index
      %c0_14 = arith.constant 0 : index
      %20 = vector.load %arg3[%c0_13, %c0_14] : memref<256x64xf32, #tpu.memory_space<vmem>>, vector<256x64xf32>
      %cst_15 = arith.constant dense<0.000000e+00> : vector<128x64xf32>
      %21 = tpu.matmul %12, %20, %cst_15 {dimension_numbers = #tpu.dot_dimension_numbers<[1], [0], [0], [1], [0, 0, 1, 1], [], []>} : vector<128x256xf32>, vector<256x64xf32>, vector<128x64xf32> -> vector<128x64xf32>
      %22 = arith.addf %19, %21 : vector<128x64xf32>
      %c0_16 = arith.constant 0 : index
      %c0_17 = arith.constant 0 : index
      %23 = vector.load %arg27[%c0_16, %c0_17] : memref<128x64xf32, #tpu.memory_space<vmem>>, vector<128x64xf32>
      tpu.vector_store %arg27[%c0_16, %c0_17], %22 {strides = array<i32>} : memref<128x64xf32, #tpu.memory_space<vmem>>, vector<128x64xf32>,
    } else {
    }
    %c0_i32_2 = arith.constant 0 : i32
    %6 = arith.cmpi eq, %arg1, %c0_i32_2 : i32
    %7 = arith.extui %6 : i1 to i32
    %c0_i32_3 = arith.constant 0 : i32
    %8 = arith.cmpi ne, %7, %c0_i32_3 : i32
    scf.if %8 {
      %c0 = arith.constant 0 : index
      %c0_6 = arith.constant 0 : index
      %12 = vector.load %arg28[%c0, %c0_6] : memref<128x1xf32, #tpu.memory_space<vmem>>, vector<128x1xf32>
      %cst = arith.constant 1.000000e-24 : f32
      %13 = vector.broadcast %cst : f32 to vector<128x1xf32>
      %14 = arith.maximumf %12, %13 : vector<128x1xf32>
      %15 = math.rsqrt %14 : vector<128x1xf32>
      %c0_7 = arith.constant 0 : index
      %c0_8 = arith.constant 0 : index
      %16 = vector.load %arg27[%c0_7, %c0_8] : memref<128x64xf32, #tpu.memory_space<vmem>>, vector<128x64xf32>
      %17 = vector.broadcast %15 : vector<128x1xf32> to vector<128x64xf32>
      %18 = arith.mulf %16, %17 : vector<128x64xf32>
      %c0_9 = arith.constant 0 : index
      %c0_10 = arith.constant 0 : index
      %19 = vector.load %arg4[%c0_9, %c0_10] : memref<1x64xf32, #tpu.memory_space<vmem>>, vector<1x64xf32>
      %20 = vector.broadcast %19 : vector<1x64xf32> to vector<128x64xf32>
      %21 = arith.addf %18, %20 : vector<128x64xf32>
      %cst_11 = arith.constant 0.000000e+00 : f32
      %22 = vector.broadcast %cst_11 : f32 to vector<128x64xf32>
      %23 = arith.maximumf %21, %22 : vector<128x64xf32>
      %c0_12 = arith.constant 0 : index
      %c0_13 = arith.constant 0 : index
      %24 = vector.load %arg5[%c0_12, %c0_13] : memref<64x16xf32, #tpu.memory_space<vmem>>, vector<64x16xf32>
      %cst_14 = arith.constant dense<0.000000e+00> : vector<128x16xf32>
      %25 = tpu.matmul %23, %24, %cst_14 {dimension_numbers = #tpu.dot_dimension_numbers<[1], [0], [0], [1], [0, 0, 1, 1], [], []>} : vector<128x64xf32>, vector<64x16xf32>, vector<128x16xf32> -> vector<128x16xf32>
      %c0_15 = arith.constant 0 : index
      %c0_16 = arith.constant 0 : index
      %26 = vector.load %arg6[%c0_15, %c0_16] : memref<1x16xf32, #tpu.memory_space<vmem>>, vector<1x16xf32>
      %27 = vector.broadcast %26 : vector<1x16xf32> to vector<128x16xf32>
      %28 = arith.addf %25, %27 : vector<128x16xf32>
      %c0_17 = arith.constant 0 : index
      %c0_18 = arith.constant 0 : index
      %29 = vector.load %arg7[%c0_17, %c0_18] : memref<64x16xf32, #tpu.memory_space<vmem>>, vector<64x16xf32>
      %cst_19 = arith.constant dense<0.000000e+00> : vector<128x16xf32>
      %30 = tpu.matmul %23, %29, %cst_19 {dimension_numbers = #tpu.dot_dimension_numbers<[1], [0], [0], [1], [0, 0, 1, 1], [], []>} : vector<128x64xf32>, vector<64x16xf32>, vector<128x16xf32> -> vector<128x16xf32>
      %c0_20 = arith.constant 0 : index
      %c0_21 = arith.constant 0 : index
      %31 = vector.load %arg8[%c0_20, %c0_21] : memref<1x16xf32, #tpu.memory_space<vmem>>, vector<1x16xf32>
      %32 = vector.broadcast %31 : vector<1x16xf32> to vector<128x16xf32>
      %33 = arith.addf %30, %32 : vector<128x16xf32>
      %c0_22 = arith.constant 0 : index
      %c0_23 = arith.constant 0 : index
      %34 = vector.load %arg9[%c0_22, %c0_23] : memref<16x56xf32, #tpu.memory_space<vmem>>, vector<16x56xf32>
      %cst_24 = arith.constant dense<0.000000e+00> : vector<128x56xf32>
      %35 = tpu.matmul %28, %34, %cst_24 {dimension_numbers = #tpu.dot_dimension_numbers<[1], [0], [0], [1], [0, 0, 1, 1], [], []>} : vector<128x16xf32>, vector<16x56xf32>, vector<128x56xf32> -> vector<128x56xf32>
      %c0_25 = arith.constant 0 : index
      %c0_26 = arith.constant 0 : index
      %36 = vector.load %arg10[%c0_25, %c0_26] : memref<1x56xf32, #tpu.memory_space<vmem>>, vector<1x56xf32>
      %37 = vector.broadcast %36 : vector<1x56xf32> to vector<128x56xf32>
      %38 = arith.addf %35, %37 : vector<128x56xf32>
      %cst_27 = arith.constant 0.000000e+00 : f32
      %39 = vector.broadcast %cst_27 : f32 to vector<128x56xf32>
      %40 = arith.maximumf %38, %39 : vector<128x56xf32>
      %c0_28 = arith.constant 0 : index
      %c0_29 = arith.constant 0 : index
      %41 = vector.load %arg11[%c0_28, %c0_29] : memref<56x16xf32, #tpu.memory_space<vmem>>, vector<56x16xf32>
      %cst_30 = arith.constant dense<0.000000e+00> : vector<128x16xf32>
      %42 = tpu.matmul %40, %41, %cst_30 {dimension_numbers = #tpu.dot_dimension_numbers<[1], [0], [0], [1], [0, 0, 1, 1], [], []>} : vector<128x56xf32>, vector<56x16xf32>, vector<128x16xf32> -> vector<128x16xf32>
      %c0_31 = arith.constant 0 : index
      %c0_32 = arith.constant 0 : index
      %43 = vector.load %arg12[%c0_31, %c0_32] : memref<1x16xf32, #tpu.memory_space<vmem>>, vector<1x16xf32>
      %44 = vector.broadcast %43 : vector<1x16xf32> to vector<128x16xf32>
      %45 = arith.addf %42, %44 : vector<128x16xf32>
      %c0_33 = arith.constant 0 : index
      %c0_34 = arith.constant 0 : index
      %46 = vector.load %arg13[%c0_33, %c0_34] : memref<56x16xf32, #tpu.memory_space<vmem>>, vector<56x16xf32>
      %cst_35 = arith.constant dense<0.000000e+00> : vector<128x16xf32>
      %47 = tpu.matmul %40, %46, %cst_35 {dimension_numbers = #tpu.dot_dimension_numbers<[1], [0], [0], [1], [0, 0, 1, 1], [], []>} : vector<128x56xf32>, vector<56x16xf32>, vector<128x16xf32> -> vector<128x16xf32>
      %c0_36 = arith.constant 0 : index
      %c0_37 = arith.constant 0 : index
      %48 = vector.load %arg14[%c0_36, %c0_37] : memref<1x16xf32, #tpu.memory_space<vmem>>, vector<1x16xf32>
      %49 = vector.broadcast %48 : vector<1x16xf32> to vector<128x16xf32>
      %50 = arith.addf %47, %49 : vector<128x16xf32>
      %cst_38 = arith.constant -5.000000e+00 : f32
      %cst_39 = arith.constant 3.000000e+00 : f32
      %51 = vector.broadcast %cst_38 : f32 to vector<128x16xf32>
      %52 = arith.maximumf %51, %50 : vector<128x16xf32>
      %53 = vector.broadcast %cst_39 : f32 to vector<128x16xf32>
      %54 = arith.minimumf %53, %52 : vector<128x16xf32>
      %55 = math.exp %54 : vector<128x16xf32>
      %56 = arith.mulf %55, %28 : vector<128x16xf32>
      %57 = arith.addf %56, %45 : vector<128x16xf32>
      %c0_40 = arith.constant 0 : index
      %c0_41 = arith.constant 0 : index
      %58 = vector.load %arg15[%c0_40, %c0_41] : memref<16x56xf32, #tpu.memory_space<vmem>>, vector<16x56xf32>
      %cst_42 = arith.constant dense<0.000000e+00> : vector<128x56xf32>
      %59 = tpu.matmul %57, %58, %cst_42 {dimension_numbers = #tpu.dot_dimension_numbers<[1], [0], [0], [1], [0, 0, 1, 1], [], []>} : vector<128x16xf32>, vector<16x56xf32>, vector<128x56xf32> -> vector<128x56xf32>
      %c0_43 = arith.constant 0 : index
      %c0_44 = arith.constant 0 : index
      %60 = vector.load %arg16[%c0_43, %c0_44] : memref<1x56xf32, #tpu.memory_space<vmem>>, vector<1x56xf32>
      %61 = vector.broadcast %60 : vector<1x56xf32> to vector<128x56xf32>
      %62 = arith.addf %59, %61 : vector<128x56xf32>
      %cst_45 = arith.constant 0.000000e+00 : f32
      %63 = vector.broadcast %cst_45 : f32 to vector<128x56xf32>
      %64 = arith.maximumf %62, %63 : vector<128x56xf32>
      %c0_46 = arith.constant 0 : index
      %c0_47 = arith.constant 0 : index
      %65 = vector.load %arg17[%c0_46, %c0_47] : memref<56x16xf32, #tpu.memory_space<vmem>>, vector<56x16xf32>
      %cst_48 = arith.constant dense<0.000000e+00> : vector<128x16xf32>
      %66 = tpu.matmul %64, %65, %cst_48 {dimension_numbers = #tpu.dot_dimension_numbers<[1], [0], [0], [1], [0, 0, 1, 1], [], []>} : vector<128x56xf32>, vector<56x16xf32>, vector<128x16xf32> -> vector<128x16xf32>
      %c0_49 = arith.constant 0 : index
      %c0_50 = arith.constant 0 : index
      %67 = vector.load %arg18[%c0_49, %c0_50] : memref<1x16xf32, #tpu.memory_space<vmem>>, vector<1x16xf32>
      %68 = vector.broadcast %67 : vector<1x16xf32> to vector<128x16xf32>
      %69 = arith.addf %66, %68 : vector<128x16xf32>
      %c0_51 = arith.constant 0 : index
      %c0_52 = arith.constant 0 : index
      %70 = vector.load %arg19[%c0_51, %c0_52] : memref<56x16xf32, #tpu.memory_space<vmem>>, vector<56x16xf32>
      %cst_53 = arith.constant dense<0.000000e+00> : vector<128x16xf32>
      %71 = tpu.matmul %64, %70, %cst_53 {dimension_numbers = #tpu.dot_dimension_numbers<[1], [0], [0], [1], [0, 0, 1, 1], [], []>} : vector<128x56xf32>, vector<56x16xf32>, vector<128x16xf32> -> vector<128x16xf32>
      %c0_54 = arith.constant 0 : index
      %c0_55 = arith.constant 0 : index
      %72 = vector.load %arg20[%c0_54, %c0_55] : memref<1x16xf32, #tpu.memory_space<vmem>>, vector<1x16xf32>
      %73 = vector.broadcast %72 : vector<1x16xf32> to vector<128x16xf32>
      %74 = arith.addf %71, %73 : vector<128x16xf32>
      %cst_56 = arith.constant -5.000000e+00 : f32
      %cst_57 = arith.constant 3.000000e+00 : f32
      %75 = vector.broadcast %cst_56 : f32 to vector<128x16xf32>
      %76 = arith.maximumf %75, %74 : vector<128x16xf32>
      %77 = vector.broadcast %cst_57 : f32 to vector<128x16xf32>
      %78 = arith.minimumf %77, %76 : vector<128x16xf32>
      %79 = math.exp %78 : vector<128x16xf32>
      %80 = arith.mulf %79, %57 : vector<128x16xf32>
      %81 = arith.addf %80, %69 : vector<128x16xf32>
      %82 = arith.mulf %81, %81 : vector<128x16xf32>
      %83 = arith.subf %82, %33 : vector<128x16xf32>
      %cst_58 = arith.constant 5.000000e-01 : f32
      %84 = vector.broadcast %cst_58 : f32 to vector<128x16xf32>
      %85 = arith.mulf %84, %83 : vector<128x16xf32>
      %86 = arith.subf %85, %54 : vector<128x16xf32>
      %87 = arith.subf %86, %78 : vector<128x16xf32>
      %cst_59 = arith.constant dense<0.000000e+00> : vector<128xf32>
      %88 = vector.multi_reduction <add>, %87, %cst_59 [1] : vector<128x16xf32> to vector<128xf32>
      %89 = vector.shape_cast %88 : vector<128xf32> to vector<128x1xf32>
      %cst_60 = arith.constant dense<0.000000e+00> : vector<1xf32>
      %90 = vector.multi_reduction <add>, %89, %cst_60 [0] : vector<128x1xf32> to vector<1xf32>
      %91 = vector.shape_cast %90 : vector<1xf32> to vector<1x1xf32>
      %92 = vector.shape_cast %91 : vector<1x1xf32> to vector<1x1xf32>
      %93 = vector.broadcast %92 : vector<1x1xf32> to vector<1x128xf32>
      %c0_61 = arith.constant 0 : index
      %c0_62 = arith.constant 0 : index
      %94 = vector.load %arg26[%c0_61, %c0_62] : memref<1x128xf32, #tpu.memory_space<vmem>>, vector<1x128xf32>
      tpu.vector_store %arg26[%c0_61, %c0_62], %93 {strides = array<i32>} : memref<1x128xf32, #tpu.memory_space<vmem>>, vector<1x128xf32>,
      %c0_63 = arith.constant 0 : index
      %c0_64 = arith.constant 0 : index
      %95 = vector.load %arg21[%c0_63, %c0_64] : memref<16x64xf32, #tpu.memory_space<vmem>>, vector<16x64xf32>
      %cst_65 = arith.constant dense<0.000000e+00> : vector<128x64xf32>
      %96 = tpu.matmul %81, %95, %cst_65 {dimension_numbers = #tpu.dot_dimension_numbers<[1], [0], [0], [1], [0, 0, 1, 1], [], []>} : vector<128x16xf32>, vector<16x64xf32>, vector<128x64xf32> -> vector<128x64xf32>
      %c0_66 = arith.constant 0 : index
      %c0_67 = arith.constant 0 : index
      %97 = vector.load %arg22[%c0_66, %c0_67] : memref<1x64xf32, #tpu.memory_space<vmem>>, vector<1x64xf32>
      %98 = vector.broadcast %97 : vector<1x64xf32> to vector<128x64xf32>
      %99 = arith.addf %96, %98 : vector<128x64xf32>
      %cst_68 = arith.constant 0.000000e+00 : f32
      %100 = vector.broadcast %cst_68 : f32 to vector<128x64xf32>
      %101 = arith.maximumf %99, %100 : vector<128x64xf32>
      %c0_69 = arith.constant 0 : index
      %c0_70 = arith.constant 0 : index
      %102 = vector.load %arg29[%c0_69, %c0_70] : memref<128x64xf32, #tpu.memory_space<vmem>>, vector<128x64xf32>
      tpu.vector_store %arg29[%c0_69, %c0_70], %101 {strides = array<i32>} : memref<128x64xf32, #tpu.memory_space<vmem>>, vector<128x64xf32>,
    } else {
    }
    %c1_i32_4 = arith.constant 1 : i32
    %9 = arith.cmpi sge, %arg1, %c1_i32_4 : i32
    %10 = arith.extui %9 : i1 to i32
    %c0_i32_5 = arith.constant 0 : i32
    %11 = arith.cmpi ne, %10, %c0_i32_5 : i32
    scf.if %11 {
      %c0 = arith.constant 0 : index
      %c0_6 = arith.constant 0 : index
      %12 = vector.load %arg29[%c0, %c0_6] : memref<128x64xf32, #tpu.memory_space<vmem>>, vector<128x64xf32>
      %c0_7 = arith.constant 0 : index
      %c0_8 = arith.constant 0 : index
      %13 = vector.load %arg23[%c0_7, %c0_8] : memref<64x256xf32, #tpu.memory_space<vmem>>, vector<64x256xf32>
      %cst = arith.constant dense<0.000000e+00> : vector<128x256xf32>
      %14 = tpu.matmul %12, %13, %cst {dimension_numbers = #tpu.dot_dimension_numbers<[1], [0], [0], [1], [0, 0, 1, 1], [], []>} : vector<128x64xf32>, vector<64x256xf32>, vector<128x256xf32> -> vector<128x256xf32>
      %c0_9 = arith.constant 0 : index
      %c0_10 = arith.constant 0 : index
      %15 = vector.load %arg24[%c0_9, %c0_10] : memref<1x256xf32, #tpu.memory_space<vmem>>, vector<1x256xf32>
      %16 = vector.broadcast %15 : vector<1x256xf32> to vector<128x256xf32>
      %17 = arith.addf %14, %16 : vector<128x256xf32>
      %c0_11 = arith.constant 0 : index
      %c0_12 = arith.constant 0 : index
      %18 = vector.load %arg25[%c0_11, %c0_12] : memref<128x256xf32, #tpu.memory_space<vmem>>, vector<128x256xf32>
      tpu.vector_store %arg25[%c0_11, %c0_12], %17 {strides = array<i32>} : memref<128x256xf32, #tpu.memory_space<vmem>>, vector<128x256xf32>,
    } else {
    }
    return
  }
  func.func @transform_0(%arg0: i32, %arg1: i32) -> (i32, i32) {
    %c0_i32 = arith.constant 0 : i32
    %0 = arith.minsi %arg1, %c0_i32 : i32
    %c0_i32_0 = arith.constant 0 : i32
    return %arg0, %0 : i32, i32
  }
  func.func @transform_1(%arg0: i32, %arg1: i32) -> (i32, i32) {
    %c0_i32 = arith.constant 0 : i32
    %0 = arith.minsi %arg1, %c0_i32 : i32
    %c0_i32_0 = arith.constant 0 : i32
    %c0_i32_1 = arith.constant 0 : i32
    return %0, %c0_i32_0 : i32, i32
  }
  func.func @transform_2(%arg0: i32, %arg1: i32) -> (i32, i32) {
    %c0_i32 = arith.constant 0 : i32
    %c0_i32_0 = arith.constant 0 : i32
    %c0_i32_1 = arith.constant 0 : i32
    return %c0_i32, %c0_i32_0 : i32, i32
  }
  func.func @transform_3(%arg0: i32, %arg1: i32) -> (i32, i32) {
    %c0_i32 = arith.constant 0 : i32
    %c0_i32_0 = arith.constant 0 : i32
    %c0_i32_1 = arith.constant 0 : i32
    return %c0_i32, %c0_i32_0 : i32, i32
  }
  func.func @transform_4(%arg0: i32, %arg1: i32) -> (i32, i32) {
    %c0_i32 = arith.constant 0 : i32
    %c0_i32_0 = arith.constant 0 : i32
    %c0_i32_1 = arith.constant 0 : i32
    return %c0_i32, %c0_i32_0 : i32, i32
  }
  func.func @transform_5(%arg0: i32, %arg1: i32) -> (i32, i32) {
    %c0_i32 = arith.constant 0 : i32
    %c0_i32_0 = arith.constant 0 : i32
    %c0_i32_1 = arith.constant 0 : i32
    return %c0_i32, %c0_i32_0 : i32, i32
  }
  func.func @transform_6(%arg0: i32, %arg1: i32) -> (i32, i32) {
    %c0_i32 = arith.constant 0 : i32
    %c0_i32_0 = arith.constant 0 : i32
    %c0_i32_1 = arith.constant 0 : i32
    return %c0_i32, %c0_i32_0 : i32, i32
  }
  func.func @transform_7(%arg0: i32, %arg1: i32) -> (i32, i32) {
    %c0_i32 = arith.constant 0 : i32
    %c0_i32_0 = arith.constant 0 : i32
    %c0_i32_1 = arith.constant 0 : i32
    return %c0_i32, %c0_i32_0 : i32, i32
  }
  func.func @transform_8(%arg0: i32, %arg1: i32) -> (i32, i32) {
    %c0_i32 = arith.constant 0 : i32
    %c0_i32_0 = arith.constant 0 : i32
    %c0_i32_1 = arith.constant 0 : i32
    return %c0_i32, %c0_i32_0 : i32, i32
  }
  func.func @transform_9(%arg0: i32, %arg1: i32) -> (i32, i32) {
    %c0_i32 = arith.constant 0 : i32
    %c0_i32_0 = arith.constant 0 : i32
    %c0_i32_1 = arith.constant 0 : i32
    return %c0_i32, %c0_i32_0 : i32, i32
  }
  func.func @transform_10(%arg0: i32, %arg1: i32) -> (i32, i32) {
    %c0_i32 = arith.constant 0 : i32
    %c0_i32_0 = arith.constant 0 : i32
    %c0_i32_1 = arith.constant 0 : i32
    return %c0_i32, %c0_i32_0 : i32, i32
  }
  func.func @transform_11(%arg0: i32, %arg1: i32) -> (i32, i32) {
    %c0_i32 = arith.constant 0 : i32
    %c0_i32_0 = arith.constant 0 : i32
    %c0_i32_1 = arith.constant 0 : i32
    return %c0_i32, %c0_i32_0 : i32, i32
  }
  func.func @transform_12(%arg0: i32, %arg1: i32) -> (i32, i32) {
    %c0_i32 = arith.constant 0 : i32
    %c0_i32_0 = arith.constant 0 : i32
    %c0_i32_1 = arith.constant 0 : i32
    return %c0_i32, %c0_i32_0 : i32, i32
  }
  func.func @transform_13(%arg0: i32, %arg1: i32) -> (i32, i32) {
    %c0_i32 = arith.constant 0 : i32
    %c0_i32_0 = arith.constant 0 : i32
    %c0_i32_1 = arith.constant 0 : i32
    return %c0_i32, %c0_i32_0 : i32, i32
  }
  func.func @transform_14(%arg0: i32, %arg1: i32) -> (i32, i32) {
    %c0_i32 = arith.constant 0 : i32
    %c0_i32_0 = arith.constant 0 : i32
    %c0_i32_1 = arith.constant 0 : i32
    return %c0_i32, %c0_i32_0 : i32, i32
  }
  func.func @transform_15(%arg0: i32, %arg1: i32) -> (i32, i32) {
    %c0_i32 = arith.constant 0 : i32
    %c0_i32_0 = arith.constant 0 : i32
    %c0_i32_1 = arith.constant 0 : i32
    return %c0_i32, %c0_i32_0 : i32, i32
  }
  func.func @transform_16(%arg0: i32, %arg1: i32) -> (i32, i32) {
    %c0_i32 = arith.constant 0 : i32
    %c0_i32_0 = arith.constant 0 : i32
    %c0_i32_1 = arith.constant 0 : i32
    return %c0_i32, %c0_i32_0 : i32, i32
  }
  func.func @transform_17(%arg0: i32, %arg1: i32) -> (i32, i32) {
    %c0_i32 = arith.constant 0 : i32
    %c0_i32_0 = arith.constant 0 : i32
    %c0_i32_1 = arith.constant 0 : i32
    return %c0_i32, %c0_i32_0 : i32, i32
  }
  func.func @transform_18(%arg0: i32, %arg1: i32) -> (i32, i32) {
    %c0_i32 = arith.constant 0 : i32
    %c0_i32_0 = arith.constant 0 : i32
    %c0_i32_1 = arith.constant 0 : i32
    return %c0_i32, %c0_i32_0 : i32, i32
  }
  func.func @transform_19(%arg0: i32, %arg1: i32) -> (i32, i32) {
    %c0_i32 = arith.constant 0 : i32
    %c0_i32_0 = arith.constant 0 : i32
    %c0_i32_1 = arith.constant 0 : i32
    return %c0_i32, %c0_i32_0 : i32, i32
  }
  func.func @transform_20(%arg0: i32, %arg1: i32) -> (i32, i32) {
    %c0_i32 = arith.constant 0 : i32
    %c0_i32_0 = arith.constant 0 : i32
    %c0_i32_1 = arith.constant 0 : i32
    return %c0_i32, %c0_i32_0 : i32, i32
  }
  func.func @transform_21(%arg0: i32, %arg1: i32) -> (i32, i32) {
    %c1_i32 = arith.constant 1 : i32
    %0 = arith.subi %arg1, %c1_i32 : i32
    %c0_i32 = arith.constant 0 : i32
    %1 = arith.maxsi %0, %c0_i32 : i32
    %c0_i32_0 = arith.constant 0 : i32
    %c0_i32_1 = arith.constant 0 : i32
    return %c0_i32_0, %1 : i32, i32
  }
  func.func @transform_22(%arg0: i32, %arg1: i32) -> (i32, i32) {
    %c1_i32 = arith.constant 1 : i32
    %0 = arith.subi %arg1, %c1_i32 : i32
    %c0_i32 = arith.constant 0 : i32
    %1 = arith.maxsi %0, %c0_i32 : i32
    %c0_i32_0 = arith.constant 0 : i32
    %c0_i32_1 = arith.constant 0 : i32
    return %c0_i32_0, %1 : i32, i32
  }
  func.func @transform_23(%arg0: i32, %arg1: i32) -> (i32, i32) {
    %c1_i32 = arith.constant 1 : i32
    %0 = arith.subi %arg1, %c1_i32 : i32
    %c0_i32 = arith.constant 0 : i32
    %1 = arith.maxsi %0, %c0_i32 : i32
    %c0_i32_0 = arith.constant 0 : i32
    return %arg0, %1 : i32, i32
  }
  func.func @transform_24(%arg0: i32, %arg1: i32) -> (i32, i32) {
    %c0_i32 = arith.constant 0 : i32
    %c0_i32_0 = arith.constant 0 : i32
    return %c0_i32, %arg0 : i32, i32
  }
}

</mosaic_0001>

<bundles_post_ra>
// kernel: tpu_custom_call.1
= control target key start
LH: loop header
LB: loop body
LE: loop exit
PB: predicated region body
PF: predicated region fallthrough
CT: control target
= control target key end

     0   :  { %s7208_s0 = inlined_call_operand.vmem [shape: f32[256,256], index: 0, kind: input, shape index: {}]   ;;  %s7209_s1 = inlined_call_operand.vmem [shape: f32[256,64], index: 1, kind: input, shape index: {}]   ;;  %s7210_s2 = inlined_call_operand.vmem [shape: f32[1,64], index: 2, kind: input, shape index: {}]   ;;  %s7211_s3 = inlined_call_operand.vmem [shape: f32[64,16], index: 3, kind: input, shape index: {}]   ;;  %s7212_s4 = inlined_call_operand.vmem [shape: f32[1,16], index: 4, kind: input, shape index: {}]   ;;  %s7213_s5 = inlined_call_operand.vmem [shape: f32[64,16], index: 5, kind: input, shape index: {}]   ;;  %s7214_s6 = inlined_call_operand.vmem [shape: f32[1,16], index: 6, kind: input, shape index: {}]   ;;  %s7215_s7 = inlined_call_operand.vmem [shape: f32[16,56], index: 7, kind: input, shape index: {}]   ;;  %s7216_s8 = inlined_call_operand.vmem [shape: f32[1,56], index: 8, kind: input, shape index: {}]   ;;  %s7217_s9 = inlined_call_operand.vmem [shape: f32[56,16], index: 9, kind: input, shape index: {}]   ;;  %s7218_s10 = inlined_call_operand.vmem [shape: f32[1,16], index: 10, kind: input, shape index: {}]   ;;  %s7219_s11 = inlined_call_operand.vmem [shape: f32[56,16], index: 11, kind: input, shape index: {}]   ;;  %s7220_s12 = inlined_call_operand.vmem [shape: f32[1,16], index: 12, kind: input, shape index: {}]   ;;  %s7221_s13 = inlined_call_operand.vmem [shape: f32[16,56], index: 13, kind: input, shape index: {}]   ;;  %s7222_s14 = inlined_call_operand.vmem [shape: f32[1,56], index: 14, kind: input, shape index: {}]   ;;  %s7223_s15 = inlined_call_operand.vmem [shape: f32[56,16], index: 15, kind: input, shape index: {}]   ;;  %s7224_s16 = inlined_call_operand.vmem [shape: f32[1,16], index: 16, kind: input, shape index: {}]   ;;  %s7225_s17 = inlined_call_operand.vmem [shape: f32[56,16], index: 17, kind: input, shape index: {}]   ;;  %s7226_s18 = inlined_call_operand.vmem [shape: f32[1,16], index: 18, kind: input, shape index: {}]   ;;  %s7227_s19 = inlined_call_operand.vmem [shape: f32[16,64], index: 19, kind: input, shape index: {}]   ;;  %s7228_s20 = inlined_call_operand.vmem [shape: f32[1,64], index: 20, kind: input, shape index: {}]   ;;  %s7229_s21 = inlined_call_operand.vmem [shape: f32[64,256], index: 21, kind: input, shape index: {}]   ;;  %s7230_s22 = inlined_call_operand.vmem [shape: f32[1,256], index: 22, kind: input, shape index: {}]   ;;  %s7231_s23 = inlined_call_operand.hbm [shape: f32[256,256], index: 23, kind: output, shape index: {0}]   ;;  %s7232_s24 = inlined_call_operand.hbm [shape: f32[1,256], index: 24, kind: output, shape index: {1}]  }
   0x1   :  { %7280 = sst [smem:[#allocation58_spill]] %s7208_s0 }
   0x2   :  { %7281 = sst [smem:[#allocation59_spill]] %s7209_s1 }
   0x3   :  { %7282 = sst [smem:[#allocation60_spill]] %s7210_s2 }
   0x4   :  { %7283 = sst [smem:[#allocation61_spill]] %s7211_s3 }
   0x5   :  { %7284 = sst [smem:[#allocation62_spill]] %s7212_s4 }
   0x6   :  { %7285 = sst [smem:[#allocation63_spill]] %s7213_s5 }
   0x7   :  { %7286 = sst [smem:[#allocation64_spill]] %s7214_s6 }
   0x8   :  { %7287 = sst [smem:[#allocation65_spill]] %s7215_s7 }
   0x9   :  { %7288 = sst [smem:[#allocation66_spill]] %s7216_s8 }
   0xa   :  { %7289 = sst [smem:[#allocation67_spill]] %s7217_s9 }
   0xb   :  { %7290 = sst [smem:[#allocation68_spill]] %s7218_s10 }
   0xc   :  { %7291 = sst [smem:[#allocation69_spill]] %s7219_s11 }
   0xd   :  { %7292 = sst [smem:[#allocation70_spill]] %s7220_s12 }
   0xe   :  { %7293 = sst [smem:[#allocation71_spill]] %s7224_s16 }
   0xf   :  { %7294 = sst [smem:[#allocation72_spill]] %s7226_s18 }
  0x10   :  { %7295 = sst [smem:[#allocation73_spill]] %s7228_s20 }
  0x11   :  { %7296 = sst [smem:[#allocation74_spill]] %s7231_s23 }
  0x12   :  { %7297 = sst [smem:[#allocation75_spill]] %s7232_s24 }
  0x13   :  { %30 = vsyncpa [#allocation6], 0 }
  0x14   :  { %32 = vsyncpa [#allocation6 + $0x1], 0 }
  0x15   :  { %33 = vsyncpa [#allocation8], 0 }
  0x16   :  { %35 = vsyncpa [#allocation8 + $0x1], 0  ;;  %s5597_s5 = smov 0   ;;  %s5599_s26 = smov 0  }
  0x17   :  { %s5601_s27 = smov 0   ;;  %s5603_s28 = smov 0  }
  0x18   :  { %s5605_s6 = smov 0   ;;  %s5607_s2 = smov 0  }
  0x19   :  { %s5609_s29 = smov 0   ;;  %s5611_s0 = smov 0  }
  0x1a   :  { %s5613_s7 = smov 0   ;;  %s5615_s30 = smov 0  }
  0x1b   :  { %s5617_s3 = smov 0  }
  0x1c LB: > { %7298 = sst [smem:[#allocation11_spill]] %s5423_s5  ;;  %s4141_s25 = sadd.s32 4294967295, %s5463_s3   ;;  %s5463_s3 = sphi %s5617_s3, %s41_s3   ;;  %s5459_s30 = sphi %s5615_s30, %s7427_s30   ;;  %s5455_s7 = sphi %s5613_s7, %s7430_s7   ;;  %s5451_s0 = sphi %s5611_s0, %s7425_s0   ;;  %s5447_s29 = sphi %s5609_s29, %s7424_s29   ;;  %s5443_s2 = sphi %s5607_s2, %s7423_s2   ;;  %s5439_s6 = sphi %s5605_s6, %s7422_s6   ;;  %s5435_s28 = sphi %s5603_s28, %s7421_s28   ;;  %s5431_s27 = sphi %s5601_s27, %s7420_s27   ;;  %s5427_s26 = sphi %s5599_s26, %s7429_s26   ;;  %s5423_s5 = sphi %s5597_s5, %s7428_s5  }
  0x1d   : > { %7299 = sst [smem:[#allocation12_spill]] %s5431_s27  ;;  %s4142_s8 = sadd.s32 4294967294, %s5463_s3  }
  0x1e   : > { %7300 = sst [smem:[#allocation13_spill]] %s5435_s28  ;;  %s50_s4 = sadd.s32 1, %s5455_s7 }
  0x1f   : > { %7301 = sst [smem:[#allocation14_spill]] %s5439_s6  ;;  %s53_s1 = sadd.s32 1, %s5459_s30 }
  0x20   : > { %7302 = sst [smem:[#allocation15_spill]] %s5443_s2  ;;  %p51_p0 = scmp.ge.s32.totalorder %s50_s4, 2 }
  0x21   : > { %7303 = sst [smem:[#allocation16_spill]] %s5451_s0  ;;  %s593_s24 = sadd.s32 1, %s5443_s2 }
  0x22   : > { %7304 = sst [smem:[#allocation17_spill]] %s5455_s7  ;;  %s7432_s4 = smov (%p51_p0, %s50_s4), 0 }
  0x23   : > { %7305 = sst [smem:[#allocation18_spill]] %s5459_s30  ;;  %s7434_s1 = smov (!%p51_p0, %s53_s1), %s5459_s30 }
  0x24   : > { %7306 = sst [smem:[#allocation19_spill]] %s5463_s3  ;;  %p55_p1 = scmp.ge.s32.totalorder %s7434_s1, 2 }
  0x25   : > { %7307 = sst [smem:[#allocation20_spill]] %s7432_s4  ;;  %p603_p2 = scmp.ne.s32.totalorder %s5443_s2, %s5439_s6 }
  0x26   : > { %s7436_s1 = smov (%p55_p1, %s7434_s1), 0  ;;  %p604_p3 = scmp.eq.s32.totalorder %s4141_s25, 3 }
  0x27   : > { %7308 = sst [smem:[#allocation21_spill]] %s7436_s1  ;;  %s588_s7 = ssub.s32 %s5459_s30, %s7436_s1 }
  0x28   : > { %p609_p4 = scmp.ne.s32.totalorder %s5439_s6, %s5435_s28  ;;  %p5668_p5 = por %p604_p3, %p603_p2 }
  0x29   : > { %p591_p6 = scmp.eq.s32.totalorder %s588_s7, 0  ;;  %p610_p7 = scmp.eq.s32.totalorder %s4142_s8, 3 }
  0x2a   : > { %s7309_s23 = scalar_select %p5668_p5, 1, 0 }
  0x2b   : > { %s619_s4 = sadd.s32 1, %s5431_s27  ;;  %p5676_p8 = por %p610_p7, %p609_p4 }
  0x2c   : > { %7310 = sst [smem:[#allocation22_spill]] %s7309_s23  ;;  %p629_p9 = scmp.ne.s32.totalorder %s5431_s27, %s5427_s26 }
  0x2d   : > { %s5674_s20 = scalar_select %p591_p6, %s5443_s2, %s593_s24  }
  0x2e   : > { %s7312_s16 = scalar_select %p5676_p8, 1, 0 }
  0x2f   : > { %7311 = sst [smem:[#allocation23_spill]] %s5674_s20  ;;  %p5685_p10 = por %p629_p9, %p604_p3 }
  0x30   : > { %7313 = sst [smem:[#allocation24_spill]] %s7312_s16  ;;  %p635_p11 = scmp.ne.s32.totalorder %s5427_s26, %s5423_s5 }
  0x31   : > { %s5683_s18 = scalar_select %p591_p6, %s5431_s27, %s619_s4  }
  0x32   : > { %s7315_s1 = scalar_select %p5685_p10, 1, 0 }
  0x33   : > { %7314 = sst [smem:[#allocation25_spill]] %s5683_s18  ;;  %p4151_p12 = scmp.ge.s32.totalorder %s5463_s3, 1 }
  0x34   : > { %7316 = sst [smem:[#allocation26_spill]] %s7315_s1  ;;  %p772_p13 = scmp.lt.s32.totalorder %s5463_s3, 5 }
  0x35   : > { %p5693_p0 = por %p635_p11, %p610_p7 }
  0x36   : > { %p773_p1 = pnand %p4151_p12, %p772_p13 }
  0x37   : > { %s7317_s7 = scalar_select %p5693_p0, 1, 0 }
  0x38   : > { %776 = sbr.rel (%p773_p1) target bundleno = 2240 (0x8c0), region = 112 }
  0x39   : > { %7318 = sst [smem:[#allocation27_spill]] %s7317_s7 }
  0x3f   : > { %s7244_s24 = sand.u32 1, %s5439_s6   ;;  %p871_p2 = scmp.lt.s32.totalorder %s5447_s29, 0 }
  0x40   : > { %s4152_s8 = sshll.u32 %s7244_s24, 8  ;;  %s5703_s4 = sshll.u32 %s5451_s0, 4 }
  0x41   : > { %7319 = sst [smem:[#allocation28_spill]] %s5703_s4  ;;  %p875_p3 = scmp.lt.s32.totalorder %s5703_s4, 31 }
  0x42   : > { %s872_s30 = scalar_select %p871_p2, %s5447_s29, 0 }
  0x43   : > { %s4159_s20 = sadd.s32 4294967295, %s5447_s29  ;;  %s7320_s3 = sld [smem:[#allocation58_spill]] }
  0x44   : > { %s4154_s2 = sshll.u32 %s872_s30, 1  ;;  %s4157_s18 = sshll.u32 %s872_s30, 5 }
  0x45   : > { %s876_s27 = scalar_select %p875_p3, %s5703_s4, 31 }
  0x46   : > { %p877_p4 = scmp.lt.s32.totalorder %s4154_s2, 1  ;;  %p890_p6 = scmp.lt.s32.totalorder %s4157_s18, 31 }
  0x47   : > { %s4155_s7 = sshll.u32 %s876_s27, 1  ;;  %p898_p7 = scmp.gt.s32.totalorder %s4159_s20, 0 }
  0x48   : > { %s7438_s2 = smov (!%p877_p4, %s4154_s2), 1  ;;  %s7440_s18 = smov (!%p890_p6, %s4157_s18), 31 }
  0x49   : > { %s880_s25 = sadd.s32 %s4155_s7, %s7438_s2  ;;  %s4158_s5 = sshll.u32 %s7440_s18, 3 }
  0x4a   : > { %s4156_s24 = sshll.u32 %s880_s25, 3  ;;  %s7321_s0 = sld [smem:[#allocation59_spill]] }
  0x4b   : > { %s5712_s1 = scalar_lea.vmem %s7320_s3, %s4156_s24  ;;  %s7442_s20 = smov (!%p898_p7, %s4159_s20), 0 }
  0x4c   : > { %s5719_s4 = sshll.u32 %s7442_s20, 1  ;;  %s7322_s20 = sand.u32 1, %s5427_s26  }
  0x4d   : > { %p901_p9 = scmp.lt.s32.totalorder %s5719_s4, 1  ;;  %s5739_s6 = scalar_lea.vmem [#allocation7], %s7322_s20 }
  0x4e   : > { %p4164_p11 = scmp.ne.s32.totalorder %s5447_s29, 0 }
  0x4f   : > { %s5723_s27 = scalar_select %p901_p9, %s5719_s4, 1 }
  0x50   : > { %s5717_s30 = scalar_lea.vmem %s7321_s0, %s4158_s5  ;;  %s5735_s5 = scalar_lea.vmem [#allocation5], %s4152_s8  ;;  %vm929_vm0 = vcmask (!%p4164_p11), 523264   ;;  %vm946_vm1 = vcmask (!%p4164_p11), 7168   ;;  %v5465_v0 = vmov (!%p4164_p11), 0.0  }
  0x51   : > { %s4161_s18 = sshll.u32 %s5723_s27, 3  ;;  %928 = sbr.rel (%p4164_p11) target bundleno = 97 (0x61), region = 116  ;;  %930 = vst.msk [vmem:[#allocation2] sm:$0xff] (!%p4164_p11), %vm929_vm0, %v5465_v0  ;;  %931 = vst.msk [vmem:[#allocation2 + $0x8] sm:$0xff] (!%p4164_p11), %vm929_vm0, %v5465_v0 }
  0x52   : > { %s5733_s23 = scalar_lea.vmem %s7229_s21, %s4161_s18  ;;  %932 = vst.msk [vmem:[#allocation2 + $0x10] sm:$0xff] (!%p4164_p11), %vm929_vm0, %v5465_v0  ;;  %933 = vst.msk [vmem:[#allocation2 + $0x18] sm:$0xff] (!%p4164_p11), %vm929_vm0, %v5465_v0 }
  0x53   : > { %934 = vst.msk [vmem:[#allocation2 + $0x20] sm:$0xff] (!%p4164_p11), %vm929_vm0, %v5465_v0  ;;  %935 = vst.msk [vmem:[#allocation2 + $0x28] sm:$0xff] (!%p4164_p11), %vm929_vm0, %v5465_v0 }
  0x54   : > { %936 = vst.msk [vmem:[#allocation2 + $0x30] sm:$0xff] (!%p4164_p11), %vm929_vm0, %v5465_v0  ;;  %937 = vst.msk [vmem:[#allocation2 + $0x38] sm:$0xff] (!%p4164_p11), %vm929_vm0, %v5465_v0 }
  0x55   : > { %938 = vst.msk [vmem:[#allocation2 + $0x40] sm:$0xff] (!%p4164_p11), %vm929_vm0, %v5465_v0  ;;  %939 = vst.msk [vmem:[#allocation2 + $0x48] sm:$0xff] (!%p4164_p11), %vm929_vm0, %v5465_v0 }
  0x56   : > { %940 = vst.msk [vmem:[#allocation2 + $0x50] sm:$0xff] (!%p4164_p11), %vm929_vm0, %v5465_v0  ;;  %941 = vst.msk [vmem:[#allocation2 + $0x58] sm:$0xff] (!%p4164_p11), %vm929_vm0, %v5465_v0 }
  0x57   : > { %942 = vst.msk [vmem:[#allocation2 + $0x60] sm:$0xff] (!%p4164_p11), %vm929_vm0, %v5465_v0  ;;  %943 = vst.msk [vmem:[#allocation2 + $0x68] sm:$0xff] (!%p4164_p11), %vm929_vm0, %v5465_v0 }
  0x58   : > { %944 = vst.msk [vmem:[#allocation2 + $0x70] sm:$0xff] %vm929_vm0, %v5465_v0  ;;  %945 = vst.msk [vmem:[#allocation2 + $0x78] sm:$0xff] %vm929_vm0, %v5465_v0 }
  0x59   : > { %947 = vst.msk [vmem:[#allocation3] sm:$0xff] %vm946_vm1, %v5465_v0  ;;  %948 = vst.msk [vmem:[#allocation3 + $0x8] sm:$0xff] %vm946_vm1, %v5465_v0 }
  0x5a   : > { %949 = vst.msk [vmem:[#allocation3 + $0x10] sm:$0xff] %vm946_vm1, %v5465_v0  ;;  %950 = vst.msk [vmem:[#allocation3 + $0x18] sm:$0xff] %vm946_vm1, %v5465_v0 }
  0x5b   : > { %951 = vst.msk [vmem:[#allocation3 + $0x20] sm:$0xff] %vm946_vm1, %v5465_v0  ;;  %952 = vst.msk [vmem:[#allocation3 + $0x28] sm:$0xff] %vm946_vm1, %v5465_v0 }
  0x5c   : > { %953 = vst.msk [vmem:[#allocation3 + $0x30] sm:$0xff] %vm946_vm1, %v5465_v0  ;;  %954 = vst.msk [vmem:[#allocation3 + $0x38] sm:$0xff] %vm946_vm1, %v5465_v0 }
  0x5d   : > { %955 = vst.msk [vmem:[#allocation3 + $0x40] sm:$0xff] %vm946_vm1, %v5465_v0  ;;  %956 = vst.msk [vmem:[#allocation3 + $0x48] sm:$0xff] %vm946_vm1, %v5465_v0 }
  0x5e   : > { %957 = vst.msk [vmem:[#allocation3 + $0x50] sm:$0xff] %vm946_vm1, %v5465_v0  ;;  %958 = vst.msk [vmem:[#allocation3 + $0x58] sm:$0xff] %vm946_vm1, %v5465_v0 }
  0x5f   : > { %959 = vst.msk [vmem:[#allocation3 + $0x60] sm:$0xff] %vm946_vm1, %v5465_v0  ;;  %960 = vst.msk [vmem:[#allocation3 + $0x68] sm:$0xff] %vm946_vm1, %v5465_v0 }
  0x60   : > { %961 = vst.msk [vmem:[#allocation3 + $0x70] sm:$0xff] %vm946_vm1, %v5465_v0  ;;  %962 = vst.msk [vmem:[#allocation3 + $0x78] sm:$0xff] %vm946_vm1, %v5465_v0 }
  0x61 PF: > { %p4165_p12 = scmp.ge.s32.totalorder %s5447_s29, 1 }
  0x62   : > { %v1160_v1 = vld [vmem:[%s5717_s30 + $0x80] sm:$0xff] (!%p4165_p12)  ;;  %v1161_v2 = vld [vmem:[%s5717_s30 + $0x88] sm:$0xff] (!%p4165_p12)  ;;  %v1162_v6 = vld [vmem:[%s5717_s30 + $0x90] sm:$0xff] (!%p4165_p12)  ;;  %vm1111_vm2 = vcmask (!%p4165_p12), 7168   ;;  %vm1337_vm3 = vcmask (!%p4165_p12), 523264  }
  0x63   : > { %966 = sbr.rel (%p4165_p12) target bundleno = 379 (0x17b), region = 120  ;;  %v1144_v3 = vld [vmem:[%s5717_s30] sm:$0xff] (!%p4165_p12)  ;;  %v4938_v4 = vpack.c.bf16 (!%p4165_p12), %v1161_v2, %v1160_v1  ;;  %v1145_v5 = vld [vmem:[%s5717_s30 + $0x8] sm:$0xff] (!%p4165_p12)  ;;  %v1163_v7 = vld [vmem:[%s5717_s30 + $0x98] sm:$0xff] (!%p4165_p12) }
  0x64   : > { %v4940_v8 = vpack.c.bf16 (!%p4165_p12), %v1145_v5, %v1144_v3  ;;  %v4942_v9 = vpack.c.bf16 (!%p4165_p12), %v1163_v7, %v1162_v6  ;;  %v1146_v10 = vld [vmem:[%s5717_s30 + $0x10] sm:$0xff] (!%p4165_p12)  ;;  %v1147_v11 = vld [vmem:[%s5717_s30 + $0x18] sm:$0xff] (!%p4165_p12)  ;;  %v1164_v12 = vld [vmem:[%s5717_s30 + $0xa0] sm:$0xff] (!%p4165_p12) }
  0x65   : > { %4939 = vmatprep.subr.bf16.mxu0 (!%p4165_p12), %v4938_v4  ;;  %5078 = vmatprep.subr.bf16.mxu1 (!%p4165_p12), %v4938_v4  ;;  %v1165_v13 = vld [vmem:[%s5717_s30 + $0xa8] sm:$0xff] (!%p4165_p12)  ;;  %v4944_v14 = vpack.c.bf16 (!%p4165_p12), %v1147_v11, %v1146_v10  ;;  %v1148_v16 = vld [vmem:[%s5717_s30 + $0x20] sm:$0xff] (!%p4165_p12)  ;;  %v1166_v18 = vld [vmem:[%s5717_s30 + $0xb0] sm:$0xff] (!%p4165_p12) }
  0x66   : > { %4941 = vmatpush3.bf16.msra.mxu0 (!%p4165_p12), %v4940_v8  ;;  %5086 = vmatpush3.bf16.msra.mxu1 (!%p4165_p12), %v4940_v8  ;;  %v4946_v15 = vpack.c.bf16 (!%p4165_p12), %v1165_v13, %v1164_v12  ;;  %v1149_v17 = vld [vmem:[%s5717_s30 + $0x28] sm:$0xff] (!%p4165_p12)  ;;  %v1167_v19 = vld [vmem:[%s5717_s30 + $0xb8] sm:$0xff] (!%p4165_p12)  ;;  %v1150_v22 = vld [vmem:[%s5717_s30 + $0x30] sm:$0xff] (!%p4165_p12) }
  0x67   : > { %4943 = vmatprep.subr.bf16.mxu0 (!%p4165_p12), %v4942_v9  ;;  %5079 = vmatprep.subr.bf16.mxu1 (!%p4165_p12), %v4942_v9  ;;  %v4948_v20 = vpack.c.bf16 (!%p4165_p12), %v1149_v17, %v1148_v16  ;;  %v4950_v21 = vpack.c.bf16 (!%p4165_p12), %v1167_v19, %v1166_v18  ;;  %v1151_v23 = vld [vmem:[%s5717_s30 + $0x38] sm:$0xff] (!%p4165_p12)  ;;  %v1168_v24 = vld [vmem:[%s5717_s30 + $0xc0] sm:$0xff] (!%p4165_p12)  ;;  %v1169_v25 = vld [vmem:[%s5717_s30 + $0xc8] sm:$0xff] (!%p4165_p12) }
  0x68   : > { %v968_v26 = vld [vmem:[%s5712_s1 + $0x8] sm:$0xff] (!%p4165_p12)  ;;  %v5800_v29 = vld [vmem:[%s5712_s1] sm:$0xff] (!%p4165_p12)  ;;  %v4952_v30 = vpack.c.bf16 (!%p4165_p12), %v1151_v23, %v1150_v22  ;;  %v5803_v31 = vld [vmem:[%s5712_s1 + $0x18] sm:$0xff] (!%p4165_p12)  ;;  %v4954_v34 = vpack.c.bf16 (!%p4165_p12), %v1169_v25, %v1168_v24 }
  0x69   : > { %v1016_v27 = vmul.f32 (!%p4165_p12), %v968_v26, %v968_v26  ;;  %1240 = vmatprep.mubr.f32.mxu0 (!%p4165_p12), %v968_v26  ;;  %v5797_v28 = vld [vmem:[%s5712_s1 + $0x88] sm:$0xff] (!%p4165_p12)  ;;  %v5806_v32 = vld [vmem:[%s5712_s1 + $0x10] sm:$0xff] (!%p4165_p12)  ;;  %v1015_v33 = vmul.f32 (!%p4165_p12), %v5800_v29, %v5800_v29  ;;  %v1152_v35 = vld [vmem:[%s5717_s30 + $0x40] sm:$0xff] (!%p4165_p12)  ;;  %v1018_v37 = vmul.f32 (!%p4165_p12), %v5803_v31, %v5803_v31 }
  0x6a   : > { %4945 = vmatpush3.bf16.msra.mxu0 %v4944_v14  ;;  %5087 = vmatpush3.bf16.msra.mxu1 %v4944_v14  ;;  %v1153_v36 = vld [vmem:[%s5717_s30 + $0x48] sm:$0xff]  ;;  %v1017_v38 = vmul.f32 %v5806_v32, %v5806_v32  ;;  %v1170_v40 = vld [vmem:[%s5717_s30 + $0xd0] sm:$0xff]  ;;  %v1171_v41 = vld [vmem:[%s5717_s30 + $0xd8] sm:$0xff] }
  0x6b   : > { %4947 = vmatprep.subr.bf16.mxu0 %v4946_v15  ;;  %5080 = vmatprep.subr.bf16.mxu1 %v4946_v15  ;;  %v5817_v39 = vld [vmem:[%s5712_s1 + $0x28] sm:$0xff]  ;;  %v5823_v42 = vld [vmem:[%s5712_s1 + $0x20] sm:$0xff]  ;;  %v1047_v44 = vadd.f32 %v1016_v27, %v1015_v33  ;;  %v1154_v45 = vld [vmem:[%s5717_s30 + $0x50] sm:$0xff]  ;;  %v4956_v48 = vpack.c.bf16 %v1153_v36, %v1152_v35  ;;  %v4958_v52 = vpack.c.bf16 %v1171_v41, %v1170_v40 }
  0x6c   : > { %1280 = vmatprep.mubr.f32.mxu1 %v5797_v28  ;;  %v1020_v43 = vmul.f32 %v5817_v39, %v5817_v39  ;;  %v1155_v46 = vld [vmem:[%s5717_s30 + $0x58] sm:$0xff]  ;;  %v1019_v47 = vmul.f32 %v5823_v42, %v5823_v42  ;;  %v1172_v49 = vld [vmem:[%s5717_s30 + $0xe0] sm:$0xff]  ;;  %v1173_v50 = vld [vmem:[%s5717_s30 + $0xe8] sm:$0xff]  ;;  %v1050_v57 = vadd.f32 %v1018_v37, %v1017_v38 }
  0x6d   : > { %v5834_v51 = vld [vmem:[%s5712_s1 + $0x38] sm:$0xff]  ;;  %v5839_v54 = vld [vmem:[%s5712_s1 + $0x30] sm:$0xff]  ;;  %v5842_v55 = vld [vmem:[%s5712_s1 + $0x48] sm:$0xff]  ;;  %1048 = vadd.xlane.f32.xlu0 %v1047_v44  ;;  %v4960_v0 = vpack.c.bf16 %v1155_v46, %v1154_v45  ;;  %v4962_v1 = vpack.c.bf16 %v1173_v50, %v1172_v49 }
  0x6e   : > { %4949 = vmatpush3.bf16.msra.mxu0 %v4948_v20  ;;  %5088 = vmatpush3.bf16.msra.mxu1 %v4948_v20  ;;  %v1022_v53 = vmul.f32 %v5834_v51, %v5834_v51  ;;  %v5845_v56 = vld [vmem:[%s5712_s1 + $0x40] sm:$0xff]  ;;  %v1021_v58 = vmul.f32 %v5839_v54, %v5839_v54  ;;  %v1024_v59 = vmul.f32 %v5842_v55, %v5842_v55  ;;  %v1157_v63 = vld [vmem:[%s5717_s30 + $0x68] sm:$0xff]  ;;  %v5856_v2 = vld [vmem:[%s5712_s1 + $0x58] sm:$0xff] }
  0x6f   : > { %4951 = vmatprep.subr.bf16.mxu0 %v4950_v21  ;;  %5081 = vmatprep.subr.bf16.mxu1 %v4950_v21  ;;  %v1023_v60 = vmul.f32 %v5845_v56, %v5845_v56  ;;  %v1053_v61 = vadd.f32 %v1020_v43, %v1019_v47  ;;  %v1156_v62 = vld [vmem:[%s5717_s30 + $0x60] sm:$0xff]  ;;  %v5859_v3 = vld [vmem:[%s5712_s1 + $0x50] sm:$0xff]  ;;  %v5862_v4 = vld [vmem:[%s5712_s1 + $0x68] sm:$0xff]  ;;  %v1026_v7 = vmul.f32 %v5856_v2, %v5856_v2 }
  0x70   : > { %v1174_v5 = vld [vmem:[%s5717_s30 + $0xf0] sm:$0xff]  ;;  %v1175_v6 = vld [vmem:[%s5717_s30 + $0xf8] sm:$0xff]  ;;  %v1025_v8 = vmul.f32 %v5859_v3, %v5859_v3  ;;  %v1028_v9 = vmul.f32 %v5862_v4, %v5862_v4  ;;  %v5873_v10 = vld [vmem:[%s5712_s1 + $0x60] sm:$0xff]  ;;  %v1056_v12 = vadd.f32 %v1022_v53, %v1021_v58  ;;  %v4964_v14 = vpack.c.bf16 %v1157_v63, %v1156_v62 }
  0x71   : > { %v1027_v11 = vmul.f32 %v5873_v10, %v5873_v10  ;;  %1054 = vadd.xlane.f32.xlu1 %v1053_v61  ;;  %1051 = vadd.xlane.f32.xlu0 %v1050_v57  ;;  %v1059_v13 = vadd.f32 %v1024_v59, %v1023_v60  ;;  %v4966_v15 = vpack.c.bf16 %v1175_v6, %v1174_v5  ;;  %v983_v16 = vld [vmem:[%s5712_s1 + $0x80] sm:$0xff]  ;;  %v5879_v17 = vld [vmem:[%s5712_s1 + $0x78] sm:$0xff]  ;;  %v1158_v18 = vld [vmem:[%s5717_s30 + $0x70] sm:$0xff] }
  0x72   : > { %4953 = vmatpush3.bf16.msra.mxu0 %v4952_v30  ;;  %5089 = vmatpush3.bf16.msra.mxu1 %v4952_v30  ;;  %v1159_v19 = vld [vmem:[%s5717_s30 + $0x78] sm:$0xff]  ;;  %v1032_v20 = vmul.f32 %v5797_v28, %v5797_v28  ;;  %v1031_v21 = vmul.f32 %v983_v16, %v983_v16  ;;  %v1030_v22 = vmul.f32 %v5879_v17, %v5879_v17  ;;  %v5888_v23 = vld [vmem:[%s5712_s1 + $0x70] sm:$0xff]  ;;  %v988_v33 = vld [vmem:[%s5712_s1 + $0xa8] sm:$0xff] }
  0x73   : > { %4955 = vmatprep.subr.bf16.mxu0 %v4954_v34  ;;  %5082 = vmatprep.subr.bf16.mxu1 %v4954_v34  ;;  %v1029_v24 = vmul.f32 %v5888_v23, %v5888_v23  ;;  %v1062_v25 = vadd.f32 %v1026_v7, %v1025_v8  ;;  %v1065_v26 = vadd.f32 %v1028_v9, %v1027_v11  ;;  %v986_v30 = vld [vmem:[%s5712_s1 + $0x98] sm:$0xff]  ;;  %v985_v28 = vld [vmem:[%s5712_s1 + $0x90] sm:$0xff]  ;;  %v987_v37 = vld [vmem:[%s5712_s1 + $0xa0] sm:$0xff] }
  0x74   : > { %v4968_v27 = vpack.c.bf16 %v1159_v19, %v1158_v18  ;;  %v1034_v34 = vmul.f32 %v986_v30, %v986_v30  ;;  %v1033_v35 = vmul.f32 %v985_v28, %v985_v28  ;;  %v1036_v36 = vmul.f32 %v988_v33, %v988_v33  ;;  %v990_v43 = vld [vmem:[%s5712_s1 + $0xb8] sm:$0xff]  ;;  %v989_v44 = vld [vmem:[%s5712_s1 + $0xb0] sm:$0xff]  ;;  %v992_v45 = vld [vmem:[%s5712_s1 + $0xc8] sm:$0xff] }
  0x75   : > { %1057 = vadd.xlane.f32.xlu1 %v1056_v12  ;;  %1060 = vadd.xlane.f32.xlu0 %v1059_v13  ;;  %v1035_v38 = vmul.f32 %v987_v37, %v987_v37  ;;  %v1068_v40 = vadd.f32 %v1030_v22, %v1029_v24  ;;  %v1071_v41 = vadd.f32 %v1032_v20, %v1031_v21  ;;  %v991_v49 = vld [vmem:[%s5712_s1 + $0xc0] sm:$0xff]  ;;  %v994_v57 = vld [vmem:[%s5712_s1 + $0xd8] sm:$0xff]  ;;  %v993_v58 = vld [vmem:[%s5712_s1 + $0xd0] sm:$0xff] }
  0x76   : > { %4957 = vmatpush3.bf16.msra.mxu0 %v4956_v48  ;;  %5090 = vmatpush3.bf16.msra.mxu1 %v4956_v48  ;;  %v1038_v46 = vmul.f32 %v990_v43, %v990_v43  ;;  %v1037_v47 = vmul.f32 %v989_v44, %v989_v44  ;;  %v1040_v48 = vmul.f32 %v992_v45, %v992_v45  ;;  %v996_v59 = vld [vmem:[%s5712_s1 + $0xe8] sm:$0xff]  ;;  %v995_v63 = vld [vmem:[%s5712_s1 + $0xe0] sm:$0xff]  ;;  %v997_v6 = vld [vmem:[%s5712_s1 + $0xf0] sm:$0xff] }
  0x77   : > { %4959 = vmatprep.subr.bf16.mxu0 %v4958_v52  ;;  %5083 = vmatprep.subr.bf16.mxu1 %v4958_v52  ;;  %v1039_v50 = vmul.f32 %v991_v49, %v991_v49  ;;  %v1074_v52 = vadd.f32 %v1034_v34, %v1033_v35  ;;  %v1077_v53 = vadd.f32 %v1036_v36, %v1035_v38  ;;  %v1003_v11 = vld [vmem:[#allocation3 + $0x20] sm:$0xff]  ;;  %v1006_v22 = vld [vmem:[#allocation3 + $0x38] sm:$0xff] }
  0x78   : > { %v1042_v60 = vmul.f32 %v994_v57, %v994_v57  ;;  %v1041_v61 = vmul.f32 %v993_v58, %v993_v58  ;;  %v1044_v62 = vmul.f32 %v996_v59, %v996_v59  ;;  %v1045_v7 = vmul.f32 %v997_v6, %v997_v6  ;;  %v1011_v38 = vld [vmem:[#allocation3 + $0x60] sm:$0xff] }
  0x79   : > { %1063 = vadd.xlane.f32.xlu1 %v1062_v25  ;;  %1066 = vadd.xlane.f32.xlu0 %v1065_v26  ;;  %v1083_v5 = vadd.f32 %v1040_v48, %v1039_v50 }
  0x7a   : > { %4961 = vmatpush3.bf16.msra.mxu0 %v4960_v0  ;;  %5091 = vmatpush3.bf16.msra.mxu1 %v4960_v0  ;;  %v1043_v0 = vmul.f32 %v995_v63, %v995_v63  ;;  %v1086_v8 = vadd.f32 %v1042_v60, %v1041_v61  ;;  %v1128_v60 = vld [vmem:[#allocation2] sm:$0xff] }
  0x7b   : > { %4963 = vmatprep.subr.bf16.mxu0 %v4962_v1  ;;  %5084 = vmatprep.subr.bf16.mxu1 %v4962_v1  ;;  %v1080_v1 = vadd.f32 %v1038_v46, %v1037_v47  ;;  %v1013_v46 = vld [vmem:[#allocation3 + $0x70] sm:$0xff] }
  0x7c   : > { %v1089_v9 = vadd.f32 %v1044_v62, %v1043_v0  ;;  %v1136_v62 = vld [vmem:[#allocation2 + $0x40] sm:$0xff] }
  0x7d   : > { %1069 = vadd.xlane.f32.xlu1 %v1068_v40  ;;  %1072 = vadd.xlane.f32.xlu0 %v1071_v41 }
  0x7e   : > { %4965 = vmatpush3.bf16.msra.mxu0 %v4964_v14  ;;  %5092 = vmatpush3.bf16.msra.mxu1 %v4964_v14 }
  0x7f   : > { %4967 = vmatprep.subr.bf16.mxu0 %v4966_v15  ;;  %5085 = vmatprep.subr.bf16.mxu1 %v4966_v15 }
  0x81   : > { %1075 = vadd.xlane.f32.xlu1 %v1074_v52  ;;  %1078 = vadd.xlane.f32.xlu0 %v1077_v53  ;;  %v1014_v52 = vld [vmem:[#allocation3 + $0x78] sm:$0xff] }
  0x82   : > { %4969 = vmatpush3.bf16.msra.mxu0 %v4968_v27  ;;  %5093 = vmatpush3.bf16.msra.mxu1 %v4968_v27 }
  0x85   : > { %1241 = vmatmul.mubr.f32.vlgmr.msra.gmra.mrb[0].mxu0 %v5800_v29  ;;  %1281 = vmatmul.mubr.f32.vlgmr.msra.gmra.mrb[0].mxu1 %v983_v16  ;;  %v998_v29 = vld [vmem:[%s5712_s1 + $0xf8] sm:$0xff]  ;;  %v1004_v16 = vld [vmem:[#allocation3 + $0x28] sm:$0xff] }
  0x86   : > { %1245 = vmatprep.mubr.f32.mxu0 %v5803_v31  ;;  %1285 = vmatprep.mubr.f32.mxu1 %v986_v30  ;;  %v1046_v31 = vmul.f32 %v998_v29, %v998_v29  ;;  %v1008_v30 = vld [vmem:[#allocation3 + $0x48] sm:$0xff] }
  0x87   : > { %1081 = vadd.xlane.f32.xlu1 %v1080_v1  ;;  %1084 = vadd.xlane.f32.xlu0 %v1083_v5 }
  0x89   : > { %1246 = vmatmul.mubr.f32.gmra.mrb[2].mxu0 %v5806_v32  ;;  %1286 = vmatmul.mubr.f32.gmra.mrb[2].mxu1 %v985_v28  ;;  %v1092_v32 = vadd.f32 %v1046_v31, %v1045_v7  ;;  %v1009_v28 = vld [vmem:[#allocation3 + $0x50] sm:$0xff]  ;;  %v1129_v7 = vld [vmem:[#allocation2 + $0x8] sm:$0xff] }
  0x8a   : > { %1250 = vmatprep.mubr.f32.mxu0 %v5817_v39  ;;  %1290 = vmatprep.mubr.f32.mxu1 %v988_v33  ;;  %v999_v39 = vld [vmem:[#allocation3] sm:$0xff] }
  0x8b   : > { %1087 = vadd.xlane.f32.xlu1 %v1086_v8  ;;  %1090 = vadd.xlane.f32.xlu0 %v1089_v9  ;;  %v1137_v9 = vld [vmem:[#allocation2 + $0x48] sm:$0xff] }
  0x8d   : > { %1251 = vmatmul.mubr.f32.gmra.mrb[4].mxu0 %v5823_v42  ;;  %1291 = vmatmul.mubr.f32.gmra.mrb[4].mxu1 %v987_v37  ;;  %v1010_v37 = vld [vmem:[#allocation3 + $0x58] sm:$0xff] }
  0x8e   : > { %1255 = vmatprep.mubr.f32.mxu0 %v5834_v51  ;;  %1295 = vmatprep.mubr.f32.mxu1 %v990_v43 }
  0x8f   : > { %1093 = vadd.xlane.f32.xlu1 %v1092_v32 }
  0x91   : > { %1256 = vmatmul.mubr.f32.gmra.mrb[6].mxu0 %v5839_v54  ;;  %1296 = vmatmul.mubr.f32.gmra.mrb[6].mxu1 %v989_v44  ;;  %v1001_v54 = vld [vmem:[#allocation3 + $0x10] sm:$0xff] }
  0x92   : > { %1260 = vmatprep.mubr.f32.mxu0 %v5842_v55  ;;  %1300 = vmatprep.mubr.f32.mxu1 %v992_v45  ;;  %v1000_v55 = vld [vmem:[#allocation3 + $0x8] sm:$0xff] }
  0x93   : > { %v1012_v45 = vld [vmem:[#allocation3 + $0x68] sm:$0xff] }
  0x95   : > { %1261 = vmatmul.mubr.f32.gmra.mrb[8].mxu0 %v5845_v56  ;;  %1301 = vmatmul.mubr.f32.gmra.mrb[8].mxu1 %v991_v49 }
  0x96   : > { %1265 = vmatprep.mubr.f32.mxu0 %v5856_v2  ;;  %1305 = vmatprep.mubr.f32.mxu1 %v994_v57 }
  0x99   : > { %1266 = vmatmul.mubr.f32.gmra.mrb[10].mxu0 %v5859_v3  ;;  %1306 = vmatmul.mubr.f32.gmra.mrb[10].mxu1 %v993_v58 }
  0x9a   : > { %1270 = vmatprep.mubr.f32.mxu0 %v5862_v4  ;;  %1310 = vmatprep.mubr.f32.mxu1 %v996_v59 }
  0x9d   : > { %1271 = vmatmul.mubr.f32.gmra.mrb[12].mxu0 %v5873_v10  ;;  %1311 = vmatmul.mubr.f32.gmra.mrb[12].mxu1 %v995_v63  ;;  %v1002_v10 = vld [vmem:[#allocation3 + $0x18] sm:$0xff] }
  0x9e   : > { %1275 = vmatprep.mubr.f32.mxu0 %v5879_v17  ;;  %1315 = vmatprep.mubr.f32.mxu1 %v998_v29  ;;  %v1005_v17 = vld [vmem:[#allocation3 + $0x30] sm:$0xff] }
  0xa1   : > { %1276 = vmatmul.mubr.f32.gmra.mrb[14].mxu0 %v5888_v23  ;;  %1316 = vmatmul.mubr.f32.gmra.mrb[14].mxu1 %v997_v6  ;;  %v1007_v23 = vld [vmem:[#allocation3 + $0x40] sm:$0xff] }
  0xfa   : > { %v1049_v42 = vpop.xlane.xlu0 %1048 }
  0xfb   : > { %v1095_v51 = vadd.f32 %v1049_v42, %v999_v39 }
  0xfd   : > { %1112 = vst.msk [vmem:[#allocation3] sm:$0xff] %vm1111_vm2, %v1095_v51 }
  0xfe   : > { %v1055_v56 = vpop.xlane.xlu1 %1054  ;;  %v1052_v2 = vpop.xlane.xlu0 %1051 }
  0xff   : > { %v1097_v3 = vadd.f32 %v1055_v56, %v1001_v54  ;;  %v1096_v4 = vadd.f32 %v1052_v2, %v1000_v55  ;;  %v1130_v2 = vld [vmem:[#allocation2 + $0x10] sm:$0xff] }
 0x101   : > { %1114 = vst.msk [vmem:[#allocation3 + $0x10] sm:$0xff] %vm1111_vm2, %v1097_v3  ;;  %1113 = vst.msk [vmem:[#allocation3 + $0x8] sm:$0xff] %vm1111_vm2, %v1096_v4  ;;  %v1138_v4 = vld [vmem:[#allocation2 + $0x50] sm:$0xff] }
 0x102   : > { %v1058_v12 = vpop.xlane.xlu1 %1057  ;;  %v1061_v13 = vpop.xlane.xlu0 %1060 }
 0x103   : > { %v1098_v14 = vadd.f32 %v1058_v12, %v1002_v10  ;;  %v1099_v15 = vadd.f32 %v1061_v13, %v1003_v11 }
 0x105   : > { %1115 = vst.msk [vmem:[#allocation3 + $0x18] sm:$0xff] %vm1111_vm2, %v1098_v14  ;;  %1116 = vst.msk [vmem:[#allocation3 + $0x20] sm:$0xff] %vm1111_vm2, %v1099_v15 }
 0x106   : > { %v1064_v18 = vpop.xlane.xlu1 %1063  ;;  %v1067_v19 = vpop.xlane.xlu0 %1066 }
 0x107   : > { %v1100_v20 = vadd.f32 %v1064_v18, %v1004_v16  ;;  %v1101_v21 = vadd.f32 %v1067_v19, %v1005_v17  ;;  %v1131_v17 = vld [vmem:[#allocation2 + $0x18] sm:$0xff] }
 0x108   : > { %v1139_v19 = vld [vmem:[#allocation2 + $0x58] sm:$0xff] }
 0x109   : > { %1117 = vst.msk [vmem:[#allocation3 + $0x28] sm:$0xff] %vm1111_vm2, %v1100_v20  ;;  %1118 = vst.msk [vmem:[#allocation3 + $0x30] sm:$0xff] %vm1111_vm2, %v1101_v21 }
 0x10a   : > { %v1070_v24 = vpop.xlane.xlu1 %1069  ;;  %v1073_v25 = vpop.xlane.xlu0 %1072 }
 0x10b   : > { %v1102_v26 = vadd.f32 %v1070_v24, %v1006_v22  ;;  %v1103_v27 = vadd.f32 %v1073_v25, %v1007_v23 }
 0x10d   : > { %1119 = vst.msk [vmem:[#allocation3 + $0x38] sm:$0xff] %vm1111_vm2, %v1102_v26  ;;  %1120 = vst.msk [vmem:[#allocation3 + $0x40] sm:$0xff] %vm1111_vm2, %v1103_v27  ;;  %v1132_v27 = vld [vmem:[#allocation2 + $0x20] sm:$0xff] }
 0x10e   : > { %v1076_v33 = vpop.xlane.xlu1 %1075  ;;  %v1079_v34 = vpop.xlane.xlu0 %1078 }
 0x10f   : > { %v1104_v35 = vadd.f32 %v1076_v33, %v1008_v30  ;;  %v1105_v36 = vadd.f32 %v1079_v34, %v1009_v28  ;;  %v1140_v28 = vld [vmem:[#allocation2 + $0x60] sm:$0xff] }
 0x111   : > { %1121 = vst.msk [vmem:[#allocation3 + $0x48] sm:$0xff] %vm1111_vm2, %v1104_v35  ;;  %1122 = vst.msk [vmem:[#allocation3 + $0x50] sm:$0xff] %vm1111_vm2, %v1105_v36 }
 0x114   : > { %v1082_v40 = vpop.xlane.xlu1 %1081  ;;  %v1085_v41 = vpop.xlane.xlu0 %1084 }
 0x115   : > { %v1106_v43 = vadd.f32 %v1082_v40, %v1010_v37  ;;  %v1107_v44 = vadd.f32 %v1085_v41, %v1011_v38  ;;  %v1133_v41 = vld [vmem:[#allocation2 + $0x28] sm:$0xff] }
 0x117   : > { %1123 = vst.msk [vmem:[#allocation3 + $0x58] sm:$0xff] %vm1111_vm2, %v1106_v43  ;;  %1124 = vst.msk [vmem:[#allocation3 + $0x60] sm:$0xff] %vm1111_vm2, %v1107_v44  ;;  %v1141_v44 = vld [vmem:[#allocation2 + $0x68] sm:$0xff] }
 0x118   : > { %v1088_v47 = vpop.xlane.xlu1 %1087  ;;  %v1091_v48 = vpop.xlane.xlu0 %1090 }
 0x119   : > { %v1108_v49 = vadd.f32 %v1088_v47, %v1012_v45  ;;  %v1109_v50 = vadd.f32 %v1091_v48, %v1013_v46 }
 0x11b   : > { %1125 = vst.msk [vmem:[#allocation3 + $0x68] sm:$0xff] %vm1111_vm2, %v1108_v49  ;;  %1126 = vst.msk [vmem:[#allocation3 + $0x70] sm:$0xff] %vm1111_vm2, %v1109_v50 }
 0x11c   : > { %v1094_v53 = vpop.xlane.xlu1 %1093 }
 0x11d   : > { %v1110_v57 = vadd.f32 %v1094_v53, %v1014_v52  ;;  %v1134_v53 = vld [vmem:[#allocation2 + $0x30] sm:$0xff] }
 0x11f   : > { %1127 = vst.msk [vmem:[#allocation3 + $0x78] sm:$0xff] %vm1111_vm2, %v1110_v57 }
 0x158   : > { %v4380_v58 = vpop.f32.mrb[0].mxu0  ;;  %v4404_v59 = vpop.f32.mrb[0].mxu1 }
 0x159   : > { %v4381_v61 = vpop.f32.mrb[1].mxu0  ;;  %v4405_v63 = vpop.f32.mrb[1].mxu1 }
 0x15a   : > { %v4382_v0 = vadd.f32 %v4381_v61, %v4380_v58  ;;  %v4406_v1 = vadd.f32 %v4405_v63, %v4404_v59  ;;  %v1142_v58 = vld [vmem:[#allocation2 + $0x70] sm:$0xff] }
 0x15c   : > { %v1321_v5 = vadd.f32 %v4382_v0, %v1128_v60  ;;  %v1329_v29 = vadd.f32 %v4406_v1, %v1136_v62  ;;  %v4383_v31 = vpop.f32.mrb[2].mxu0  ;;  %v4407_v6 = vpop.f32.mrb[2].mxu1 }
 0x15d   : > { %v4384_v8 = vpop.f32.mrb[3].mxu0  ;;  %v4408_v32 = vpop.f32.mrb[3].mxu1 }
 0x15e   : > { %1338 = vst.msk [vmem:[#allocation2] sm:$0xff] %vm1337_vm3, %v1321_v5  ;;  %1346 = vst.msk [vmem:[#allocation2 + $0x40] sm:$0xff] %vm1337_vm3, %v1329_v29  ;;  %v4385_v39 = vadd.f32 %v4384_v8, %v4383_v31  ;;  %v4409_v42 = vadd.f32 %v4408_v32, %v4407_v6  ;;  %v1135_v5 = vld [vmem:[#allocation2 + $0x38] sm:$0xff] }
 0x15f   : > { %v1143_v31 = vld [vmem:[#allocation2 + $0x78] sm:$0xff] }
 0x160   : > { %v1322_v51 = vadd.f32 %v4385_v39, %v1129_v7  ;;  %v1330_v54 = vadd.f32 %v4409_v42, %v1137_v9  ;;  %v4386_v55 = vpop.f32.mrb[4].mxu0  ;;  %v4410_v56 = vpop.f32.mrb[4].mxu1 }
 0x161   : > { %v4387_v3 = vpop.f32.mrb[5].mxu0  ;;  %v4411_v10 = vpop.f32.mrb[5].mxu1 }
 0x162   : > { %1339 = vst.msk [vmem:[#allocation2 + $0x8] sm:$0xff] %vm1337_vm3, %v1322_v51  ;;  %1347 = vst.msk [vmem:[#allocation2 + $0x48] sm:$0xff] %vm1337_vm3, %v1330_v54  ;;  %v4388_v11 = vadd.f32 %v4387_v3, %v4386_v55  ;;  %v4412_v12 = vadd.f32 %v4411_v10, %v4410_v56 }
 0x164   : > { %v1323_v13 = vadd.f32 %v4388_v11, %v1130_v2  ;;  %v1331_v14 = vadd.f32 %v4412_v12, %v1138_v4  ;;  %v4389_v15 = vpop.f32.mrb[6].mxu0  ;;  %v4413_v16 = vpop.f32.mrb[6].mxu1 }
 0x165   : > { %v4390_v18 = vpop.f32.mrb[7].mxu0  ;;  %v4414_v20 = vpop.f32.mrb[7].mxu1 }
 0x166   : > { %1340 = vst.msk [vmem:[#allocation2 + $0x10] sm:$0xff] %vm1337_vm3, %v1323_v13  ;;  %1348 = vst.msk [vmem:[#allocation2 + $0x50] sm:$0xff] %vm1337_vm3, %v1331_v14  ;;  %v4391_v21 = vadd.f32 %v4390_v18, %v4389_v15  ;;  %v4415_v22 = vadd.f32 %v4414_v20, %v4413_v16 }
 0x168   : > { %v1324_v23 = vadd.f32 %v4391_v21, %v1131_v17  ;;  %v1332_v24 = vadd.f32 %v4415_v22, %v1139_v19  ;;  %v4392_v25 = vpop.f32.mrb[8].mxu0  ;;  %v4416_v26 = vpop.f32.mrb[8].mxu1 }
 0x169   : > { %v4393_v30 = vpop.f32.mrb[9].mxu0  ;;  %v4417_v33 = vpop.f32.mrb[9].mxu1 }
 0x16a   : > { %1341 = vst.msk [vmem:[#allocation2 + $0x18] sm:$0xff] %vm1337_vm3, %v1324_v23  ;;  %1349 = vst.msk [vmem:[#allocation2 + $0x58] sm:$0xff] %vm1337_vm3, %v1332_v24  ;;  %v4394_v34 = vadd.f32 %v4393_v30, %v4392_v25  ;;  %v4418_v35 = vadd.f32 %v4417_v33, %v4416_v26 }
 0x16c   : > { %v1325_v36 = vadd.f32 %v4394_v34, %v1132_v27  ;;  %v1333_v37 = vadd.f32 %v4418_v35, %v1140_v28  ;;  %v4395_v38 = vpop.f32.mrb[10].mxu0  ;;  %v4419_v40 = vpop.f32.mrb[10].mxu1 }
 0x16d   : > { %v4396_v43 = vpop.f32.mrb[11].mxu0  ;;  %v4420_v45 = vpop.f32.mrb[11].mxu1 }
 0x16e   : > { %1342 = vst.msk [vmem:[#allocation2 + $0x20] sm:$0xff] %vm1337_vm3, %v1325_v36  ;;  %1350 = vst.msk [vmem:[#allocation2 + $0x60] sm:$0xff] %vm1337_vm3, %v1333_v37  ;;  %v4397_v46 = vadd.f32 %v4396_v43, %v4395_v38  ;;  %v4421_v47 = vadd.f32 %v4420_v45, %v4419_v40 }
 0x170   : > { %v1326_v48 = vadd.f32 %v4397_v46, %v1133_v41  ;;  %v1334_v49 = vadd.f32 %v4421_v47, %v1141_v44  ;;  %v4398_v50 = vpop.f32.mrb[12].mxu0  ;;  %v4422_v52 = vpop.f32.mrb[12].mxu1 }
 0x171   : > { %v4399_v57 = vpop.f32.mrb[13].mxu0  ;;  %v4423_v59 = vpop.f32.mrb[13].mxu1 }
 0x172   : > { %1343 = vst.msk [vmem:[#allocation2 + $0x28] sm:$0xff] %vm1337_vm3, %v1326_v48  ;;  %1351 = vst.msk [vmem:[#allocation2 + $0x68] sm:$0xff] %vm1337_vm3, %v1334_v49  ;;  %v4400_v60 = vadd.f32 %v4399_v57, %v4398_v50  ;;  %v4424_v61 = vadd.f32 %v4423_v59, %v4422_v52 }
 0x174   : > { %v1327_v62 = vadd.f32 %v4400_v60, %v1134_v53  ;;  %v1335_v63 = vadd.f32 %v4424_v61, %v1142_v58  ;;  %v4401_v0 = vpop.f32.mrb[14].mxu0  ;;  %v4425_v1 = vpop.f32.mrb[14].mxu1 }
 0x175   : > { %v4402_v29 = vpop.f32.mrb[15].mxu0  ;;  %v4426_v6 = vpop.f32.mrb[15].mxu1 }
 0x176   : > { %1344 = vst.msk [vmem:[#allocation2 + $0x30] sm:$0xff] %vm1337_vm3, %v1327_v62  ;;  %1352 = vst.msk [vmem:[#allocation2 + $0x70] sm:$0xff] %vm1337_vm3, %v1335_v63  ;;  %v4403_v7 = vadd.f32 %v4402_v29, %v4401_v0  ;;  %v4427_v8 = vadd.f32 %v4426_v6, %v4425_v1 }
 0x178   : > { %v1328_v9 = vadd.f32 %v4403_v7, %v1135_v5  ;;  %v1336_v32 = vadd.f32 %v4427_v8, %v1143_v31 }
 0x17a   : > { %1345 = vst.msk [vmem:[#allocation2 + $0x38] sm:$0xff] %vm1337_vm3, %v1328_v9  ;;  %1353 = vst.msk [vmem:[#allocation2 + $0x78] sm:$0xff] %vm1337_vm3, %v1336_v32 }
 0x17b PF: > { %1356 = sbr.rel (%p4164_p11) target bundleno = 1917 (0x77d), region = 124 }
 0x182   : > { %v1359_v39 = vld [vmem:[#allocation3 + $0x10] sm:$0xff]  ;;  %v1357_v42 = vld [vmem:[#allocation3] sm:$0xff]  ;;  %v1360_v51 = vld [vmem:[#allocation3 + $0x18] sm:$0xff]  ;;  %v5466_v54 = vmov 0   ;;  %s7323_s24 = sld [smem:[#allocation61_spill]]  ;;  %s7324_s16 = sld [smem:[#allocation63_spill]] }
 0x183   : > { %5216 = vset.pattern.permute.xlu1 %v5466_v54  ;;  %5215 = vset.pattern.permute.xlu0 %v5466_v54  ;;  %v1375_v55 = vmax.f32 %v1359_v39, 1e-24  ;;  %v1373_v56 = vmax.f32 %v1357_v42, 1e-24  ;;  %v1376_v2 = vmax.f32 %v1360_v51, 1e-24 }
 0x184   : > { %v1358_v3 = vld [vmem:[#allocation3 + $0x8] sm:$0xff]  ;;  %v1361_v11 = vld [vmem:[#allocation3 + $0x20] sm:$0xff]  ;;  %v1364_v14 = vld [vmem:[#allocation3 + $0x38] sm:$0xff]  ;;  %s7325_s1 = sld [smem:[#allocation65_spill]]  ;;  %s7326_s2 = sld [smem:[#allocation60_spill]]  ;;  %vm1571_vm4 = vcmask 523264  }
 0x185   : > { %v1362_v4 = vld [vmem:[#allocation3 + $0x28] sm:$0xff]  ;;  %5217 = vrsqrt.f32 %v1375_v55  ;;  %v1374_v10 = vmax.f32 %v1358_v3, 1e-24  ;;  %v1377_v13 = vmax.f32 %v1361_v11, 1e-24  ;;  %v1363_v15 = vld [vmem:[#allocation3 + $0x30] sm:$0xff] }
 0x186   : > { %5219 = vrsqrt.f32 %v1373_v56  ;;  %v1378_v12 = vmax.f32 %v1362_v4, 1e-24  ;;  %v1380_v16 = vmax.f32 %v1364_v14, 1e-24  ;;  %v1379_v17 = vmax.f32 %v1363_v15, 1e-24 }
 0x187   : > { %5221 = vrsqrt.f32 %v1376_v2  ;;  %v1366_v18 = vld [vmem:[#allocation3 + $0x48] sm:$0xff]  ;;  %v1365_v21 = vld [vmem:[#allocation3 + $0x40] sm:$0xff]  ;;  %v1368_v33 = vld [vmem:[#allocation3 + $0x58] sm:$0xff]  ;;  %s7327_s11 = sld [smem:[#allocation69_spill]]  ;;  %s7328_s9 = sld [smem:[#allocation67_spill]]  ;;  %vm1934_vm5 = vcmask 130048  }
 0x188   : > { %5223 = vrsqrt.f32 %v1374_v10  ;;  %v1556_v19 = vld [vmem:[%s7323_s24] sm:$0xff]  ;;  %v1557_v20 = vld [vmem:[%s7323_s24 + $0x8] sm:$0xff]  ;;  %v1558_v23 = vld [vmem:[%s7323_s24 + $0x10] sm:$0xff]  ;;  %v1382_v27 = vmax.f32 %v1366_v18, 1e-24  ;;  %s7329_s18 = sld [smem:[#allocation62_spill]] }
 0x189   : > { %5225 = vrsqrt.f32 %v1378_v12  ;;  %v4970_v22 = vpack.c.bf16 %v1557_v20, %v1556_v19  ;;  %v1559_v24 = vld [vmem:[%s7323_s24 + $0x18] sm:$0xff]  ;;  %v1381_v28 = vmax.f32 %v1365_v21, 1e-24  ;;  %v1560_v34 = vld [vmem:[%s7323_s24 + $0x20] sm:$0xff]  ;;  %v1561_v35 = vld [vmem:[%s7323_s24 + $0x28] sm:$0xff]  ;;  %s7334_s3 = sld [smem:[#allocation66_spill]] }
 0x18a   : > { %5227 = vrsqrt.f32 %v1377_v13  ;;  %v4974_v25 = vpack.c.bf16 %v1559_v24, %v1558_v23  ;;  %v1367_v37 = vld [vmem:[#allocation3 + $0x50] sm:$0xff]  ;;  %v4978_v38 = vpack.c.bf16 %v1561_v35, %v1560_v34  ;;  %v1384_v41 = vmax.f32 %v1368_v33, 1e-24  ;;  %v1370_v44 = vld [vmem:[#allocation3 + $0x68] sm:$0xff]  ;;  %v1369_v47 = vld [vmem:[#allocation3 + $0x60] sm:$0xff]  ;;  %s7335_s12 = sld [smem:[#allocation70_spill]] }
 0x18b   : > { %5229 = vrsqrt.f32 %v1380_v16  ;;  %4971 = vmatprep.subr.bf16.mxu0 %v4970_v22  ;;  %5094 = vmatprep.subr.bf16.mxu1 %v4970_v22  ;;  %v1383_v43 = vmax.f32 %v1367_v37, 1e-24  ;;  %v1562_v45 = vld [vmem:[%s7323_s24 + $0x30] sm:$0xff]  ;;  %v1563_v48 = vld [vmem:[%s7323_s24 + $0x38] sm:$0xff]  ;;  %v1386_v52 = vmax.f32 %v1370_v44, 1e-24 }
 0x18c   : > { %5231 = vrsqrt.f32 %v1379_v17  ;;  %4973 = vmatpush3.bf16.msra.mxu0 %v4970_v22  ;;  %5098 = vmatpush3.bf16.msra.mxu1 %v4970_v22  ;;  %v4982_v50 = vpack.c.bf16 %v1563_v48, %v1562_v45  ;;  %v1385_v53 = vmax.f32 %v1369_v47, 1e-24  ;;  %v1372_v57 = vld [vmem:[#allocation3 + $0x78] sm:$0xff]  ;;  %v1371_v59 = vld [vmem:[#allocation3 + $0x70] sm:$0xff]  ;;  %v1765_v31 = vld [vmem:[%s7324_s16] sm:$0xff]  ;;  %vm2158_vm6 = vcmask 457728  }
 0x18d   : > { %4975 = vmatprep.subr.bf16.mxu0 %v4974_v25  ;;  %5233 = vrsqrt.f32 %v1382_v27  ;;  %5095 = vmatprep.subr.bf16.mxu1 %v4974_v25  ;;  %v1388_v61 = vmax.f32 %v1372_v57, 1e-24  ;;  %v1387_v62 = vmax.f32 %v1371_v59, 1e-24  ;;  %v1766_v6 = vld [vmem:[%s7324_s16 + $0x8] sm:$0xff]  ;;  %v1925_v39 = vld [vmem:[%s7325_s1] sm:$0xff] }
 0x18e   : > { %5235 = vrsqrt.f32 %v1381_v28  ;;  %v5985_v8 = vpack.c.bf16 %v1766_v6, %v1765_v31  ;;  %v1926_v42 = vld [vmem:[%s7325_s1 + $0x8] sm:$0xff]  ;;  %v1407_v54 = vld [vmem:[#allocation2 + $0x10] sm:$0xff]  ;;  %v1405_v55 = vld [vmem:[#allocation2] sm:$0xff]  ;;  %s7344_s10 = sld [smem:[#allocation68_spill]]  ;;  %s7354_s7 = sld [smem:[#allocation72_spill]] }
 0x18f   : > { %v5218_v26 = vpop.eup %5217  ;;  %5237 = vrsqrt.f32 %v1384_v41  ;;  %v5002_v51 = vpack.c.bf16 %v1926_v42, %v1925_v39  ;;  %v5997_v2 = vld [vmem:[%s7326_s2] ss:$0 sm:$0xff]  ;;  %v1408_v11 = vld [vmem:[#allocation2 + $0x18] sm:$0xff]  ;;  %v1406_v12 = vld [vmem:[#allocation2 + $0x8] sm:$0xff]  ;;  %s7355_s25 = sld [smem:[#allocation64_spill]] }
 0x190   : > { %v5220_v30 = vpop.eup %5219  ;;  %1433 = vperm.xlu1 %5216, %v5218_v26   ;;  %4977 = vmatpush3.bf16.msra.mxu0 %v4974_v25  ;;  %5239 = vrsqrt.f32 %v1383_v43  ;;  %v1410_v20 = vld [vmem:[#allocation2 + $0x28] sm:$0xff]  ;;  %v1409_v21 = vld [vmem:[#allocation2 + $0x20] sm:$0xff]  ;;  %v1412_v33 = vld [vmem:[#allocation2 + $0x38] sm:$0xff] }
 0x191   : > { %v5222_v36 = vpop.eup %5221  ;;  %1423 = vperm.xlu0 %5215, %v5220_v30   ;;  %4979 = vmatprep.subr.bf16.mxu0 %v4978_v38  ;;  %5241 = vrsqrt.f32 %v1386_v52  ;;  %v1411_v34 = vld [vmem:[#allocation2 + $0x30] sm:$0xff]  ;;  %v1414_v45 = vld [vmem:[#allocation2 + $0x48] sm:$0xff]  ;;  %v1416_v59 = vld [vmem:[#allocation2 + $0x58] sm:$0xff] }
 0x192   : > { %v5224_v40 = vpop.eup %5223  ;;  %5099 = vmatpush3.bf16.msra.mxu1 %v4974_v25  ;;  %5243 = vrsqrt.f32 %v1385_v53  ;;  %v1417_v42 = vld [vmem:[#allocation2 + $0x60] sm:$0xff] }
 0x193   : > { %v5226_v46 = vpop.eup %5225  ;;  %5096 = vmatprep.subr.bf16.mxu1 %v4978_v38  ;;  %5245 = vrsqrt.f32 %v1388_v61  ;;  %v1415_v61 = vld [vmem:[#allocation2 + $0x50] sm:$0xff] }
 0x194   : > { %1438 = vperm.xlu1 %5216, %v5222_v36   ;;  %v5228_v49 = vpop.eup %5227  ;;  %4981 = vmatpush3.bf16.msra.mxu0 %v4978_v38  ;;  %5247 = vrsqrt.f32 %v1387_v62 }
 0x195   : > { %1428 = vperm.xlu0 %5215, %v5224_v40   ;;  %v5230_v58 = vpop.eup %5229  ;;  %4983 = vmatprep.subr.bf16.mxu0 %v4982_v50 }
 0x196   : > { %v5232_v60 = vpop.eup %5231  ;;  %5100 = vmatpush3.bf16.msra.mxu1 %v4978_v38 }
 0x197   : > { %5097 = vmatprep.subr.bf16.mxu1 %v4982_v50  ;;  %v5234_v63 = vpop.eup %5233 }
 0x198   : > { %1448 = vperm.xlu1 %5216, %v5226_v46   ;;  %4985 = vmatpush3.bf16.msra.mxu0 %v4982_v50  ;;  %v5236_v0 = vpop.eup %5235  ;;  %v1413_v46 = vld [vmem:[#allocation2 + $0x40] sm:$0xff] }
 0x199   : > { %1443 = vperm.xlu0 %5215, %v5228_v49   ;;  %v5238_v1 = vpop.eup %5237  ;;  %5003 = vmatprep.subr.bf16.mxu0 %v5002_v51 }
 0x19a   : > { %5101 = vmatpush3.bf16.msra.mxu1 %v4982_v50  ;;  %v5240_v5 = vpop.eup %5239 }
 0x19b   : > { %v5242_v29 = vpop.eup %5241  ;;  %4987 = vmatprep.subr.bf16.mxu1 %v5985_v8 }
 0x19c   : > { %1458 = vperm.xlu1 %5216, %v5230_v58   ;;  %v5244_v7 = vpop.eup %5243 }
 0x19d   : > { %1453 = vperm.xlu0 %5215, %v5232_v60   ;;  %v5246_v9 = vpop.eup %5245 }
 0x19e   : > { %v5248_v32 = vpop.eup %5247 }
 0x1a0   : > { %1468 = vperm.xlu1 %5216, %v5234_v63  }
 0x1a1   : > { %1463 = vperm.xlu0 %5215, %v5236_v0   ;;  %v1767_v0 = vld [vmem:[%s7324_s16 + $0x10] sm:$0xff] }
 0x1a4   : > { %1478 = vperm.xlu1 %5216, %v5238_v1   ;;  %v1768_v1 = vld [vmem:[%s7324_s16 + $0x18] sm:$0xff] }
 0x1a5   : > { %1473 = vperm.xlu0 %5215, %v5240_v5  }
 0x1a8   : > { %1488 = vperm.xlu1 %5216, %v5242_v29  }
 0x1a9   : > { %1483 = vperm.xlu0 %5215, %v5244_v7  }
 0x1ac   : > { %1498 = vperm.xlu1 %5216, %v5246_v9  }
 0x1ad   : > { %1493 = vperm.xlu0 %5215, %v5248_v32   ;;  %v1418_v32 = vld [vmem:[#allocation2 + $0x68] sm:$0xff] }
 0x20f   : > { %v1434_v56 = vpop.permute.xlu1 %1433 }
 0x210   : > { %v1503_v3 = vmul.f32 %v1434_v56, %v1407_v54  ;;  %v1424_v4 = vpop.permute.xlu0 %1423  ;;  %v1769_v56 = vld [vmem:[%s7324_s16 + $0x20] sm:$0xff] }
 0x211   : > { %v1501_v10 = vmul.f32 %v1424_v4, %v1405_v55 }
 0x212   : > { %v6003_v15 = vadd.f32 %v5997_v2, %v1503_v3  ;;  %v1770_v3 = vld [vmem:[%s7324_s16 + $0x28] sm:$0xff] }
 0x213   : > { %v1439_v13 = vpop.permute.xlu1 %1438  ;;  %v6000_v14 = vadd.f32 %v5997_v2, %v1501_v10 }
 0x214   : > { %v1504_v16 = vmul.f32 %v1439_v13, %v1408_v11  ;;  %v1429_v17 = vpop.permute.xlu0 %1428  ;;  %v1542_v24 = vmax.f32 %v6003_v15, 0.0 }
 0x215   : > { %v1502_v18 = vmul.f32 %v1429_v17, %v1406_v12  ;;  %v1540_v19 = vmax.f32 %v6000_v14, 0.0  ;;  %v2353_v14 = vld [vmem:[%s7327_s11 + $0x8] sm:$0xff] }
 0x216   : > { %v6014_v25 = vadd.f32 %v5997_v2, %v1504_v16  ;;  %v1420_v16 = vld [vmem:[#allocation2 + $0x78] sm:$0xff] }
 0x217   : > { %v6007_v22 = vadd.f32 %v5997_v2, %v1502_v18  ;;  %4638 = vmatprep.mubr.msk.f32.mxu0 %vm1571_vm4, %v1540_v19  ;;  %v1449_v23 = vpop.permute.xlu1 %1448  ;;  %v1419_v18 = vld [vmem:[#allocation2 + $0x70] sm:$0xff] }
 0x218   : > { %v1444_v26 = vpop.permute.xlu0 %1443  ;;  %v1506_v30 = vmul.f32 %v1449_v23, %v1410_v20  ;;  %v1543_v37 = vmax.f32 %v6014_v25, 0.0  ;;  %v4994_v20 = vpack.c.bf16 %v1770_v3, %v1769_v56 }
 0x219   : > { %v1541_v27 = vmax.f32 %v6007_v22, 0.0  ;;  %v1505_v28 = vmul.f32 %v1444_v26, %v1409_v21  ;;  %v1771_v26 = vld [vmem:[%s7324_s16 + $0x30] sm:$0xff]  ;;  %v2145_v22 = vld [vmem:[%s7328_s9 + $0x8] sm:$0xff] }
 0x21a   : > { %v6028_v40 = vadd.f32 %v5997_v2, %v1506_v30  ;;  %v1772_v30 = vld [vmem:[%s7324_s16 + $0x38] sm:$0xff] }
 0x21b   : > { %v6018_v35 = vadd.f32 %v5997_v2, %v1505_v28  ;;  %4639 = vmatmul.mubr.msk.f32.vlgmr.msra.gmra.mrb[0].mxu0 %vm1571_vm4, %v1541_v27  ;;  %v1459_v36 = vpop.permute.xlu1 %1458 }
 0x21c   : > { %4641 = vmatprep.mubr.msk.f32.mxu0 %vm1571_vm4, %v1542_v24  ;;  %v1454_v38 = vpop.permute.xlu0 %1453  ;;  %5005 = vmatpush3.bf16.msra.mxu0 %v5002_v51  ;;  %v1508_v43 = vmul.f32 %v1459_v36, %v1412_v33  ;;  %v1545_v52 = vmax.f32 %v6028_v40, 0.0  ;;  %v4990_v51 = vpack.c.bf16 %v1768_v1, %v1767_v0 }
 0x21d   : > { %v1544_v41 = vmax.f32 %v6018_v35, 0.0  ;;  %v1507_v44 = vmul.f32 %v1454_v38, %v1411_v34 }
 0x21e   : > { %v6042_v53 = vadd.f32 %v5997_v2, %v1508_v43  ;;  %v4998_v43 = vpack.c.bf16 %v1772_v30, %v1771_v26 }
 0x21f   : > { %v6032_v47 = vadd.f32 %v5997_v2, %v1507_v44  ;;  %4642 = vmatmul.mubr.msk.f32.gmra.mrb[2].mxu0 %vm1571_vm4, %v1543_v37  ;;  %v1469_v48 = vpop.permute.xlu1 %1468 }
 0x220   : > { %v1510_v49 = vmul.f32 %v1469_v48, %v1414_v45  ;;  %4644 = vmatprep.mubr.msk.f32.mxu0 %vm1571_vm4, %v1544_v41  ;;  %v1464_v50 = vpop.permute.xlu0 %1463  ;;  %v1547_v6 = vmax.f32 %v6042_v53, 0.0 }
 0x221   : > { %v1546_v57 = vmax.f32 %v6032_v47, 0.0  ;;  %v1509_v58 = vmul.f32 %v1464_v50, %v1413_v46  ;;  %v2355_v47 = vld [vmem:[%s7327_s11 + $0x18] sm:$0xff] }
 0x222   : > { %v6046_v60 = vadd.f32 %v5997_v2, %v1510_v49 }
 0x223   : > { %4645 = vmatmul.mubr.msk.f32.gmra.mrb[4].mxu0 %vm1571_vm4, %v1545_v52  ;;  %v1479_v62 = vpop.permute.xlu1 %1478  ;;  %v6052_v63 = vadd.f32 %v5997_v2, %v1509_v58  ;;  %v2357_v58 = vld [vmem:[%s7327_s11 + $0x28] sm:$0xff] }
 0x224   : > { %v1549_v5 = vmax.f32 %v6046_v60, 0.0  ;;  %v1512_v29 = vmul.f32 %v1479_v62, %v1416_v59  ;;  %4647 = vmatprep.mubr.msk.f32.mxu0 %vm1571_vm4, %v1546_v57  ;;  %v1474_v31 = vpop.permute.xlu0 %1473 }
 0x225   : > { %v1511_v7 = vmul.f32 %v1474_v31, %v1415_v61  ;;  %v1548_v9 = vmax.f32 %v6052_v63, 0.0  ;;  %v2358_v31 = vld [vmem:[%s7327_s11 + $0x30] sm:$0xff] }
 0x226   : > { %v1535_v39 = vadd.f32 %v5997_v2, %v1512_v29 }
 0x227   : > { %v1534_v54 = vadd.f32 %v5997_v2, %v1511_v7  ;;  %4648 = vmatmul.mubr.msk.f32.gmra.mrb[6].mxu0 %vm1571_vm4, %v1547_v6  ;;  %4650 = vmatprep.mubr.msk.f32.mxu1 %vm1571_vm4, %v1548_v9  ;;  %v1489_v55 = vpop.permute.xlu1 %1488 }
 0x228   : > { %v1551_v4 = vmax.f32 %v1535_v39, 0.0  ;;  %v1514_v10 = vmul.f32 %v1489_v55, %v1418_v32  ;;  %4651 = vmatmul.mubr.msk.f32.vlgmr.msra.gmra.mrb[0].mxu1 %vm1571_vm4, %v1549_v5  ;;  %v1484_v11 = vpop.permute.xlu0 %1483 }
 0x229   : > { %v1550_v12 = vmax.f32 %v1534_v54, 0.0  ;;  %v1513_v13 = vmul.f32 %v1484_v11, %v1417_v42  ;;  %4989 = vmatpush3.bf16.msra.mxu1 %v5985_v8 }
 0x22a   : > { %v1537_v17 = vadd.f32 %v5997_v2, %v1514_v10  ;;  %4991 = vmatprep.subr.bf16.mxu1 %v4990_v51 }
 0x22b   : > { %v1536_v21 = vadd.f32 %v5997_v2, %v1513_v13  ;;  %4653 = vmatprep.mubr.msk.f32.mxu1 %vm1571_vm4, %v1550_v12  ;;  %v1499_v23 = vpop.permute.xlu1 %1498 }
 0x22c   : > { %v1553_v8 = vmax.f32 %v1537_v17, 0.0  ;;  %v1516_v28 = vmul.f32 %v1499_v23, %v1420_v16  ;;  %4654 = vmatmul.mubr.msk.f32.gmra.mrb[2].mxu1 %vm1571_vm4, %v1551_v4  ;;  %v1494_v33 = vpop.permute.xlu0 %1493 }
 0x22d   : > { %v1552_v34 = vmax.f32 %v1536_v21, 0.0  ;;  %v1515_v36 = vmul.f32 %v1494_v33, %v1419_v18  ;;  %4993 = vmatpush3.bf16.msra.mxu1 %v4990_v51 }
 0x22e   : > { %v1539_v38 = vadd.f32 %v5997_v2, %v1516_v28  ;;  %4995 = vmatprep.subr.bf16.mxu1 %v4994_v20 }
 0x22f   : > { %v1538_v44 = vadd.f32 %v5997_v2, %v1515_v36  ;;  %4656 = vmatprep.mubr.msk.f32.mxu1 %vm1571_vm4, %v1552_v34  ;;  %v2352_v2 = vld [vmem:[%s7327_s11] sm:$0xff] }
 0x230   : > { %v1555_v45 = vmax.f32 %v1539_v38, 0.0  ;;  %4657 = vmatmul.mubr.msk.f32.gmra.mrb[4].mxu1 %vm1571_vm4, %v1553_v8  ;;  %v5018_v15 = vpack.c.bf16 %v2353_v14, %v2352_v2  ;;  %v2148_v14 = vld [vmem:[%s7328_s9 + $0x20] sm:$0xff] }
 0x231   : > { %v1554_v46 = vmax.f32 %v1538_v44, 0.0  ;;  %4997 = vmatpush3.bf16.msra.mxu1 %v4994_v20 }
 0x232   : > { %4999 = vmatprep.subr.bf16.mxu1 %v4998_v43  ;;  %5019 = vmatprep.subr.bf16.mxu0 %v5018_v15 }
 0x233   : > { %4659 = vmatprep.mubr.msk.f32.mxu1 %vm1571_vm4, %v1554_v46 }
 0x234   : > { %4660 = vmatmul.mubr.msk.f32.gmra.mrb[6].mxu1 %vm1571_vm4, %v1555_v45 }
 0x235   : > { %5001 = vmatpush3.bf16.msra.mxu1 %v4998_v43  ;;  %4678 = vmatprep.mubr.msk.f32.mxu1 %vm1571_vm4, %v1540_v19  ;;  %v2144_v19 = vld [vmem:[%s7328_s9] sm:$0xff] }
 0x236   : > { %v5006_v25 = vpack.c.bf16 %v2145_v22, %v2144_v19  ;;  %v2150_v22 = vld [vmem:[%s7328_s9 + $0x30] sm:$0xff] }
 0x238   : > { %4679 = vmatmul.mubr.msk.f32.vlgmr.msra.gmra.mrb[8].mxu1 %vm1571_vm4, %v1541_v27  ;;  %v2147_v27 = vld [vmem:[%s7328_s9 + $0x18] sm:$0xff]  ;;  %5007 = vmatprep.subr.bf16.mxu1 %v5006_v25 }
 0x239   : > { %4681 = vmatprep.mubr.msk.f32.mxu1 %vm1571_vm4, %v1542_v24  ;;  %v2146_v24 = vld [vmem:[%s7328_s9 + $0x10] sm:$0xff]  ;;  %5009 = vmatpush3.bf16.msra.mxu1 %v5006_v25  ;;  %v2608_v25 = vld [vmem:[%s7221_s13 + $0x8] sm:$0xff] }
 0x23a   : > { %v5010_v35 = vpack.c.bf16 %v2147_v27, %v2146_v24  ;;  %v2607_v24 = vld [vmem:[%s7221_s13] sm:$0xff] }
 0x23b   : > { %v5030_v27 = vpack.c.bf16 %v2608_v25, %v2607_v24 }
 0x23c   : > { %4682 = vmatmul.mubr.msk.f32.gmra.mrb[10].mxu1 %vm1571_vm4, %v1543_v37  ;;  %5011 = vmatprep.subr.bf16.mxu1 %v5010_v35  ;;  %v6149_v37 = vld [vmem:[%s7329_s18] ss:$0 sm:$0xff]  ;;  %s7359_s18 = sld [smem:[#allocation71_spill]] }
 0x23d   : > { %4684 = vmatprep.mubr.msk.f32.mxu1 %vm1571_vm4, %v1544_v41  ;;  %5013 = vmatpush3.bf16.msra.mxu1 %v5010_v35  ;;  %v2354_v41 = vld [vmem:[%s7327_s11 + $0x10] sm:$0xff]  ;;  %v6296_v35 = vld [vmem:[%s7334_s3] ss:$0 sm:$0xff]  ;;  %s7402_s3 = sld [smem:[#allocation73_spill]] }
 0x240   : > { %4685 = vmatmul.mubr.msk.f32.gmra.mrb[12].mxu1 %vm1571_vm4, %v1545_v52  ;;  %v5022_v52 = vpack.c.bf16 %v2355_v47, %v2354_v41 }
 0x241   : > { %4687 = vmatprep.mubr.msk.f32.mxu1 %vm1571_vm4, %v1546_v57  ;;  %v2356_v57 = vld [vmem:[%s7327_s11 + $0x20] sm:$0xff] }
 0x242   : > { %v5026_v62 = vpack.c.bf16 %v2357_v58, %v2356_v57 }
 0x244   : > { %4688 = vmatmul.mubr.msk.f32.gmra.mrb[14].mxu1 %vm1571_vm4, %v1547_v6 }
 0x245   : > { %4690 = vmatprep.mubr.msk.f32.mxu1 %vm1571_vm4, %v1548_v9 }
 0x248   : > { %4691 = vmatmul.mubr.msk.f32.gmra.mrb[16].mxu1 %vm1571_vm4, %v1549_v5 }
 0x249   : > { %4693 = vmatprep.mubr.msk.f32.mxu1 %vm1571_vm4, %v1550_v12 }
 0x24c   : > { %4694 = vmatmul.mubr.msk.f32.gmra.mrb[18].mxu1 %vm1571_vm4, %v1551_v4 }
 0x24d   : > { %4696 = vmatprep.mubr.msk.f32.mxu1 %vm1571_vm4, %v1552_v34 }
 0x250   : > { %4697 = vmatmul.mubr.msk.f32.gmra.mrb[20].mxu1 %vm1571_vm4, %v1553_v8 }
 0x251   : > { %4699 = vmatprep.mubr.msk.f32.mxu1 %vm1571_vm4, %v1554_v46 }
 0x254   : > { %4700 = vmatmul.mubr.msk.f32.gmra.mrb[22].mxu1 %vm1571_vm4, %v1555_v45 }
 0x2ee   : > { %v4640_v40 = vpop.f32.mrb[0].mxu0 }
 0x2ef   : > { %v1686_v48 = vpop.f32.mrb[1].mxu0  ;;  %v6161_v50 = vadd.f32 %v4640_v40, %v6149_v37 }
 0x2f0   : > { %v6158_v49 = vadd.f32 %v6149_v37, %v1686_v48 }
 0x2f2   : > { %v4643_v53 = vpop.f32.mrb[2].mxu0  ;;  %4706 = vmatprep.mubr.msk.f32.mxu0 %vm1934_vm5, %v6158_v49 }
 0x2f3   : > { %v1696_v59 = vpop.f32.mrb[3].mxu0  ;;  %4707 = vmatmul.mubr.msk.f32.vlgmr.msra.gmra.mrb[8].mxu0 %vm1934_vm5, %v6161_v50  ;;  %v6177_v61 = vadd.f32 %v4643_v53, %v6149_v37 }
 0x2f4   : > { %v6174_v60 = vadd.f32 %v6149_v37, %v1696_v59  ;;  %5021 = vmatpush3.bf16.msra.mxu0 %v5018_v15  ;;  %v2149_v15 = vld [vmem:[%s7328_s9 + $0x28] sm:$0xff] }
 0x2f5   : > { %5023 = vmatprep.subr.bf16.mxu0 %v5022_v52  ;;  %v5014_v19 = vpack.c.bf16 %v2149_v15, %v2148_v14 }
 0x2f6   : > { %v4646_v63 = vpop.f32.mrb[4].mxu0  ;;  %4709 = vmatprep.mubr.msk.f32.mxu0 %vm1934_vm5, %v6174_v60 }
 0x2f7   : > { %v1706_v0 = vpop.f32.mrb[5].mxu0  ;;  %4710 = vmatmul.mubr.msk.f32.gmra.mrb[10].mxu0 %vm1934_vm5, %v6177_v61  ;;  %v6187_v5 = vadd.f32 %v4646_v63, %v6149_v37  ;;  %5015 = vmatprep.subr.bf16.mxu1 %v5014_v19 }
 0x2f8   : > { %v6184_v1 = vadd.f32 %v6149_v37, %v1706_v0  ;;  %5025 = vmatpush3.bf16.msra.mxu0 %v5022_v52  ;;  %5017 = vmatpush3.bf16.msra.mxu1 %v5014_v19 }
 0x2f9   : > { %5027 = vmatprep.subr.bf16.mxu0 %v5026_v62  ;;  %4742 = vmatprep.subr.mxu1 %v2150_v22 }
 0x2fa   : > { %v4649_v29 = vpop.f32.mrb[6].mxu0  ;;  %4712 = vmatprep.mubr.msk.f32.mxu0 %vm1934_vm5, %v6184_v1 }
 0x2fb   : > { %v1716_v6 = vpop.f32.mrb[7].mxu0  ;;  %v4652_v7 = vpop.f32.mrb[0].mxu1  ;;  %4713 = vmatmul.mubr.msk.f32.gmra.mrb[12].mxu0 %vm1934_vm5, %v6187_v5  ;;  %v6200_v39 = vadd.f32 %v4649_v29, %v6149_v37 }
 0x2fc   : > { %v6197_v9 = vadd.f32 %v6149_v37, %v1716_v6  ;;  %v1726_v32 = vpop.f32.mrb[1].mxu1  ;;  %5029 = vmatpush3.bf16.msra.mxu0 %v5026_v62  ;;  %v6212_v55 = vadd.f32 %v4652_v7, %v6149_v37  ;;  %4743 = vmatpush3.msra.mxu1 %v2150_v22 }
 0x2fd   : > { %v6203_v42 = vadd.f32 %v6149_v37, %v1726_v32  ;;  %4780 = vmatprep.subr.mxu0 %v2358_v31  ;;  %5031 = vmatprep.subr.bf16.mxu1 %v5030_v27 }
 0x2fe   : > { %4715 = vmatprep.mubr.msk.f32.mxu0 %vm1934_vm5, %v6197_v9 }
 0x2ff   : > { %v4655_v51 = vpop.f32.mrb[2].mxu1  ;;  %4716 = vmatmul.mubr.msk.f32.gmra.mrb[14].mxu0 %vm1934_vm5, %v6200_v39 }
 0x300   : > { %v1736_v54 = vpop.f32.mrb[3].mxu1  ;;  %4718 = vmatprep.mubr.msk.f32.mxu0 %vm1934_vm5, %v6203_v42  ;;  %4781 = vmatpush3.msra.mxu0 %v2358_v31  ;;  %v6222_v10 = vadd.f32 %v4655_v51, %v6149_v37 }
 0x301   : > { %v6215_v56 = vadd.f32 %v6149_v37, %v1736_v54 }
 0x303   : > { %v4658_v3 = vpop.f32.mrb[4].mxu1  ;;  %4719 = vmatmul.mubr.msk.f32.gmra.mrb[16].mxu0 %vm1934_vm5, %v6212_v55 }
 0x304   : > { %v1746_v4 = vpop.f32.mrb[5].mxu1  ;;  %4721 = vmatprep.mubr.msk.f32.mxu0 %vm1934_vm5, %v6215_v56  ;;  %v6232_v16 = vadd.f32 %v4658_v3, %v6149_v37 }
 0x305   : > { %v6225_v11 = vadd.f32 %v6149_v37, %v1746_v4 }
 0x307   : > { %v4661_v12 = vpop.f32.mrb[6].mxu1  ;;  %4722 = vmatmul.mubr.msk.f32.gmra.mrb[18].mxu0 %vm1934_vm5, %v6222_v10 }
 0x308   : > { %v1756_v13 = vpop.f32.mrb[7].mxu1  ;;  %4724 = vmatprep.mubr.msk.f32.mxu0 %vm1934_vm5, %v6225_v11  ;;  %v6246_v21 = vadd.f32 %v4661_v12, %v6149_v37 }
 0x309   : > { %v6235_v17 = vadd.f32 %v6149_v37, %v1756_v13 }
 0x30b   : > { %v6237_v18 = vpop.f32.mrb[8].mxu1  ;;  %4725 = vmatmul.mubr.msk.f32.gmra.mrb[20].mxu0 %vm1934_vm5, %v6232_v16 }
 0x30c   : > { %v6241_v20 = vpop.f32.mrb[9].mxu1  ;;  %4727 = vmatprep.mubr.msk.f32.mxu0 %vm1934_vm5, %v6235_v17 }
 0x30f   : > { %v6248_v23 = vpop.f32.mrb[10].mxu1  ;;  %4728 = vmatmul.mubr.msk.f32.gmra.mrb[22].mxu0 %vm1934_vm5, %v6246_v21 }
 0x310   : > { %v6252_v26 = vpop.f32.mrb[11].mxu1 }
 0x313   : > { %v6254_v30 = vpop.f32.mrb[12].mxu1 }
 0x314   : > { %v6256_v8 = vpop.f32.mrb[13].mxu1 }
 0x317   : > { %v6258_v28 = vpop.f32.mrb[14].mxu1 }
 0x318   : > { %v6260_v33 = vpop.f32.mrb[15].mxu1 }
 0x31b   : > { %v6262_v34 = vpop.f32.mrb[16].mxu1 }
 0x31c   : > { %v6264_v36 = vpop.f32.mrb[17].mxu1 }
 0x31f   : > { %v6266_v38 = vpop.f32.mrb[18].mxu1 }
 0x320   : > { %v6268_v43 = vpop.f32.mrb[19].mxu1 }
 0x323   : > { %v6270_v44 = vpop.f32.mrb[20].mxu1 }
 0x324   : > { %7330 = vst [vmem:[#allocation29_spill] sm:$0xff] %v6270_v44  ;;  %v6272_v45 = vpop.f32.mrb[21].mxu1 }
 0x325   : > { %7331 = vst [vmem:[#allocation30_spill] sm:$0xff] %v6272_v45 }
 0x327   : > { %v6274_v46 = vpop.f32.mrb[22].mxu1 }
 0x328   : > { %7332 = vst [vmem:[#allocation31_spill] sm:$0xff] %v6274_v46  ;;  %v6276_v2 = vpop.f32.mrb[23].mxu1 }
 0x329   : > { %7333 = vst [vmem:[#allocation32_spill] sm:$0xff] %v6276_v2 }
 0x3c6   : > { %v4708_v37 = vpop.f32.mrb[8].mxu0 }
 0x3c7   : > { %v2055_v40 = vadd.f32 %v4708_v37, %v6296_v35  ;;  %v2049_v41 = vpop.f32.mrb[9].mxu0 }
 0x3c8   : > { %v2050_v47 = vadd.f32 %v6296_v35, %v2049_v41 }
 0x3c9   : > { %v2129_v53 = vmax.f32 %v2055_v40, 0.0 }
 0x3ca   : > { %v2128_v48 = vmax.f32 %v2050_v47, 0.0  ;;  %v4711_v52 = vpop.f32.mrb[10].mxu0 }
 0x3cb   : > { %v2065_v57 = vadd.f32 %v4711_v52, %v6296_v35  ;;  %v2059_v58 = vpop.f32.mrb[11].mxu0 }
 0x3cc   : > { %v2060_v59 = vadd.f32 %v6296_v35, %v2059_v58  ;;  %4744 = vmatprep.mubr.msk.f32.mxu1 %vm2158_vm6, %v2128_v48  ;;  %4782 = vmatprep.mubr.msk.f32.mxu0 %vm2158_vm6, %v2128_v48 }
 0x3cd   : > { %4745 = vmatmul.mubr.msk.f32.vlgmr.msra.gmra.mrb[24].mxu1 %vm2158_vm6, %v2129_v53  ;;  %4783 = vmatmul.mubr.msk.f32.vlgmr.msra.gmra.mrb[24].mxu0 %vm2158_vm6, %v2129_v53  ;;  %v2131_v0 = vmax.f32 %v2065_v57, 0.0 }
 0x3ce   : > { %v2130_v62 = vmax.f32 %v2060_v59, 0.0  ;;  %v4714_v63 = vpop.f32.mrb[12].mxu0  ;;  %5033 = vmatpush3.bf16.msra.mxu1 %v5030_v27 }
 0x3cf   : > { %v2075_v29 = vadd.f32 %v4714_v63, %v6296_v35  ;;  %v2069_v31 = vpop.f32.mrb[13].mxu0 }
 0x3d0   : > { %v2070_v6 = vadd.f32 %v6296_v35, %v2069_v31  ;;  %4747 = vmatprep.mubr.msk.f32.mxu1 %vm2158_vm6, %v2130_v62  ;;  %4785 = vmatprep.mubr.msk.f32.mxu0 %vm2158_vm6, %v2130_v62 }
 0x3d1   : > { %4748 = vmatmul.mubr.msk.f32.gmra.mrb[26].mxu1 %vm2158_vm6, %v2131_v0  ;;  %4786 = vmatmul.mubr.msk.f32.gmra.mrb[26].mxu0 %vm2158_vm6, %v2131_v0  ;;  %v2133_v51 = vmax.f32 %v2075_v29, 0.0 }
 0x3d2   : > { %v2132_v7 = vmax.f32 %v2070_v6, 0.0  ;;  %v4717_v32 = vpop.f32.mrb[14].mxu0 }
 0x3d3   : > { %v2085_v54 = vadd.f32 %v4717_v32, %v6296_v35  ;;  %v2079_v3 = vpop.f32.mrb[15].mxu0  ;;  %v3033_v32 = vld [vmem:[%s7225_s17 + $0x8] sm:$0xff] }
 0x3d4   : > { %v2080_v4 = vadd.f32 %v6296_v35, %v2079_v3  ;;  %4750 = vmatprep.mubr.msk.f32.mxu1 %vm2158_vm6, %v2132_v7  ;;  %4788 = vmatprep.mubr.msk.f32.mxu0 %vm2158_vm6, %v2132_v7  ;;  %v2826_v3 = vld [vmem:[%s7223_s15 + $0x8] sm:$0xff] }
 0x3d5   : > { %4751 = vmatmul.mubr.msk.f32.gmra.mrb[28].mxu1 %vm2158_vm6, %v2133_v51  ;;  %4789 = vmatmul.mubr.msk.f32.gmra.mrb[28].mxu0 %vm2158_vm6, %v2133_v51  ;;  %v2135_v14 = vmax.f32 %v2085_v54, 0.0  ;;  %v2825_v54 = vld [vmem:[%s7223_s15] sm:$0xff] }
 0x3d6   : > { %v2134_v12 = vmax.f32 %v2080_v4, 0.0  ;;  %v4720_v13 = vpop.f32.mrb[16].mxu0  ;;  %v2827_v4 = vld [vmem:[%s7223_s15 + $0x10] sm:$0xff] }
 0x3d7   : > { %v2095_v15 = vadd.f32 %v4720_v13, %v6296_v35  ;;  %v2089_v19 = vpop.f32.mrb[17].mxu0  ;;  %v2828_v13 = vld [vmem:[%s7223_s15 + $0x18] sm:$0xff] }
 0x3d8   : > { %v2090_v22 = vadd.f32 %v6296_v35, %v2089_v19  ;;  %4753 = vmatprep.mubr.msk.f32.mxu1 %vm2158_vm6, %v2134_v12  ;;  %4791 = vmatprep.mubr.msk.f32.mxu0 %vm2158_vm6, %v2134_v12  ;;  %v5034_v12 = vpack.c.bf16 %v2826_v3, %v2825_v54 }
 0x3d9   : > { %4754 = vmatmul.mubr.msk.f32.gmra.mrb[30].mxu1 %vm2158_vm6, %v2135_v14  ;;  %4792 = vmatmul.mubr.msk.f32.gmra.mrb[30].mxu0 %vm2158_vm6, %v2135_v14  ;;  %v2137_v27 = vmax.f32 %v2095_v15, 0.0  ;;  %v5038_v14 = vpack.c.bf16 %v2828_v13, %v2827_v4  ;;  %v6370_v15 = vld [vmem:[%s7335_s12] ss:$0 sm:$0xff] }
 0x3da   : > { %v2136_v24 = vmax.f32 %v2090_v22, 0.0  ;;  %v4723_v25 = vpop.f32.mrb[18].mxu0  ;;  %5035 = vmatprep.subr.bf16.mxu0 %v5034_v12 }
 0x3db   : > { %v2105_v37 = vadd.f32 %v4723_v25, %v6296_v35  ;;  %v2099_v40 = vpop.f32.mrb[19].mxu0  ;;  %5037 = vmatpush3.bf16.msra.mxu0 %v5034_v12 }
 0x3dc   : > { %v2100_v41 = vadd.f32 %v6296_v35, %v2099_v40  ;;  %4756 = vmatprep.mubr.msk.f32.mxu1 %vm2158_vm6, %v2136_v24  ;;  %4794 = vmatprep.mubr.msk.f32.mxu0 %vm2158_vm6, %v2136_v24 }
 0x3dd   : > { %4757 = vmatmul.mubr.msk.f32.gmra.mrb[32].mxu1 %vm2158_vm6, %v2137_v27  ;;  %4795 = vmatmul.mubr.msk.f32.gmra.mrb[32].mxu0 %vm2158_vm6, %v2137_v27  ;;  %v2139_v52 = vmax.f32 %v2105_v37, 0.0 }
 0x3de   : > { %v2138_v47 = vmax.f32 %v2100_v41, 0.0  ;;  %v4726_v48 = vpop.f32.mrb[20].mxu0  ;;  %5039 = vmatprep.subr.bf16.mxu0 %v5038_v14 }
 0x3df   : > { %v2115_v53 = vadd.f32 %v4726_v48, %v6296_v35  ;;  %v2109_v57 = vpop.f32.mrb[21].mxu0  ;;  %5041 = vmatpush3.bf16.msra.mxu0 %v5038_v14 }
 0x3e0   : > { %v2110_v58 = vadd.f32 %v6296_v35, %v2109_v57  ;;  %4759 = vmatprep.mubr.msk.f32.mxu1 %vm2158_vm6, %v2138_v47  ;;  %4797 = vmatprep.mubr.msk.f32.mxu0 %vm2158_vm6, %v2138_v47 }
 0x3e1   : > { %4760 = vmatmul.mubr.msk.f32.gmra.mrb[34].mxu1 %vm2158_vm6, %v2139_v52  ;;  %4798 = vmatmul.mubr.msk.f32.gmra.mrb[34].mxu0 %vm2158_vm6, %v2139_v52  ;;  %v2141_v63 = vmax.f32 %v2115_v53, 0.0 }
 0x3e2   : > { %v2140_v59 = vmax.f32 %v2110_v58, 0.0  ;;  %v4729_v62 = vpop.f32.mrb[22].mxu0 }
 0x3e3   : > { %v2125_v0 = vadd.f32 %v4729_v62, %v6296_v35  ;;  %v2119_v29 = vpop.f32.mrb[23].mxu0 }
 0x3e4   : > { %v2120_v31 = vadd.f32 %v6296_v35, %v2119_v29  ;;  %4762 = vmatprep.mubr.msk.f32.mxu1 %vm2158_vm6, %v2140_v59  ;;  %4800 = vmatprep.mubr.msk.f32.mxu0 %vm2158_vm6, %v2140_v59  ;;  %v3032_v35 = vld [vmem:[%s7225_s17] sm:$0xff] }
 0x3e5   : > { %4763 = vmatmul.mubr.msk.f32.gmra.mrb[36].mxu1 %vm2158_vm6, %v2141_v63  ;;  %4801 = vmatmul.mubr.msk.f32.gmra.mrb[36].mxu0 %vm2158_vm6, %v2141_v63  ;;  %v2143_v7 = vmax.f32 %v2125_v0, 0.0  ;;  %v6352_v51 = vpack.c.bf16 %v3033_v32, %v3032_v35 }
 0x3e6   : > { %v2142_v6 = vmax.f32 %v2120_v31, 0.0 }
 0x3e7   : > { %5047 = vmatprep.subr.bf16.mxu1 %v6352_v51 }
 0x3e8   : > { %4765 = vmatprep.mubr.msk.f32.mxu1 %vm2158_vm6, %v2142_v6  ;;  %4803 = vmatprep.mubr.msk.f32.mxu0 %vm2158_vm6, %v2142_v6 }
 0x3e9   : > { %4766 = vmatmul.mubr.msk.f32.gmra.mrb[38].mxu1 %vm2158_vm6, %v2143_v7  ;;  %4804 = vmatmul.mubr.msk.f32.gmra.mrb[38].mxu0 %vm2158_vm6, %v2143_v7 }
 0x4a0   : > { %v6372_v19 = vpop.f32.mrb[24].mxu1  ;;  %v4784_v22 = vpop.f32.mrb[24].mxu0 }
 0x4a1   : > { %v2438_v24 = vadd.f32 %v4784_v22, %v6370_v15  ;;  %v6375_v25 = vpop.f32.mrb[25].mxu1  ;;  %v2432_v27 = vpop.f32.mrb[25].mxu0 }
 0x4a2   : > { %v2433_v37 = vadd.f32 %v6370_v15, %v2432_v27 }
 0x4a3   : > { %v2512_v40 = vmax.f32 %v2438_v24, -5.0 }
 0x4a4   : > { %v2511_v41 = vmax.f32 %v2433_v37, -5.0  ;;  %v6378_v47 = vpop.f32.mrb[26].mxu1  ;;  %v4787_v48 = vpop.f32.mrb[26].mxu0 }
 0x4a5   : > { %v6380_v52 = vmin.f32 %v2512_v40, 3.0  ;;  %v2448_v53 = vadd.f32 %v4787_v48, %v6370_v15  ;;  %v6383_v57 = vpop.f32.mrb[27].mxu1  ;;  %v2442_v58 = vpop.f32.mrb[27].mxu0 }
 0x4a6   : > { %v6385_v59 = vmin.f32 %v2511_v41, 3.0  ;;  %v2443_v62 = vadd.f32 %v6370_v15, %v2442_v58 }
 0x4a7   : > { %7336 = vst [vmem:[#allocation33_spill] sm:$0xff] %v6380_v52  ;;  %v2545_v63 = vmul.f32 1.442695, %v6380_v52  ;;  %v2514_v0 = vmax.f32 %v2448_v53, -5.0 }
 0x4a8   : > { %7337 = vst [vmem:[#allocation34_spill] sm:$0xff] %v6385_v59  ;;  %v2543_v29 = vmul.f32 1.442695, %v6385_v59  ;;  %v2513_v31 = vmax.f32 %v2443_v62, -5.0  ;;  %v6390_v6 = vpop.f32.mrb[28].mxu1  ;;  %v4790_v7 = vpop.f32.mrb[28].mxu0 }
 0x4a9   : > { %v6392_v35 = vmin.f32 %v2514_v0, 3.0  ;;  %v2458_v32 = vadd.f32 %v4790_v7, %v6370_v15  ;;  %v6395_v54 = vpop.f32.mrb[29].mxu1  ;;  %v2452_v3 = vpop.f32.mrb[29].mxu0 }
 0x4aa   : > { %5249 = vpow2.f32 %v2543_v29  ;;  %v6397_v4 = vmin.f32 %v2513_v31, 3.0  ;;  %v2453_v12 = vadd.f32 %v6370_v15, %v2452_v3 }
 0x4ab   : > { %7338 = vst [vmem:[#allocation35_spill] sm:$0xff] %v6392_v35  ;;  %5251 = vpow2.f32 %v2545_v63  ;;  %v2549_v13 = vmul.f32 1.442695, %v6392_v35  ;;  %v2516_v14 = vmax.f32 %v2458_v32, -5.0 }
 0x4ac   : > { %7339 = vst [vmem:[#allocation36_spill] sm:$0xff] %v6397_v4  ;;  %v2547_v22 = vmul.f32 1.442695, %v6397_v4  ;;  %v2515_v24 = vmax.f32 %v2453_v12, -5.0  ;;  %v6402_v27 = vpop.f32.mrb[30].mxu1  ;;  %v4793_v37 = vpop.f32.mrb[30].mxu0 }
 0x4ad   : > { %5253 = vpow2.f32 %v2549_v13  ;;  %v6404_v40 = vmin.f32 %v2516_v14, 3.0  ;;  %v2468_v41 = vadd.f32 %v4793_v37, %v6370_v15  ;;  %v6407_v48 = vpop.f32.mrb[31].mxu1  ;;  %v2462_v53 = vpop.f32.mrb[31].mxu0  ;;  %v3034_v37 = vld [vmem:[%s7225_s17 + $0x10] sm:$0xff] }
 0x4ae   : > { %5255 = vpow2.f32 %v2547_v22  ;;  %v6409_v58 = vmin.f32 %v2515_v24, 3.0  ;;  %v2463_v62 = vadd.f32 %v6370_v15, %v2462_v53 }
 0x4af   : > { %7340 = vst [vmem:[#allocation37_spill] sm:$0xff] %v6404_v40  ;;  %v2553_v63 = vmul.f32 1.442695, %v6404_v40  ;;  %v2518_v0 = vmax.f32 %v2468_v41, -5.0  ;;  %v6443_v40 = vld [vmem:[%s7344_s10] ss:$0 sm:$0xff] }
 0x4b0   : > { %7341 = vst [vmem:[#allocation38_spill] sm:$0xff] %v6409_v58  ;;  %v2551_v29 = vmul.f32 1.442695, %v6409_v58  ;;  %v2517_v31 = vmax.f32 %v2463_v62, -5.0  ;;  %v6414_v7 = vpop.f32.mrb[32].mxu1  ;;  %v4796_v32 = vpop.f32.mrb[32].mxu0 }
 0x4b1   : > { %v6416_v3 = vmin.f32 %v2518_v0, 3.0  ;;  %v2478_v12 = vadd.f32 %v4796_v32, %v6370_v15  ;;  %v6419_v13 = vpop.f32.mrb[33].mxu1  ;;  %v2472_v14 = vpop.f32.mrb[33].mxu0  ;;  %v3035_v62 = vld [vmem:[%s7225_s17 + $0x18] sm:$0xff]  ;;  %v3036_v0 = vld [vmem:[%s7225_s17 + $0x20] sm:$0xff] }
 0x4b2   : > { %5257 = vpow2.f32 %v2551_v29  ;;  %v6421_v22 = vmin.f32 %v2517_v31, 3.0  ;;  %v2473_v24 = vadd.f32 %v6370_v15, %v2472_v14  ;;  %v3037_v29 = vld [vmem:[%s7225_s17 + $0x28] sm:$0xff] }
 0x4b3   : > { %7342 = vst [vmem:[#allocation39_spill] sm:$0xff] %v6416_v3  ;;  %5259 = vpow2.f32 %v2553_v63  ;;  %v2557_v41 = vmul.f32 1.442695, %v6416_v3  ;;  %v2520_v53 = vmax.f32 %v2478_v12, -5.0  ;;  %v6454_v52 = vpack.c.bf16 %v3037_v29, %v3036_v0 }
 0x4b4   : > { %7343 = vst [vmem:[#allocation40_spill] sm:$0xff] %v6421_v22  ;;  %v5250_v31 = vpop.eup %5249  ;;  %v2555_v32 = vmul.f32 1.442695, %v6421_v22  ;;  %v2519_v14 = vmax.f32 %v2473_v24, -5.0  ;;  %v6438_v63 = vpop.f32.mrb[34].mxu1  ;;  %v6452_v24 = vpack.c.bf16 %v3035_v62, %v3034_v37  ;;  %v2274_v37 = vadd.f32 %v6443_v40, %v6375_v25 }
 0x4b5   : > { %v4799_v3 = vpop.f32.mrb[34].mxu0  ;;  %v5252_v12 = vpop.eup %5251  ;;  %5261 = vpow2.f32 %v2557_v41  ;;  %v6445_v35 = vmin.f32 %v2520_v53, 3.0  ;;  %v2575_v53 = vmul.f32 %v5250_v31, %v6158_v49 }
 0x4b6   : > { %v2488_v58 = vadd.f32 %v4799_v3, %v6370_v15  ;;  %v6448_v4 = vpop.f32.mrb[35].mxu1  ;;  %v2482_v59 = vpop.f32.mrb[35].mxu0  ;;  %5263 = vpow2.f32 %v2555_v32  ;;  %v6450_v22 = vmin.f32 %v2519_v14, 3.0  ;;  %v2279_v3 = vadd.f32 %v6372_v19, %v6443_v40 }
 0x4b7   : > { %7345 = vst [vmem:[#allocation41_spill] sm:$0xff] %v6445_v35  ;;  %v5254_v2 = vpop.eup %5253  ;;  %v2561_v46 = vmul.f32 1.442695, %v6445_v35  ;;  %v2483_v41 = vadd.f32 %v6370_v15, %v2482_v59  ;;  %v2576_v32 = vmul.f32 %v5252_v12, %v6161_v50  ;;  %v2289_v50 = vadd.f32 %v6378_v47, %v6443_v40 }
 0x4b8   : > { %7346 = vst [vmem:[#allocation42_spill] sm:$0xff] %v6450_v22  ;;  %v2522_v45 = vmax.f32 %v2488_v58, -5.0  ;;  %v5256_v44 = vpop.eup %5255  ;;  %v2559_v62 = vmul.f32 1.442695, %v6450_v22  ;;  %v6465_v0 = vpop.f32.mrb[36].mxu1  ;;  %v2578_v31 = vmul.f32 %v5254_v2, %v6177_v61  ;;  %v2284_v61 = vadd.f32 %v6443_v40, %v6383_v57 }
 0x4b9   : > { %v4802_v29 = vpop.f32.mrb[36].mxu0  ;;  %5265 = vpow2.f32 %v2561_v46  ;;  %v2521_v59 = vmax.f32 %v2483_v41, -5.0  ;;  %v6469_v14 = vpop.f32.mrb[37].mxu1  ;;  %v2577_v46 = vmul.f32 %v5256_v44, %v6174_v60  ;;  %v6482_v22 = vadd.f32 %v2576_v32, %v2279_v3 }
 0x4ba   : > { %v6467_v58 = vmin.f32 %v2522_v45, 3.0  ;;  %v2492_v49 = vpop.f32.mrb[37].mxu0  ;;  %5267 = vpow2.f32 %v2559_v62  ;;  %v2498_v19 = vadd.f32 %v4802_v29, %v6370_v15  ;;  %v6479_v45 = vadd.f32 %v2575_v53, %v2274_v37 }
 0x4bb   : > { %v2493_v25 = vadd.f32 %v6370_v15, %v2492_v49  ;;  %v6477_v35 = vmin.f32 %v2521_v59, 3.0  ;;  %v2294_v59 = vadd.f32 %v6443_v40, %v6395_v54  ;;  %v6496_v57 = vadd.f32 %v2578_v31, %v2289_v50 }
 0x4bc   : > { %7347 = vst [vmem:[#allocation43_spill] sm:$0xff] %v6467_v58  ;;  %v2565_v12 = vmul.f32 1.442695, %v6467_v58  ;;  %v5258_v41 = vpop.eup %5257  ;;  %v2524_v2 = vmax.f32 %v2498_v19, -5.0  ;;  %v6486_v62 = vpop.f32.mrb[38].mxu1  ;;  %4810 = vmatprep.mubr.msk.f32.mxu1 %vm1934_vm5, %v6479_v45  ;;  %v6505_v58 = vadd.f32 %v2577_v46, %v2284_v61  ;;  %v2299_v46 = vadd.f32 %v6390_v6, %v6443_v40 }
 0x4bd   : > { %7348 = vst [vmem:[#allocation44_spill] sm:$0xff] %v6477_v35  ;;  %v2523_v47 = vmax.f32 %v2493_v25, -5.0  ;;  %v4805_v29 = vpop.f32.mrb[38].mxu0  ;;  %v5260_v49 = vpop.eup %5259  ;;  %v2563_v53 = vmul.f32 1.442695, %v6477_v35  ;;  %4811 = vmatmul.mubr.msk.f32.vlgmr.msra.gmra.mrb[40].mxu1 %vm1934_vm5, %v6482_v22 }
 0x4be   : > { %v2508_v60 = vadd.f32 %v4805_v29, %v6370_v15  ;;  %v6494_v44 = vpop.f32.mrb[39].mxu1  ;;  %v2502_v3 = vpop.f32.mrb[39].mxu0  ;;  %5269 = vpow2.f32 %v2565_v12  ;;  %v6498_v32 = vmin.f32 %v2524_v2, 3.0  ;;  %v2579_v29 = vmul.f32 %v5258_v41, %v6184_v1  ;;  %5049 = vmatpush3.bf16.msra.mxu1 %v6352_v51  ;;  %4813 = vmatprep.mubr.msk.f32.mxu1 %vm1934_vm5, %v6505_v58 }
 0x4bf   : > { %v6500_v37 = vmin.f32 %v2523_v47, 3.0  ;;  %v2503_v54 = vadd.f32 %v6370_v15, %v2502_v3  ;;  %v5262_v19 = vpop.eup %5261  ;;  %5271 = vpow2.f32 %v2563_v53  ;;  %v2580_v47 = vmul.f32 %v5260_v49, %v6187_v5  ;;  %5051 = vmatprep.subr.bf16.mxu1 %v6452_v24 }
 0x4c0   : > { %7349 = vst [vmem:[#allocation45_spill] sm:$0xff] %v6498_v32  ;;  %v2526_v25 = vmax.f32 %v2508_v60, -5.0  ;;  %v5264_v31 = vpop.eup %5263  ;;  %v2569_v50 = vmul.f32 1.442695, %v6498_v32  ;;  %v2304_v15 = vadd.f32 %v6443_v40, %v6407_v48  ;;  %v6519_v1 = vadd.f32 %v2579_v29, %v2294_v59 }
 0x4c1   : > { %7350 = vst [vmem:[#allocation46_spill] sm:$0xff] %v6500_v37  ;;  %v2567_v12 = vmul.f32 1.442695, %v6500_v37  ;;  %v2525_v2 = vmax.f32 %v2503_v54, -5.0  ;;  %v2581_v51 = vmul.f32 %v5264_v31, %v6197_v9  ;;  %4814 = vmatmul.mubr.msk.f32.gmra.mrb[42].mxu1 %vm1934_vm5, %v6496_v57  ;;  %v6535_v49 = vadd.f32 %v2580_v47, %v2299_v46  ;;  %v3038_v54 = vld [vmem:[%s7225_s17 + $0x30] sm:$0xff] }
 0x4c2   : > { %v6515_v53 = vmin.f32 %v2526_v25, 3.0  ;;  %5273 = vpow2.f32 %v2569_v50  ;;  %4816 = vmatprep.mubr.msk.f32.mxu1 %vm1934_vm5, %v6519_v1  ;;  %5053 = vmatpush3.bf16.msra.mxu1 %v6452_v24  ;;  %v2582_v59 = vmul.f32 %v5262_v19, %v6200_v39  ;;  %v2314_v60 = vadd.f32 %v6443_v40, %v6419_v13 }
 0x4c3   : > { %v6524_v41 = vmin.f32 %v2525_v2, 3.0  ;;  %v5266_v5 = vpop.eup %5265  ;;  %5275 = vpow2.f32 %v2567_v12  ;;  %v6531_v61 = vadd.f32 %v2581_v51, %v2304_v15  ;;  %5055 = vmatprep.subr.bf16.mxu1 %v6454_v52  ;;  %v2309_v24 = vadd.f32 %v6402_v27, %v6443_v40 }
 0x4c4   : > { %7351 = vst [vmem:[#allocation47_spill] sm:$0xff] %v6515_v53  ;;  %v2573_v48 = vmul.f32 1.442695, %v6515_v53  ;;  %v5268_v9 = vpop.eup %5267  ;;  %v2584_v19 = vmul.f32 %v5266_v5, %v6212_v55  ;;  %v2319_v27 = vadd.f32 %v6414_v7, %v6443_v40  ;;  %v2324_v29 = vadd.f32 %v6443_v40, %v6448_v4 }
 0x4c5   : > { %7352 = vst [vmem:[#allocation48_spill] sm:$0xff] %v6524_v41  ;;  %v2571_v6 = vmul.f32 1.442695, %v6524_v41  ;;  %v2583_v3 = vmul.f32 %v5268_v9, %v6203_v42  ;;  %4817 = vmatmul.mubr.msk.f32.gmra.mrb[44].mxu1 %vm1934_vm5, %v6535_v49  ;;  %v6554_v13 = vadd.f32 %v2582_v59, %v2309_v24  ;;  %v2329_v4 = vadd.f32 %v6438_v63, %v6443_v40  ;;  %v3437_v9 = vld [vmem:[%s7227_s19] sm:$0xff] }
 0x4c6   : > { %4819 = vmatprep.mubr.msk.f32.mxu1 %vm1934_vm5, %v6531_v61  ;;  %5057 = vmatpush3.bf16.msra.mxu1 %v6454_v52  ;;  %v6566_v50 = vadd.f32 %v2584_v19, %v2319_v27  ;;  %v2334_v2 = vadd.f32 %v6443_v40, %v6469_v14  ;;  %v2344_v63 = vadd.f32 %v6443_v40, %v6494_v44 }
 0x4c7   : > { %5277 = vpow2.f32 %v2571_v6  ;;  %v6551_v39 = vadd.f32 %v2583_v3, %v2314_v60  ;;  %4884 = vmatprep.subr.mxu1 %v3038_v54  ;;  %v2339_v5 = vadd.f32 %v6465_v0, %v6443_v40  ;;  %v2349_v44 = vadd.f32 %v6486_v62, %v6443_v40  ;;  %v2829_v0 = vld [vmem:[%s7223_s15 + $0x20] sm:$0xff]  ;;  %v2831_v62 = vld [vmem:[%s7223_s15 + $0x30] sm:$0xff]  ;;  %v3438_v6 = vld [vmem:[%s7227_s19 + $0x8] sm:$0xff] }
 0x4c8   : > { %5279 = vpow2.f32 %v2573_v48  ;;  %v5270_v42 = vpop.eup %5269  ;;  %v5058_v59 = vpack.c.bf16 %v3438_v6, %v3437_v9  ;;  %v6627_v60 = vld [vmem:[%s7222_s14] ss:$0 sm:$0xff] }
 0x4c9   : > { %v5272_v25 = vpop.eup %5271  ;;  %4820 = vmatmul.mubr.msk.f32.gmra.mrb[46].mxu1 %vm1934_vm5, %v6554_v13  ;;  %v2586_v12 = vmul.f32 %v5270_v42, %v6222_v10 }
 0x4ca   : > { %v2585_v31 = vmul.f32 %v5272_v25, %v6215_v56  ;;  %4822 = vmatprep.mubr.msk.f32.mxu1 %vm1934_vm5, %v6551_v39  ;;  %4885 = vmatpush3.msra.mxu1 %v3038_v54 }
 0x4cb   : > { %v6580_v15 = vadd.f32 %v2586_v12, %v2329_v4 }
 0x4cc   : > { %v5274_v52 = vpop.eup %5273  ;;  %v6568_v55 = vadd.f32 %v2585_v31, %v2324_v29 }
 0x4cd   : > { %v5276_v7 = vpop.eup %5275  ;;  %4823 = vmatmul.mubr.msk.f32.gmra.mrb[48].mxu1 %vm1934_vm5, %v6566_v50  ;;  %v2588_v10 = vmul.f32 %v5274_v52, %v6232_v16 }
 0x4ce   : > { %v2587_v56 = vmul.f32 %v5276_v7, %v6225_v11  ;;  %4825 = vmatprep.mubr.msk.f32.mxu1 %vm1934_vm5, %v6568_v55 }
 0x4cf   : > { %v6596_v48 = vadd.f32 %v2588_v10, %v2339_v5 }
 0x4d0   : > { %v6582_v51 = vadd.f32 %v2587_v56, %v2334_v2 }
 0x4d1   : > { %v5278_v47 = vpop.eup %5277  ;;  %4826 = vmatmul.mubr.msk.f32.gmra.mrb[50].mxu1 %vm1934_vm5, %v6580_v15 }
 0x4d2   : > { %v5280_v46 = vpop.eup %5279  ;;  %v2589_v14 = vmul.f32 %v5278_v47, %v6235_v17  ;;  %4828 = vmatprep.mubr.msk.f32.mxu1 %vm1934_vm5, %v6582_v51 }
 0x4d3   : > { %v2590_v16 = vmul.f32 %v5280_v46, %v6246_v21  ;;  %v2830_v21 = vld [vmem:[%s7223_s15 + $0x28] sm:$0xff] }
 0x4d4   : > { %v6594_v11 = vadd.f32 %v2589_v14, %v2344_v63  ;;  %v5042_v40 = vpack.c.bf16 %v2830_v21, %v2829_v0 }
 0x4d5   : > { %4829 = vmatmul.mubr.msk.f32.gmra.mrb[52].mxu1 %vm1934_vm5, %v6596_v48  ;;  %v6605_v17 = vadd.f32 %v2590_v16, %v2349_v44 }
 0x4d6   : > { %4831 = vmatprep.mubr.msk.f32.mxu1 %vm1934_vm5, %v6594_v11  ;;  %5043 = vmatprep.subr.bf16.mxu0 %v5042_v40 }
 0x4d7   : > { %7353 = vst [vmem:[#allocation49_spill] sm:$0xff] %v6605_v17  ;;  %5045 = vmatpush3.bf16.msra.mxu0 %v5042_v40 }
 0x4d8   : > { %4846 = vmatprep.subr.mxu0 %v2831_v62 }
 0x4d9   : > { %4832 = vmatmul.mubr.msk.f32.gmra.mrb[54].mxu1 %vm1934_vm5, %v6605_v17 }
 0x4db   : > { %4847 = vmatpush3.msra.mxu0 %v2831_v62 }
 0x4dc   : > { %5059 = vmatprep.subr.bf16.mxu0 %v5058_v59 }
 0x590   : > { %v4812_v3 = vpop.f32.mrb[40].mxu1 }
 0x591   : > { %v2736_v54 = vadd.f32 %v4812_v3, %v6627_v60  ;;  %v2730_v24 = vpop.f32.mrb[41].mxu1 }
 0x592   : > { %v2731_v42 = vadd.f32 %v6627_v60, %v2730_v24 }
 0x593   : > { %v2810_v27 = vmax.f32 %v2736_v54, 0.0 }
 0x594   : > { %v2809_v19 = vmax.f32 %v2731_v42, 0.0  ;;  %v4815_v25 = vpop.f32.mrb[42].mxu1 }
 0x595   : > { %v2746_v29 = vadd.f32 %v4815_v25, %v6627_v60  ;;  %v2740_v31 = vpop.f32.mrb[43].mxu1 }
 0x596   : > { %v2741_v52 = vadd.f32 %v6627_v60, %v2740_v31  ;;  %4848 = vmatprep.mubr.msk.f32.mxu0 %vm2158_vm6, %v2809_v19  ;;  %4886 = vmatprep.mubr.msk.f32.mxu1 %vm2158_vm6, %v2809_v19 }
 0x597   : > { %4849 = vmatmul.mubr.msk.f32.vlgmr.msra.gmra.mrb[40].mxu0 %vm2158_vm6, %v2810_v27  ;;  %4887 = vmatmul.mubr.msk.f32.vlgmr.msra.gmra.mrb[56].mxu1 %vm2158_vm6, %v2810_v27  ;;  %v2812_v4 = vmax.f32 %v2746_v29, 0.0 }
 0x598   : > { %v2811_v12 = vmax.f32 %v2741_v52, 0.0  ;;  %v4818_v7 = vpop.f32.mrb[44].mxu1  ;;  %5061 = vmatpush3.bf16.msra.mxu0 %v5058_v59 }
 0x599   : > { %v2756_v2 = vadd.f32 %v4818_v7, %v6627_v60  ;;  %v2750_v56 = vpop.f32.mrb[45].mxu1 }
 0x59a   : > { %v2751_v47 = vadd.f32 %v6627_v60, %v2750_v56  ;;  %4851 = vmatprep.mubr.msk.f32.mxu0 %vm2158_vm6, %v2811_v12  ;;  %4889 = vmatprep.mubr.msk.f32.mxu1 %vm2158_vm6, %v2811_v12 }
 0x59b   : > { %4852 = vmatmul.mubr.msk.f32.gmra.mrb[42].mxu0 %vm2158_vm6, %v2812_v4  ;;  %4890 = vmatmul.mubr.msk.f32.gmra.mrb[58].mxu1 %vm2158_vm6, %v2812_v4  ;;  %v2814_v63 = vmax.f32 %v2756_v2, 0.0 }
 0x59c   : > { %v2813_v10 = vmax.f32 %v2751_v47, 0.0  ;;  %v4821_v46 = vpop.f32.mrb[46].mxu1 }
 0x59d   : > { %v2766_v14 = vadd.f32 %v4821_v46, %v6627_v60  ;;  %v2760_v5 = vpop.f32.mrb[47].mxu1 }
 0x59e   : > { %v2761_v16 = vadd.f32 %v6627_v60, %v2760_v5  ;;  %4854 = vmatprep.mubr.msk.f32.mxu0 %vm2158_vm6, %v2813_v10  ;;  %4892 = vmatprep.mubr.msk.f32.mxu1 %vm2158_vm6, %v2813_v10 }
 0x59f   : > { %4855 = vmatmul.mubr.msk.f32.gmra.mrb[44].mxu0 %vm2158_vm6, %v2814_v63  ;;  %4893 = vmatmul.mubr.msk.f32.gmra.mrb[60].mxu1 %vm2158_vm6, %v2814_v63  ;;  %v2816_v21 = vmax.f32 %v2766_v14, 0.0 }
 0x5a0   : > { %v2815_v44 = vmax.f32 %v2761_v16, 0.0  ;;  %v4824_v0 = vpop.f32.mrb[48].mxu1 }
 0x5a1   : > { %v2776_v40 = vadd.f32 %v4824_v0, %v6627_v60  ;;  %v2770_v62 = vpop.f32.mrb[49].mxu1  ;;  %v4185_v0 = vld [vmem:[%s7355_s25] ss:$0 sm:$0xff] }
 0x5a2   : > { %v2771_v9 = vadd.f32 %v6627_v60, %v2770_v62  ;;  %4857 = vmatprep.mubr.msk.f32.mxu0 %vm2158_vm6, %v2815_v44  ;;  %4895 = vmatprep.mubr.msk.f32.mxu1 %vm2158_vm6, %v2815_v44 }
 0x5a3   : > { %4858 = vmatmul.mubr.msk.f32.gmra.mrb[46].mxu0 %vm2158_vm6, %v2816_v21  ;;  %4896 = vmatmul.mubr.msk.f32.gmra.mrb[62].mxu1 %vm2158_vm6, %v2816_v21  ;;  %v2818_v3 = vmax.f32 %v2776_v40, 0.0 }
 0x5a4   : > { %v2817_v6 = vmax.f32 %v2771_v9, 0.0  ;;  %v4827_v59 = vpop.f32.mrb[50].mxu1 }
 0x5a5   : > { %v2786_v54 = vadd.f32 %v4827_v59, %v6627_v60  ;;  %v2780_v24 = vpop.f32.mrb[51].mxu1  ;;  %v6688_v59 = vadd.f32 %v6237_v18, %v4185_v0 }
 0x5a6   : > { %v2781_v42 = vadd.f32 %v6627_v60, %v2780_v24  ;;  %4860 = vmatprep.mubr.msk.f32.mxu0 %vm2158_vm6, %v2817_v6  ;;  %4898 = vmatprep.mubr.msk.f32.mxu1 %vm2158_vm6, %v2817_v6 }
 0x5a7   : > { %4861 = vmatmul.mubr.msk.f32.gmra.mrb[48].mxu0 %vm2158_vm6, %v2818_v3  ;;  %4899 = vmatmul.mubr.msk.f32.gmra.mrb[64].mxu1 %vm2158_vm6, %v2818_v3  ;;  %v2820_v27 = vmax.f32 %v2786_v54, 0.0  ;;  %v6691_v3 = vadd.f32 %v4185_v0, %v6241_v20  ;;  %v6709_v20 = vadd.f32 %v4185_v0, %v6256_v8 }
 0x5a8   : > { %v2819_v19 = vmax.f32 %v2781_v42, 0.0  ;;  %v4830_v25 = vpop.f32.mrb[52].mxu1 }
 0x5a9   : > { %v2796_v29 = vadd.f32 %v4830_v25, %v6627_v60  ;;  %v2790_v31 = vpop.f32.mrb[53].mxu1  ;;  %v6697_v25 = vadd.f32 %v6248_v23, %v4185_v0  ;;  %v6716_v23 = vadd.f32 %v4185_v0, %v6260_v33 }
 0x5aa   : > { %v2791_v52 = vadd.f32 %v6627_v60, %v2790_v31  ;;  %4863 = vmatprep.mubr.msk.f32.mxu0 %vm2158_vm6, %v2819_v19  ;;  %4901 = vmatprep.mubr.msk.f32.mxu1 %vm2158_vm6, %v2819_v19  ;;  %v6706_v31 = vadd.f32 %v6254_v30, %v4185_v0  ;;  %v6720_v30 = vadd.f32 %v6262_v34, %v4185_v0 }
 0x5ab   : > { %4864 = vmatmul.mubr.msk.f32.gmra.mrb[50].mxu0 %vm2158_vm6, %v2820_v27  ;;  %4902 = vmatmul.mubr.msk.f32.gmra.mrb[66].mxu1 %vm2158_vm6, %v2820_v27  ;;  %v2822_v4 = vmax.f32 %v2796_v29, 0.0  ;;  %v6700_v27 = vadd.f32 %v4185_v0, %v6252_v26  ;;  %v6735_v34 = vadd.f32 %v4185_v0, %v6268_v43 }
 0x5ac   : > { %v2821_v12 = vmax.f32 %v2791_v52, 0.0  ;;  %v4833_v7 = vpop.f32.mrb[54].mxu1  ;;  %7356 = vst [vmem:[#allocation50_spill] sm:$0xff] %v6720_v30 }
 0x5ad   : > { %v2806_v2 = vadd.f32 %v4833_v7, %v6627_v60  ;;  %v2800_v56 = vpop.f32.mrb[55].mxu1  ;;  %v6713_v7 = vadd.f32 %v6258_v28, %v4185_v0  ;;  %v6726_v28 = vadd.f32 %v4185_v0, %v6264_v36  ;;  %7358 = vst [vmem:[#allocation52_spill] sm:$0xff] %v6735_v34 }
 0x5ae   : > { %v2801_v47 = vadd.f32 %v6627_v60, %v2800_v56  ;;  %4866 = vmatprep.mubr.msk.f32.mxu0 %vm2158_vm6, %v2821_v12  ;;  %4904 = vmatprep.mubr.msk.f32.mxu1 %vm2158_vm6, %v2821_v12  ;;  %v6680_v60 = vld [vmem:[%s7354_s7] ss:$0 sm:$0xff] }
 0x5af   : > { %4867 = vmatmul.mubr.msk.f32.gmra.mrb[52].mxu0 %vm2158_vm6, %v2822_v4  ;;  %4905 = vmatmul.mubr.msk.f32.gmra.mrb[68].mxu1 %vm2158_vm6, %v2822_v4  ;;  %v2824_v46 = vmax.f32 %v2806_v2, 0.0 }
 0x5b0   : > { %v2823_v10 = vmax.f32 %v2801_v47, 0.0 }
 0x5b2   : > { %4869 = vmatprep.mubr.msk.f32.mxu0 %vm2158_vm6, %v2823_v10  ;;  %4907 = vmatprep.mubr.msk.f32.mxu1 %vm2158_vm6, %v2823_v10 }
 0x5b3   : > { %4870 = vmatmul.mubr.msk.f32.gmra.mrb[54].mxu0 %vm2158_vm6, %v2824_v46  ;;  %4908 = vmatmul.mubr.msk.f32.gmra.mrb[70].mxu1 %vm2158_vm6, %v2824_v46 }
 0x66a   : > { %v4850_v63 = vpop.f32.mrb[40].mxu0  ;;  %v4888_v14 = vpop.f32.mrb[56].mxu1 }
 0x66b   : > { %v3118_v5 = vadd.f32 %v4888_v14, %v6680_v60  ;;  %v2953_v16 = vpop.f32.mrb[41].mxu0  ;;  %v3112_v44 = vpop.f32.mrb[57].mxu1 }
 0x66c   : > { %v3113_v21 = vadd.f32 %v6680_v60, %v3112_v44  ;;  %v6740_v44 = vld [vmem:[%s7359_s18] ss:$0 sm:$0xff] }
 0x66d   : > { %v3192_v40 = vmax.f32 %v3118_v5, -5.0  ;;  %v6732_v5 = vadd.f32 %v6266_v38, %v4185_v0  ;;  %v2959_v53 = vadd.f32 %v4850_v63, %v6740_v44 }
 0x66e   : > { %v3191_v62 = vmax.f32 %v3113_v21, -5.0  ;;  %v4853_v9 = vpop.f32.mrb[42].mxu0  ;;  %v4891_v6 = vpop.f32.mrb[58].mxu1 }
 0x66f   : > { %v6693_v54 = vmin.f32 %v3192_v40, 3.0  ;;  %v3128_v24 = vadd.f32 %v4891_v6, %v6680_v60  ;;  %v2963_v42 = vpop.f32.mrb[43].mxu0  ;;  %v3122_v19 = vpop.f32.mrb[59].mxu1  ;;  %7357 = vst [vmem:[#allocation51_spill] sm:$0xff] %v6732_v5  ;;  %v7360_v40 = vld [vmem:[#allocation29_spill] sm:$0xff]  ;;  %v7362_v6 = vld [vmem:[#allocation30_spill] sm:$0xff] }
 0x670   : > { %v6702_v29 = vmin.f32 %v3191_v62, 3.0  ;;  %v3123_v18 = vadd.f32 %v6680_v60, %v3122_v19  ;;  %v6744_v62 = vadd.f32 %v7360_v40, %v4185_v0  ;;  %v6771_v41 = vadd.f32 %v6740_v44, %v2963_v42 }
 0x671   : > { %v3225_v52 = vmul.f32 1.442695, %v6693_v54  ;;  %v3194_v12 = vmax.f32 %v3128_v24, -5.0  ;;  %v6747_v24 = vadd.f32 %v4185_v0, %v7362_v6 }
 0x672   : > { %v3223_v26 = vmul.f32 1.442695, %v6702_v29  ;;  %v3193_v4 = vmax.f32 %v3123_v18, -5.0  ;;  %v4856_v2 = vpop.f32.mrb[44].mxu0  ;;  %v4894_v56 = vpop.f32.mrb[60].mxu1  ;;  %7361 = vst [vmem:[#allocation29_spill] sm:$0xff] %v6744_v62 }
 0x673   : > { %5281 = vpow2.f32 %v3225_v52  ;;  %v6722_v8 = vmin.f32 %v3194_v12, 3.0  ;;  %v3138_v47 = vadd.f32 %v4894_v56, %v6680_v60  ;;  %v2973_v10 = vpop.f32.mrb[45].mxu0  ;;  %v3132_v46 = vpop.f32.mrb[61].mxu1  ;;  %7363 = vst [vmem:[#allocation30_spill] sm:$0xff] %v6747_v24  ;;  %v7364_v52 = vld [vmem:[#allocation31_spill] sm:$0xff] }
 0x674   : > { %5283 = vpow2.f32 %v3223_v26  ;;  %v6728_v33 = vmin.f32 %v3193_v4, 3.0  ;;  %v3133_v14 = vadd.f32 %v6680_v60, %v3132_v46  ;;  %v6751_v12 = vadd.f32 %v7364_v52, %v4185_v0  ;;  %v7367_v46 = vld [vmem:[#allocation32_spill] sm:$0xff] }
 0x675   : > { %v3229_v21 = vmul.f32 1.442695, %v6722_v8  ;;  %v3196_v36 = vmax.f32 %v3138_v47, -5.0  ;;  %v6757_v40 = vadd.f32 %v4185_v0, %v7367_v46  ;;  %v6764_v52 = vadd.f32 %v6740_v44, %v2953_v16 }
 0x676   : > { %v3227_v38 = vmul.f32 1.442695, %v6728_v33  ;;  %v3195_v19 = vmax.f32 %v3133_v14, -5.0  ;;  %v4859_v18 = vpop.f32.mrb[46].mxu0  ;;  %v4897_v43 = vpop.f32.mrb[62].mxu1  ;;  %7365 = vst [vmem:[#allocation31_spill] sm:$0xff] %v6751_v12 }
 0x677   : > { %5285 = vpow2.f32 %v3229_v21  ;;  %v6753_v26 = vmin.f32 %v3196_v36, 3.0  ;;  %v3148_v4 = vadd.f32 %v4897_v43, %v6680_v60  ;;  %v2983_v56 = vpop.f32.mrb[47].mxu0  ;;  %v3142_v47 = vpop.f32.mrb[63].mxu1  ;;  %7368 = vst [vmem:[#allocation32_spill] sm:$0xff] %v6757_v40  ;;  %v6768_v43 = vadd.f32 %v4853_v9, %v6740_v44 }
 0x678   : > { %5287 = vpow2.f32 %v3227_v38  ;;  %v6759_v6 = vmin.f32 %v3195_v19, 3.0  ;;  %v3143_v14 = vadd.f32 %v6680_v60, %v3142_v47  ;;  %v6775_v47 = vadd.f32 %v4856_v2, %v6740_v44 }
 0x679   : > { %7366 = vst [vmem:[#allocation53_spill] sm:$0xff] %v6753_v26  ;;  %v3233_v21 = vmul.f32 1.442695, %v6753_v26  ;;  %v3198_v36 = vmax.f32 %v3148_v4, -5.0  ;;  %v6781_v9 = vadd.f32 %v6740_v44, %v2973_v10  ;;  %v6787_v12 = vadd.f32 %v4859_v18, %v6740_v44 }
 0x67a   : > { %v3231_v0 = vmul.f32 1.442695, %v6759_v6  ;;  %v3197_v38 = vmax.f32 %v3143_v14, -5.0  ;;  %v4862_v19 = vpop.f32.mrb[48].mxu0  ;;  %v4900_v46 = vpop.f32.mrb[64].mxu1 }
 0x67b   : > { %5289 = vpow2.f32 %v3233_v21  ;;  %v6777_v63 = vmin.f32 %v3198_v36, 3.0  ;;  %v3158_v16 = vadd.f32 %v4900_v46, %v6680_v60  ;;  %v2993_v4 = vpop.f32.mrb[49].mxu0  ;;  %v3152_v32 = vpop.f32.mrb[65].mxu1  ;;  %v6791_v21 = vadd.f32 %v6740_v44, %v2983_v56 }
 0x67c   : > { %5291 = vpow2.f32 %v3231_v0  ;;  %v6783_v42 = vmin.f32 %v3197_v38, 3.0  ;;  %v3153_v14 = vadd.f32 %v6680_v60, %v3152_v32  ;;  %v6796_v0 = vadd.f32 %v4862_v19, %v6740_v44 }
 0x67d   : > { %7369 = vst [vmem:[#allocation54_spill] sm:$0xff] %v6777_v63  ;;  %v5282_v37 = vpop.eup %5281  ;;  %v3237_v2 = vmul.f32 1.442695, %v6777_v63  ;;  %v3200_v36 = vmax.f32 %v3158_v16, -5.0  ;;  %v6801_v35 = vadd.f32 %v6740_v44, %v2993_v4 }
 0x67e   : > { %v5284_v46 = vpop.eup %5283  ;;  %v3256_v40 = vmul.f32 %v5282_v37, %v6482_v22  ;;  %v3235_v10 = vmul.f32 1.442695, %v6783_v42  ;;  %v3199_v38 = vmax.f32 %v3153_v14, -5.0  ;;  %v4865_v32 = vpop.f32.mrb[50].mxu0 }
 0x67f   : > { %v4903_v62 = vpop.f32.mrb[66].mxu1  ;;  %5293 = vpow2.f32 %v3237_v2  ;;  %v6798_v18 = vmin.f32 %v3200_v36, 3.0  ;;  %v3003_v16 = vpop.f32.mrb[51].mxu0  ;;  %v6807_v37 = vadd.f32 %v4865_v32, %v6740_v44  ;;  %v3255_v4 = vmul.f32 %v5284_v46, %v6479_v45 }
 0x680   : > { %v3168_v56 = vadd.f32 %v4903_v62, %v6680_v60  ;;  %v3162_v63 = vpop.f32.mrb[67].mxu1  ;;  %v3272_v5 = vadd.f32 %v3256_v40, %v2959_v53  ;;  %5295 = vpow2.f32 %v3235_v10  ;;  %v6804_v22 = vmin.f32 %v3199_v38, 3.0 }
 0x681   : > { %7370 = vst [vmem:[#allocation55_spill] sm:$0xff] %v6798_v18  ;;  %v5286_v19 = vpop.eup %5285  ;;  %v3241_v14 = vmul.f32 1.442695, %v6798_v18  ;;  %v3163_v36 = vadd.f32 %v6680_v60, %v3162_v63  ;;  %v6814_v30 = vadd.f32 %v6740_v44, %v3003_v16 }
 0x682   : > { %7371 = vst [vmem:[#allocation56_spill] sm:$0xff] %v6804_v22  ;;  %v3202_v2 = vmax.f32 %v3168_v56, -5.0  ;;  %v5288_v24 = vpop.eup %5287  ;;  %v3239_v62 = vmul.f32 1.442695, %v6804_v22  ;;  %v4868_v53 = vpop.f32.mrb[52].mxu0  ;;  %v3258_v10 = vmul.f32 %v5286_v19, %v6496_v57  ;;  %v3288_v38 = vmul.f32 %v3272_v5, %v3272_v5 }
 0x683   : > { %v4906_v40 = vpop.f32.mrb[68].mxu1  ;;  %5297 = vpow2.f32 %v3241_v14  ;;  %v3201_v18 = vmax.f32 %v3163_v36, -5.0  ;;  %v6820_v56 = vadd.f32 %v4868_v53, %v6740_v44  ;;  %v3013_v63 = vpop.f32.mrb[53].mxu0  ;;  %v3271_v14 = vadd.f32 %v3255_v4, %v6764_v52 }
 0x684   : > { %v6817_v32 = vmin.f32 %v3202_v2, 3.0  ;;  %v3172_v45 = vpop.f32.mrb[69].mxu1  ;;  %5299 = vpow2.f32 %v3239_v62  ;;  %v3178_v46 = vadd.f32 %v4906_v40, %v6680_v60  ;;  %v6824_v16 = vadd.f32 %v6740_v44, %v3013_v63 }
 0x685   : > { %v3173_v34 = vadd.f32 %v6680_v60, %v3172_v45  ;;  %v5290_v22 = vpop.eup %5289  ;;  %v6828_v19 = vmin.f32 %v3201_v18, 3.0  ;;  %v3257_v2 = vmul.f32 %v5288_v24, %v6505_v58  ;;  %v3274_v40 = vadd.f32 %v3258_v10, %v6768_v43  ;;  %4914 = vmatprep.mubr.msk.f32.mxu0 %vm1934_vm5, %v3271_v14 }
 0x686   : > { %7372 = vst [vmem:[#allocation57_spill] sm:$0xff] %v6817_v32  ;;  %v3245_v57 = vmul.f32 1.442695, %v6817_v32  ;;  %v5292_v36 = vpop.eup %5291  ;;  %v3204_v53 = vmax.f32 %v3178_v46, -5.0  ;;  %v4871_v62 = vpop.f32.mrb[54].mxu0  ;;  %v3260_v63 = vmul.f32 %v5290_v22, %v6535_v49  ;;  %4915 = vmatmul.mubr.msk.f32.vlgmr.msra.gmra.mrb[56].mxu0 %vm1934_vm5, %v3272_v5 }
 0x687   : > { %v3203_v26 = vmax.f32 %v3173_v34, -5.0  ;;  %v4909_v17 = vpop.f32.mrb[70].mxu1  ;;  %v3243_v45 = vmul.f32 1.442695, %v6828_v19  ;;  %v6837_v18 = vadd.f32 %v4871_v62, %v6740_v44  ;;  %v3023_v58 = vpop.f32.mrb[55].mxu0  ;;  %v3273_v46 = vadd.f32 %v3257_v2, %v6771_v41 }
 0x688   : > { %5301 = vpow2.f32 %v3245_v57  ;;  %v3188_v52 = vadd.f32 %v4909_v17, %v6680_v60  ;;  %v3182_v24 = vpop.f32.mrb[71].mxu1  ;;  %v6840_v4 = vmin.f32 %v3204_v53, 3.0  ;;  %v6846_v49 = vadd.f32 %v6740_v44, %v3023_v58 }
 0x689   : > { %v6842_v34 = vmin.f32 %v3203_v26, 3.0  ;;  %v3183_v43 = vadd.f32 %v6680_v60, %v3182_v24  ;;  %v5294_v22 = vpop.eup %5293  ;;  %5303 = vpow2.f32 %v3243_v45  ;;  %v3259_v17 = vmul.f32 %v5292_v36, %v6519_v1  ;;  %4917 = vmatprep.mubr.msk.f32.mxu0 %vm1934_vm5, %v3273_v46 }
 0x68a   : > { %v3206_v10 = vmax.f32 %v3188_v52, -5.0  ;;  %v5296_v57 = vpop.eup %5295  ;;  %v3249_v53 = vmul.f32 1.442695, %v6840_v4  ;;  %v3276_v5 = vadd.f32 %v3260_v63, %v6775_v47  ;;  %v3304_v44 = vsub.f32 %v3288_v38, %v6688_v59  ;;  %4918 = vmatmul.mubr.msk.f32.gmra.mrb[58].mxu0 %vm1934_vm5, %v3274_v40 }
 0x68b   : > { %v3247_v26 = vmul.f32 1.442695, %v6842_v34  ;;  %v3205_v62 = vmax.f32 %v3183_v43, -5.0  ;;  %v3275_v60 = vadd.f32 %v3259_v17, %v6781_v9  ;;  %v3287_v45 = vmul.f32 %v3271_v14, %v3271_v14 }
 0x68c   : > { %v6854_v32 = vmin.f32 %v3206_v10, 3.0  ;;  %5305 = vpow2.f32 %v3249_v53  ;;  %v3261_v1 = vmul.f32 %v5296_v57, %v6531_v61  ;;  %v3262_v2 = vmul.f32 %v5294_v22, %v6554_v13  ;;  %v7373_v13 = vld [vmem:[#allocation33_spill] sm:$0xff] }
 0x68d   : > { %v6859_v41 = vmin.f32 %v3205_v62, 3.0  ;;  %v5298_v36 = vpop.eup %5297  ;;  %5307 = vpow2.f32 %v3247_v26  ;;  %4920 = vmatprep.mubr.msk.f32.mxu0 %vm1934_vm5, %v3275_v60  ;;  %v3320_v63 = vmul.f32 0.5, %v3304_v44  ;;  %v3303_v9 = vsub.f32 %v3287_v45, %v6691_v3 }
 0x68e   : > { %v3253_v47 = vmul.f32 1.442695, %v6854_v32  ;;  %v5300_v59 = vpop.eup %5299  ;;  %v3277_v14 = vadd.f32 %v3261_v1, %v6791_v21  ;;  %v6870_v52 = vadd.f32 %v3262_v2, %v6787_v12  ;;  %v3289_v61 = vmul.f32 %v3273_v46, %v3273_v46  ;;  %4921 = vmatmul.mubr.msk.f32.gmra.mrb[60].mxu0 %vm1934_vm5, %v3276_v5  ;;  %v7374_v12 = vld [vmem:[#allocation34_spill] sm:$0xff] }
 0x68f   : > { %v3251_v38 = vmul.f32 1.442695, %v6859_v41  ;;  %v3336_v58 = vsub.f32 %v3320_v63, %v7373_v13  ;;  %v3319_v24 = vmul.f32 0.5, %v3303_v9  ;;  %v3263_v43 = vmul.f32 %v5300_v59, %v6551_v39  ;;  %v7376_v63 = vld [vmem:[#allocation38_spill] sm:$0xff] }
 0x690   : > { %5309 = vpow2.f32 %v3253_v47  ;;  %v3305_v3 = vsub.f32 %v3289_v61, %v6700_v27  ;;  %v3264_v22 = vmul.f32 %v5298_v36, %v6566_v50  ;;  %v3291_v10 = vmul.f32 %v3275_v60, %v3275_v60  ;;  %4923 = vmatprep.mubr.msk.f32.mxu0 %vm1934_vm5, %v3277_v14 }
 0x691   : > { %5311 = vpow2.f32 %v3251_v38  ;;  %v3352_v21 = vsub.f32 %v3336_v58, %v6693_v54  ;;  %v3335_v57 = vsub.f32 %v3319_v24, %v7374_v12  ;;  %v3279_v46 = vadd.f32 %v3263_v43, %v6801_v35  ;;  %v7375_v35 = vld [vmem:[#allocation36_spill] sm:$0xff]  ;;  %v7379_v12 = vld [vmem:[#allocation37_spill] sm:$0xff] }
 0x692   : > { %v5302_v17 = vpop.eup %5301  ;;  %v3290_v53 = vmul.f32 %v3274_v40, %v3274_v40  ;;  %v3321_v26 = vmul.f32 0.5, %v3305_v3  ;;  %v3280_v39 = vadd.f32 %v3264_v22, %v6796_v0  ;;  %v3307_v62 = vsub.f32 %v3291_v10, %v6709_v20  ;;  %4924 = vmatmul.mubr.msk.f32.gmra.mrb[62].mxu0 %vm1934_vm5, %v6870_v52  ;;  %v7378_v3 = vld [vmem:[#allocation40_spill] sm:$0xff] }
 0x693   : > { %v3266_v27 = vmul.f32 %v5302_v17, %v6580_v15  ;;  %v5304_v44 = vpop.eup %5303  ;;  %v3370_v50 = vsel %vm1934_vm5, %v3352_v21, 0.0  ;;  %v3351_v60 = vsub.f32 %v3335_v57, %v6702_v29  ;;  %v3293_v45 = vmul.f32 %v3277_v14, %v3277_v14  ;;  %4926 = vmatprep.mubr.msk.f32.mxu0 %vm1934_vm5, %v3279_v46  ;;  %v7377_v14 = vld [vmem:[#allocation35_spill] sm:$0xff] }
 0x694   : > { %v3306_v54 = vsub.f32 %v3290_v53, %v6697_v25  ;;  %3371 = vadd.xlane.f32.xlu1 %v3370_v50  ;;  %v3337_v40 = vsub.f32 %v3321_v26, %v7375_v35  ;;  %v3323_v1 = vmul.f32 0.5, %v3307_v62  ;;  %v3265_v0 = vmul.f32 %v5304_v44, %v6568_v55  ;;  %v7382_v44 = vld [vmem:[#allocation53_spill] sm:$0xff] }
 0x695   : > { %v3282_v20 = vadd.f32 %v3266_v27, %v6807_v37  ;;  %v3367_v15 = vsel %vm1934_vm5, %v3351_v60, 0.0  ;;  %v3309_v29 = vsub.f32 %v3293_v45, %v6716_v23  ;;  %v3292_v25 = vmul.f32 %v3276_v5, %v3276_v5 }
 0x696   : > { %v3322_v2 = vmul.f32 0.5, %v3306_v54  ;;  %v5306_v36 = vpop.eup %5305  ;;  %3368 = vadd.xlane.f32.xlu0 %v3367_v15  ;;  %v3353_v47 = vsub.f32 %v3337_v40, %v6728_v33  ;;  %v3339_v9 = vsub.f32 %v3323_v1, %v7376_v63  ;;  %v3281_v59 = vadd.f32 %v3265_v0, %v6814_v30  ;;  %4927 = vmatmul.mubr.msk.f32.gmra.mrb[64].mxu0 %vm1934_vm5, %v3280_v39  ;;  %v7384_v40 = vld [vmem:[#allocation52_spill] sm:$0xff]  ;;  %v7385_v0 = vld [vmem:[#allocation50_spill] sm:$0xff] }
 0x697   : > { %v3295_v38 = vmul.f32 %v3279_v46, %v3279_v46  ;;  %v5308_v55 = vpop.eup %5307  ;;  %v3325_v61 = vmul.f32 0.5, %v3309_v29  ;;  %v3308_v13 = vsub.f32 %v3292_v25, %v6706_v31  ;;  %v3268_v58 = vmul.f32 %v5306_v36, %v6596_v48  ;;  %v7387_v63 = vld [vmem:[#allocation30_spill] sm:$0xff] }
 0x698   : > { %v3338_v37 = vsub.f32 %v3322_v2, %v7377_v14  ;;  %v3373_v23 = vsel %vm1934_vm5, %v3353_v47, 0.0  ;;  %v3355_v5 = vsub.f32 %v3339_v9, %v6759_v6  ;;  %v3267_v33 = vmul.f32 %v5308_v55, %v6582_v51  ;;  %4929 = vmatprep.mubr.msk.f32.mxu0 %vm1934_vm5, %v3281_v59  ;;  %v7389_v14 = vld [vmem:[#allocation54_spill] sm:$0xff] }
 0x699   : > { %v3311_v24 = vsub.f32 %v3295_v38, %v6726_v28  ;;  %v3341_v22 = vsub.f32 %v3325_v61, %v7378_v3  ;;  %v3324_v31 = vmul.f32 0.5, %v3308_v13  ;;  %v3284_v48 = vadd.f32 %v3268_v58, %v6820_v56  ;;  %v7380_v56 = vld [vmem:[#allocation42_spill] sm:$0xff]  ;;  %v7391_v13 = vld [vmem:[#allocation29_spill] sm:$0xff] }
 0x69a   : > { %v5310_v30 = vpop.eup %5309  ;;  %v3354_v43 = vsub.f32 %v3338_v37, %v6722_v8  ;;  %3374 = vadd.xlane.f32.xlu0 %v3373_v23  ;;  %v3379_v17 = vsel %vm1934_vm5, %v3355_v5, 0.0  ;;  %v3283_v6 = vadd.f32 %v3267_v33, %v6824_v16  ;;  %v3294_v51 = vmul.f32 %v6870_v52, %v6870_v52  ;;  %4930 = vmatmul.mubr.msk.f32.gmra.mrb[66].mxu0 %vm1934_vm5, %v3282_v20  ;;  %v7381_v16 = vld [vmem:[#allocation49_spill] sm:$0xff] }
 0x69b   : > { %v5312_v10 = vpop.eup %5311  ;;  %v3327_v21 = vmul.f32 0.5, %v3311_v24  ;;  %3380 = vadd.xlane.f32.xlu1 %v3379_v17  ;;  %v3357_v28 = vsub.f32 %v3341_v22, %v6783_v42  ;;  %v3340_v57 = vsub.f32 %v3324_v31, %v7379_v12  ;;  %v3270_v62 = vmul.f32 %v5310_v30, %v7381_v16  ;;  %v7392_v5 = vld [vmem:[#allocation41_spill] sm:$0xff] }
 0x69c   : > { %v3376_v8 = vsel %vm1934_vm5, %v3354_v43, 0.0  ;;  %v3269_v46 = vmul.f32 %v5312_v10, %v6594_v11  ;;  %v3310_v26 = vsub.f32 %v3294_v51, %v6713_v7  ;;  %v3297_v27 = vmul.f32 %v3281_v59, %v3281_v59  ;;  %4932 = vmatprep.mubr.msk.f32.mxu0 %vm1934_vm5, %v3283_v6  ;;  %v7383_v11 = vld [vmem:[#allocation56_spill] sm:$0xff]  ;;  %v7388_v59 = vld [vmem:[#allocation51_spill] sm:$0xff]  ;;  %v7396_v51 = vld [vmem:[#allocation46_spill] sm:$0xff] }
 0x69d   : > { %v3343_v53 = vsub.f32 %v3327_v21, %v7380_v56  ;;  %v3385_v52 = vsel %vm1934_vm5, %v3357_v28, 0.0  ;;  %v3356_v50 = vsub.f32 %v3340_v57, %v7382_v44  ;;  %v3296_v60 = vmul.f32 %v3280_v39, %v3280_v39  ;;  %v7386_v39 = vld [vmem:[#allocation39_spill] sm:$0xff]  ;;  %v7393_v43 = vld [vmem:[#allocation32_spill] sm:$0xff]  ;;  %v7398_v56 = vld [vmem:[#allocation45_spill] sm:$0xff] }
 0x69e   : > { %v3285_v42 = vadd.f32 %v3269_v46, %v6846_v49  ;;  %3377 = vadd.xlane.f32.xlu0 %v3376_v8  ;;  %v3326_v45 = vmul.f32 0.5, %v3310_v26  ;;  %v3286_v35 = vadd.f32 %v3270_v62, %v6837_v18  ;;  %v3313_v7 = vsub.f32 %v3297_v27, %v7384_v40  ;;  %4933 = vmatmul.mubr.msk.f32.gmra.mrb[68].mxu0 %vm1934_vm5, %v3284_v48  ;;  %v7394_v10 = vld [vmem:[#allocation31_spill] sm:$0xff]  ;;  %v7400_v27 = vld [vmem:[#allocation48_spill] sm:$0xff] }
 0x69f   : > { %v3359_v54 = vsub.f32 %v3343_v53, %v7383_v11  ;;  %3386 = vadd.xlane.f32.xlu1 %v3385_v52  ;;  %v3382_v1 = vsel %vm1934_vm5, %v3356_v50, 0.0  ;;  %v3312_v15 = vsub.f32 %v3296_v60, %v7385_v0  ;;  %v3299_v2 = vmul.f32 %v3283_v6, %v3283_v6  ;;  %v7395_v6 = vld [vmem:[#allocation55_spill] sm:$0xff] }
 0x6a0   : > { %v3298_v29 = vmul.f32 %v3282_v20, %v3282_v20  ;;  %v3342_v25 = vsub.f32 %v3326_v45, %v7386_v39  ;;  %v3329_v36 = vmul.f32 0.5, %v3313_v7  ;;  %v3300_v47 = vmul.f32 %v3284_v48, %v3284_v48  ;;  %4935 = vmatprep.mubr.msk.f32.mxu0 %vm1934_vm5, %v3285_v42  ;;  %v7390_v20 = vld [vmem:[#allocation44_spill] sm:$0xff]  ;;  %v7397_v28 = vld [vmem:[#allocation43_spill] sm:$0xff] }
 0x6a1   : > { %v3391_v49 = vsel %vm1934_vm5, %v3359_v54, 0.0  ;;  %v3328_v18 = vmul.f32 0.5, %v3312_v15  ;;  %v3315_v9 = vsub.f32 %v3299_v2, %v7387_v63  ;;  %v3301_v55 = vmul.f32 %v3285_v42, %v3285_v42  ;;  %v7401_v50 = vld [vmem:[#allocation47_spill] sm:$0xff] }
 0x6a2   : > { %v3314_v38 = vsub.f32 %v3298_v29, %v7388_v59  ;;  %3383 = vadd.xlane.f32.xlu0 %v3382_v1  ;;  %v3358_v37 = vsub.f32 %v3342_v25, %v7389_v14  ;;  %v3345_v61 = vsub.f32 %v3329_v36, %v7390_v20  ;;  %v3316_v58 = vsub.f32 %v3300_v47, %v7391_v13 }
 0x6a3   : > { %v3302_v23 = vmul.f32 %v3286_v35, %v3286_v35  ;;  %3392 = vadd.xlane.f32.xlu1 %v3391_v49  ;;  %v3344_v33 = vsub.f32 %v3328_v18, %v7392_v5  ;;  %v3331_v24 = vmul.f32 0.5, %v3315_v9  ;;  %v3317_v3 = vsub.f32 %v3301_v55, %v7393_v43  ;;  %4936 = vmatmul.mubr.msk.f32.gmra.mrb[70].mxu0 %vm1934_vm5, %v3286_v35 }
 0x6a4   : > { %v3330_v30 = vmul.f32 0.5, %v3314_v38  ;;  %v3388_v22 = vsel %vm1934_vm5, %v3358_v37, 0.0  ;;  %v3361_v31 = vsub.f32 %v3345_v61, %v6828_v19  ;;  %v3332_v48 = vmul.f32 0.5, %v3316_v58  ;;  %v7399_v19 = vld [vmem:[#allocation57_spill] sm:$0xff] }
 0x6a5   : > { %v3318_v17 = vsub.f32 %v3302_v23, %v7394_v10  ;;  %v3360_v21 = vsub.f32 %v3344_v33, %v7395_v6  ;;  %v3347_v8 = vsub.f32 %v3331_v24, %v7396_v51  ;;  %v3333_v57 = vmul.f32 0.5, %v3317_v3  ;;  %v4304_v6 = vld [vmem:[%s7402_s3] ss:$0 sm:$0xff] }
 0x6a6   : > { %v3346_v12 = vsub.f32 %v3330_v30, %v7397_v28  ;;  %3389 = vadd.xlane.f32.xlu0 %v3388_v22  ;;  %v3397_v46 = vsel %vm1934_vm5, %v3361_v31, 0.0  ;;  %v3348_v53 = vsub.f32 %v3332_v48, %v7398_v56 }
 0x6a7   : > { %v3334_v26 = vmul.f32 0.5, %v3318_v17  ;;  %3398 = vadd.xlane.f32.xlu1 %v3397_v46  ;;  %v3363_v16 = vsub.f32 %v3347_v8, %v6842_v34  ;;  %v3349_v52 = vsub.f32 %v3333_v57, %v7400_v27  ;;  %v3394_v60 = vsel %vm1934_vm5, %v3360_v21, 0.0 }
 0x6a8   : > { %v3362_v62 = vsub.f32 %v3346_v12, %v7399_v19  ;;  %v3364_v44 = vsub.f32 %v3348_v53, %v6840_v4 }
 0x6a9   : > { %v3350_v42 = vsub.f32 %v3334_v26, %v7401_v50  ;;  %v3403_v11 = vsel %vm1934_vm5, %v3363_v16, 0.0  ;;  %v3365_v54 = vsub.f32 %v3349_v52, %v6859_v41 }
 0x6aa   : > { %3395 = vadd.xlane.f32.xlu0 %v3394_v60  ;;  %v3400_v35 = vsel %vm1934_vm5, %v3362_v62, 0.0  ;;  %v3406_v4 = vsel %vm1934_vm5, %v3364_v44, 0.0 }
 0x6ab   : > { %v3366_v45 = vsub.f32 %v3350_v42, %v6854_v32  ;;  %3404 = vadd.xlane.f32.xlu1 %v3403_v11  ;;  %v3409_v34 = vsel %vm1934_vm5, %v3365_v54, 0.0 }
 0x6ad   : > { %v3412_v40 = vsel %vm1934_vm5, %v3366_v45, 0.0 }
 0x6ae   : > { %3401 = vadd.xlane.f32.xlu0 %v3400_v35 }
 0x6af   : > { %3410 = vadd.xlane.f32.xlu1 %v3409_v34 }
 0x6b2   : > { %3407 = vadd.xlane.f32.xlu0 %v3406_v4 }
 0x6b6   : > { %3413 = vadd.xlane.f32.xlu0 %v3412_v40 }
 0x721   : > { %v3372_v1 = vpop.xlane.xlu1 %3371 }
 0x723   : > { %v3369_v7 = vpop.xlane.xlu0 %3368 }
 0x724   : > { %v3415_v41 = vadd.f32 %v3372_v1, %v3369_v7 }
 0x727   : > { %v3375_v0 = vpop.xlane.xlu0 %3374 }
 0x728   : > { %v3381_v15 = vpop.xlane.xlu1 %3380  ;;  %v3416_v2 = vadd.f32 %v3415_v41, %v3375_v0 }
 0x72b   : > { %v3378_v32 = vpop.xlane.xlu0 %3377 }
 0x72c   : > { %v3417_v29 = vadd.f32 %v3416_v2, %v3378_v32  ;;  %v3387_v49 = vpop.xlane.xlu1 %3386 }
 0x72e   : > { %v3418_v39 = vadd.f32 %v3417_v29, %v3381_v15 }
 0x72f   : > { %v3384_v25 = vpop.xlane.xlu0 %3383 }
 0x730   : > { %v3419_v36 = vadd.f32 %v3418_v39, %v3384_v25  ;;  %v3393_v47 = vpop.xlane.xlu1 %3392 }
 0x732   : > { %v3420_v18 = vadd.f32 %v3419_v36, %v3387_v49 }
 0x733   : > { %v3390_v63 = vpop.xlane.xlu0 %3389 }
 0x734   : > { %v3421_v9 = vadd.f32 %v3420_v18, %v3390_v63  ;;  %v3399_v59 = vpop.xlane.xlu1 %3398 }
 0x736   : > { %v3422_v38 = vadd.f32 %v3421_v9, %v3393_v47 }
 0x737   : > { %v3396_v55 = vpop.xlane.xlu0 %3395 }
 0x738   : > { %v3423_v14 = vadd.f32 %v3422_v38, %v3396_v55  ;;  %v3405_v20 = vpop.xlane.xlu1 %3404 }
 0x73a   : > { %v3424_v37 = vadd.f32 %v3423_v14, %v3399_v59 }
 0x73b   : > { %v3402_v61 = vpop.xlane.xlu0 %3401 }
 0x73c   : > { %v3425_v13 = vadd.f32 %v3424_v37, %v3402_v61  ;;  %v3411_v33 = vpop.xlane.xlu1 %3410 }
 0x73e   : > { %v3426_v58 = vadd.f32 %v3425_v13, %v3405_v20 }
 0x73f   : > { %v3408_v23 = vpop.xlane.xlu0 %3407 }
 0x740   : > { %v3427_v5 = vadd.f32 %v3426_v58, %v3408_v23 }
 0x742   : > { %v3428_v24 = vadd.f32 %v3427_v5, %v3411_v33 }
 0x743   : > { %v3414_v30 = vpop.xlane.xlu0 %3413 }
 0x744   : > { %v3429_v43 = vadd.f32 %v3428_v24, %v3414_v30 }
 0x746   : > { %v3430_v3 = vrot.slane %v3429_v43, 4 }
 0x748   : > { %v3431_v22 = vadd.f32 %v3430_v3, %v3429_v43 }
 0x74a   : > { %v3432_v31 = vrot.slane %v3431_v22, 2 }
 0x74c   : > { %v3433_v48 = vadd.f32 %v3432_v31, %v3431_v22 }
 0x74e   : > { %v3434_v10 = vrot.slane %v3433_v48, 1 }
 0x750   : > { %v3435_v17 = vadd.f32 %v3434_v10, %v3433_v48 }
 0x752   : > { %3436 = vst [vmem:[%s5739_s6] sm:$0x1] %v3435_v17 }
 0x759   : > { %v4916_v21 = vpop.f32.mrb[56].mxu0 }
 0x75a   : > { %v3566_v51 = vadd.f32 %v4916_v21, %v4304_v6  ;;  %v3560_v8 = vpop.f32.mrb[57].mxu0 }
 0x75b   : > { %v3561_v28 = vadd.f32 %v4304_v6, %v3560_v8 }
 0x75c   : > { %v3640_v12 = vmax.f32 %v3566_v51, 0.0 }
 0x75d   : > { %v3639_v57 = vmax.f32 %v3561_v28, 0.0  ;;  %v4919_v46 = vpop.f32.mrb[58].mxu0 }
 0x75e   : > { %3656 = vst.msk [vmem:[#allocation4 + $0x8] sm:$0xff] %vm1571_vm4, %v3640_v12  ;;  %v3576_v56 = vadd.f32 %v4919_v46, %v4304_v6  ;;  %v3570_v53 = vpop.f32.mrb[59].mxu0 }
 0x75f   : > { %3655 = vst.msk [vmem:[#allocation4] sm:$0xff] %vm1571_vm4, %v3639_v57  ;;  %v3571_v26 = vadd.f32 %v4304_v6, %v3570_v53 }
 0x760   : > { %v3642_v16 = vmax.f32 %v3576_v56, 0.0 }
 0x761   : > { %v3641_v19 = vmax.f32 %v3571_v26, 0.0  ;;  %v4922_v62 = vpop.f32.mrb[60].mxu0 }
 0x762   : > { %3658 = vst.msk [vmem:[#allocation4 + $0x18] sm:$0xff] %vm1571_vm4, %v3642_v16  ;;  %v3586_v27 = vadd.f32 %v4922_v62, %v4304_v6  ;;  %v3580_v52 = vpop.f32.mrb[61].mxu0 }
 0x763   : > { %3657 = vst.msk [vmem:[#allocation4 + $0x10] sm:$0xff] %vm1571_vm4, %v3641_v19  ;;  %v3581_v44 = vadd.f32 %v4304_v6, %v3580_v52 }
 0x764   : > { %v3644_v50 = vmax.f32 %v3586_v27, 0.0 }
 0x765   : > { %v3643_v42 = vmax.f32 %v3581_v44, 0.0  ;;  %v4925_v60 = vpop.f32.mrb[62].mxu0 }
 0x766   : > { %3660 = vst.msk [vmem:[#allocation4 + $0x28] sm:$0xff] %vm1571_vm4, %v3644_v50  ;;  %v3596_v11 = vadd.f32 %v4925_v60, %v4304_v6  ;;  %v3590_v54 = vpop.f32.mrb[63].mxu0 }
 0x767   : > { %3659 = vst.msk [vmem:[#allocation4 + $0x20] sm:$0xff] %vm1571_vm4, %v3643_v42  ;;  %v3591_v45 = vadd.f32 %v4304_v6, %v3590_v54 }
 0x768   : > { %v3646_v34 = vmax.f32 %v3596_v11, 0.0 }
 0x769   : > { %v3645_v35 = vmax.f32 %v3591_v45, 0.0  ;;  %v4928_v4 = vpop.f32.mrb[64].mxu0 }
 0x76a   : > { %3662 = vst.msk [vmem:[#allocation4 + $0x38] sm:$0xff] %vm1571_vm4, %v3646_v34  ;;  %v3606_v40 = vadd.f32 %v4928_v4, %v4304_v6  ;;  %v3600_v7 = vpop.f32.mrb[65].mxu0 }
 0x76b   : > { %3661 = vst.msk [vmem:[#allocation4 + $0x30] sm:$0xff] %vm1571_vm4, %v3645_v35  ;;  %v3601_v1 = vadd.f32 %v4304_v6, %v3600_v7 }
 0x76c   : > { %v3648_v0 = vmax.f32 %v3606_v40, 0.0 }
 0x76d   : > { %v3647_v41 = vmax.f32 %v3601_v1, 0.0  ;;  %v4931_v15 = vpop.f32.mrb[66].mxu0 }
 0x76e   : > { %3664 = vst.msk [vmem:[#allocation4 + $0x48] sm:$0xff] %vm1571_vm4, %v3648_v0  ;;  %v3616_v2 = vadd.f32 %v4931_v15, %v4304_v6  ;;  %v3610_v32 = vpop.f32.mrb[67].mxu0 }
 0x76f   : > { %3663 = vst.msk [vmem:[#allocation4 + $0x40] sm:$0xff] %vm1571_vm4, %v3647_v41  ;;  %v3611_v29 = vadd.f32 %v4304_v6, %v3610_v32 }
 0x770   : > { %v3650_v49 = vmax.f32 %v3616_v2, 0.0 }
 0x771   : > { %v3649_v39 = vmax.f32 %v3611_v29, 0.0  ;;  %v4934_v25 = vpop.f32.mrb[68].mxu0 }
 0x772   : > { %3666 = vst.msk [vmem:[#allocation4 + $0x58] sm:$0xff] %vm1571_vm4, %v3650_v49  ;;  %v3626_v36 = vadd.f32 %v4934_v25, %v4304_v6  ;;  %v3620_v47 = vpop.f32.mrb[69].mxu0 }
 0x773   : > { %3665 = vst.msk [vmem:[#allocation4 + $0x50] sm:$0xff] %vm1571_vm4, %v3649_v39  ;;  %v3621_v18 = vadd.f32 %v4304_v6, %v3620_v47 }
 0x774   : > { %v3652_v63 = vmax.f32 %v3626_v36, 0.0 }
 0x775   : > { %v3651_v9 = vmax.f32 %v3621_v18, 0.0 }
 0x776   : > { %v4937_v59 = vpop.f32.mrb[70].mxu0  ;;  %3668 = vst.msk [vmem:[#allocation4 + $0x68] sm:$0xff] %vm1571_vm4, %v3652_v63 }
 0x777   : > { %v3636_v38 = vadd.f32 %v4937_v59, %v4304_v6  ;;  %v3630_v55 = vpop.f32.mrb[71].mxu0  ;;  %3667 = vst.msk [vmem:[#allocation4 + $0x60] sm:$0xff] %vm1571_vm4, %v3651_v9 }
 0x778   : > { %v3631_v14 = vadd.f32 %v4304_v6, %v3630_v55 }
 0x779   : > { %v3654_v37 = vmax.f32 %v3636_v38, 0.0 }
 0x77a   : > { %v3653_v20 = vmax.f32 %v3631_v14, 0.0 }
 0x77b   : > { %3670 = vst.msk [vmem:[#allocation4 + $0x78] sm:$0xff] %vm1571_vm4, %v3654_v37 }
 0x77c   : > { %3669 = vst.msk [vmem:[#allocation4 + $0x70] sm:$0xff] %vm1571_vm4, %v3653_v20 }
 0x77d PF: > { %p4321_p13 = scmp.lt.s32.totalorder %s5447_s29, 1 }
 0x77e   : > { %v3692_v61 = vld [vmem:[%s5733_s23 + $0x8] sm:$0xff] (!%p4321_p13)  ;;  %v3694_v13 = vld [vmem:[%s5733_s23 + $0x18] sm:$0xff] (!%p4321_p13)  ;;  %v3691_v58 = vld [vmem:[%s5733_s23] sm:$0xff] (!%p4321_p13)  ;;  %v5467_v30 = vmov (!%p4321_p13), 0.0   ;;  %vm3719_vm7 = vcmask (!%p4321_p13), 523264   ;;  %v3709_v40 = vlaneseq (!%p4321_p13)  ;;  %s7403_s7 = scalar_lea.vmem (!%p4321_p13), %s7230_s22, %s5723_s27 }
 0x77f   : > { %3674 = sbr.rel (%p4321_p13) target bundleno = 2181 (0x885), region = 128  ;;  %v5062_v23 = vpack.c.bf16 (!%p4321_p13), %v3694_v13, %v3692_v61  ;;  %v3693_v5 = vld [vmem:[%s5733_s23 + $0x10] sm:$0xff] (!%p4321_p13)  ;;  %v3696_v33 = vld [vmem:[%s5733_s23 + $0x28] sm:$0xff] (!%p4321_p13)  ;;  %v3698_v24 = vld [vmem:[%s5733_s23 + $0x38] sm:$0xff] (!%p4321_p13)  ;;  %3832 = vmatprep.mubr.f32.mxu0 (!%p4321_p13), %v5467_v30  ;;  %3880 = vmatprep.mubr.f32.mxu1 (!%p4321_p13), %v5467_v30 }
 0x780   : > { %v5064_v43 = vpack.c.bf16 (!%p4321_p13), %v3693_v5, %v3691_v58  ;;  %v5066_v3 = vpack.c.bf16 (!%p4321_p13), %v3698_v24, %v3696_v33  ;;  %v3695_v22 = vld [vmem:[%s5733_s23 + $0x20] sm:$0xff] (!%p4321_p13)  ;;  %v3697_v31 = vld [vmem:[%s5733_s23 + $0x30] sm:$0xff] (!%p4321_p13)  ;;  %v3700_v48 = vld [vmem:[%s5733_s23 + $0x48] sm:$0xff] (!%p4321_p13)  ;;  %v3710_v7 = vshrl.u32 (!%p4321_p13), %v3709_v40, 7 }
 0x781   : > { %5063 = vmatprep.subr.bf16.mxu0 (!%p4321_p13), %v5062_v23  ;;  %5102 = vmatprep.subr.bf16.mxu1 (!%p4321_p13), %v5062_v23  ;;  %v3702_v10 = vld [vmem:[%s5733_s23 + $0x58] sm:$0xff] (!%p4321_p13)  ;;  %v5068_v17 = vpack.c.bf16 (!%p4321_p13), %v3697_v31, %v3695_v22  ;;  %v3699_v21 = vld [vmem:[%s5733_s23 + $0x40] sm:$0xff] (!%p4321_p13)  ;;  %v3701_v51 = vld [vmem:[%s5733_s23 + $0x50] sm:$0xff] (!%p4321_p13) }
 0x782   : > { %5065 = vmatpush1.bf16.msra.mxu0 (!%p4321_p13), %v5064_v43  ;;  %5106 = vmatpush1.bf16.msra.mxu1 (!%p4321_p13), %v5064_v43  ;;  %v5070_v6 = vpack.c.bf16 (!%p4321_p13), %v3702_v10, %v3700_v48  ;;  %v3704_v8 = vld [vmem:[%s5733_s23 + $0x68] sm:$0xff] (!%p4321_p13)  ;;  %v3706_v28 = vld [vmem:[%s5733_s23 + $0x78] sm:$0xff] (!%p4321_p13)  ;;  %v5072_v12 = vpack.c.bf16 (!%p4321_p13), %v3701_v51, %v3699_v21  ;;  %v3703_v46 = vld [vmem:[%s5733_s23 + $0x60] sm:$0xff] (!%p4321_p13)  ;;  %v3711_v1 = vsub.s32 (!%p4321_p13), 0, %v3710_v7  ;;  %v3715_v41 = vsub.s32 (!%p4321_p13), 1, %v3710_v7 }
 0x783   : > { %5067 = vmatprep.subr.bf16.mxu0 (!%p4321_p13), %v5066_v3  ;;  %5103 = vmatprep.subr.bf16.mxu1 (!%p4321_p13), %v5066_v3  ;;  %v5074_v57 = vpack.c.bf16 (!%p4321_p13), %v3706_v28, %v3704_v8  ;;  %v3705_v56 = vld [vmem:[%s5733_s23 + $0x70] sm:$0xff] (!%p4321_p13)  ;;  %v3675_v26 = vld [vmem:[#allocation4] sm:$0xff] (!%p4321_p13)  ;;  %v3676_v19 = vld [vmem:[#allocation4 + $0x8] sm:$0xff] (!%p4321_p13) }
 0x784   : > { %v5076_v53 = vpack.c.bf16 (!%p4321_p13), %v3705_v56, %v3703_v46  ;;  %v3683_v16 = vld [vmem:[#allocation4 + $0x40] sm:$0xff] (!%p4321_p13)  ;;  %v3684_v62 = vld [vmem:[#allocation4 + $0x48] sm:$0xff] (!%p4321_p13)  ;;  %v3677_v27 = vld [vmem:[#allocation4 + $0x10] sm:$0xff] (!%p4321_p13) }
 0x785   : > { %v3685_v52 = vld [vmem:[#allocation4 + $0x50] sm:$0xff] (!%p4321_p13)  ;;  %v3678_v44 = vld [vmem:[#allocation4 + $0x18] sm:$0xff] (!%p4321_p13)  ;;  %v3679_v42 = vld [vmem:[#allocation4 + $0x20] sm:$0xff] (!%p4321_p13) }
 0x786   : > { %5069 = vmatpush1.bf16.msra.mxu0 %v5068_v17  ;;  %5107 = vmatpush1.bf16.msra.mxu1 %v5068_v17  ;;  %v3686_v50 = vld [vmem:[#allocation4 + $0x58] sm:$0xff]  ;;  %v3687_v60 = vld [vmem:[#allocation4 + $0x60] sm:$0xff]  ;;  %v3680_v11 = vld [vmem:[#allocation4 + $0x28] sm:$0xff] }
 0x787   : > { %5071 = vmatprep.subr.bf16.mxu0 %v5070_v6  ;;  %5104 = vmatprep.subr.bf16.mxu1 %v5070_v6  ;;  %v3688_v54 = vld [vmem:[#allocation4 + $0x68] sm:$0xff]  ;;  %v3681_v45 = vld [vmem:[#allocation4 + $0x30] sm:$0xff]  ;;  %v3682_v35 = vld [vmem:[#allocation4 + $0x38] sm:$0xff] }
 0x788   : > { %v3689_v34 = vld [vmem:[#allocation4 + $0x70] sm:$0xff]  ;;  %v3690_v4 = vld [vmem:[#allocation4 + $0x78] sm:$0xff]  ;;  %v3707_v0 = vld [vmem:[%s7403_s7] sm:$0x3] }
 0x789   : > { %v7038_v15 = vrot.slane %v3707_v0, %v3711_v1  ;;  %v7040_v2 = vrot.slane %v3707_v0, %v3715_v41 }
 0x78a   : > { %5073 = vmatpush1.bf16.msra.mxu0 %v5072_v12  ;;  %5108 = vmatpush1.bf16.msra.mxu1 %v5072_v12 }
 0x78b   : > { %5075 = vmatprep.subr.bf16.mxu0 %v5074_v57  ;;  %5105 = vmatprep.subr.bf16.mxu1 %v5074_v57 }
 0x78e   : > { %5077 = vmatpush1.bf16.msra.mxu0 %v5076_v53  ;;  %5109 = vmatpush1.bf16.msra.mxu1 %v5076_v53 }
 0x791   : > { %4322 = vmatmul.mubr.msk.f32.vlgmr.msra.gmra.mrb[0].mxu0 %vm3719_vm7, %v3675_v26  ;;  %4330 = vmatmul.mubr.msk.f32.vlgmr.msra.gmra.mrb[0].mxu1 %vm3719_vm7, %v3683_v16 }
 0x792   : > { %3838 = vmatprep.mubr.f32.mxu0 %v5467_v30  ;;  %3886 = vmatprep.mubr.f32.mxu1 %v5467_v30 }
 0x795   : > { %4323 = vmatmul.mubr.msk.f32.gmra.mrb[2].mxu0 %vm3719_vm7, %v3676_v19  ;;  %4331 = vmatmul.mubr.msk.f32.gmra.mrb[2].mxu1 %vm3719_vm7, %v3684_v62 }
 0x796   : > { %3844 = vmatprep.mubr.f32.mxu0 %v5467_v30  ;;  %3892 = vmatprep.mubr.f32.mxu1 %v5467_v30 }
 0x799   : > { %4324 = vmatmul.mubr.msk.f32.gmra.mrb[4].mxu0 %vm3719_vm7, %v3677_v27  ;;  %4332 = vmatmul.mubr.msk.f32.gmra.mrb[4].mxu1 %vm3719_vm7, %v3685_v52 }
 0x79a   : > { %3850 = vmatprep.mubr.f32.mxu0 %v5467_v30  ;;  %3898 = vmatprep.mubr.f32.mxu1 %v5467_v30 }
 0x79d   : > { %4325 = vmatmul.mubr.msk.f32.gmra.mrb[6].mxu0 %vm3719_vm7, %v3678_v44  ;;  %4333 = vmatmul.mubr.msk.f32.gmra.mrb[6].mxu1 %vm3719_vm7, %v3686_v50 }
 0x79e   : > { %3856 = vmatprep.mubr.f32.mxu0 %v5467_v30  ;;  %3904 = vmatprep.mubr.f32.mxu1 %v5467_v30 }
 0x7a1   : > { %4326 = vmatmul.mubr.msk.f32.gmra.mrb[8].mxu0 %vm3719_vm7, %v3679_v42  ;;  %4334 = vmatmul.mubr.msk.f32.gmra.mrb[8].mxu1 %vm3719_vm7, %v3687_v60 }
 0x7a2   : > { %3862 = vmatprep.mubr.f32.mxu0 %v5467_v30  ;;  %3910 = vmatprep.mubr.f32.mxu1 %v5467_v30 }
 0x7a5   : > { %4327 = vmatmul.mubr.msk.f32.gmra.mrb[10].mxu0 %vm3719_vm7, %v3680_v11  ;;  %4335 = vmatmul.mubr.msk.f32.gmra.mrb[10].mxu1 %vm3719_vm7, %v3688_v54 }
 0x7a6   : > { %3868 = vmatprep.mubr.f32.mxu0 %v5467_v30  ;;  %3916 = vmatprep.mubr.f32.mxu1 %v5467_v30 }
 0x7a9   : > { %4328 = vmatmul.mubr.msk.f32.gmra.mrb[12].mxu0 %vm3719_vm7, %v3681_v45  ;;  %4336 = vmatmul.mubr.msk.f32.gmra.mrb[12].mxu1 %vm3719_vm7, %v3689_v34 }
 0x7aa   : > { %3874 = vmatprep.mubr.f32.mxu0 %v5467_v30  ;;  %3922 = vmatprep.mubr.f32.mxu1 %v5467_v30 }
 0x7ad   : > { %4329 = vmatmul.mubr.msk.f32.gmra.mrb[14].mxu0 %vm3719_vm7, %v3682_v35  ;;  %4337 = vmatmul.mubr.msk.f32.gmra.mrb[14].mxu1 %vm3719_vm7, %v3690_v4 }
 0x864   : > { %v3834_v32 = vpop.f32.mrb[0].mxu0  ;;  %v3882_v29 = vpop.f32.mrb[0].mxu1 }
 0x865   : > { %v3835_v49 = vadd.f32 %v3834_v32, %v7038_v15  ;;  %v3883_v39 = vadd.f32 %v3882_v29, %v7038_v15  ;;  %v3836_v25 = vpop.f32.mrb[1].mxu0  ;;  %v3884_v36 = vpop.f32.mrb[1].mxu1 }
 0x866   : > { %v3837_v47 = vadd.f32 %v3836_v25, %v7040_v2  ;;  %v3885_v18 = vadd.f32 %v3884_v36, %v7040_v2 }
 0x867   : > { %3929 = vst [vmem:[%s5735_s5] sm:$0xff] %v3835_v49  ;;  %3945 = vst [vmem:[%s5735_s5 + $0x80] sm:$0xff] %v3883_v39 }
 0x868   : > { %3930 = vst [vmem:[%s5735_s5 + $0x8] sm:$0xff] %v3837_v47  ;;  %3946 = vst [vmem:[%s5735_s5 + $0x88] sm:$0xff] %v3885_v18  ;;  %v3840_v63 = vpop.f32.mrb[2].mxu0  ;;  %v3888_v9 = vpop.f32.mrb[2].mxu1 }
 0x869   : > { %v3841_v59 = vadd.f32 %v3840_v63, %v7038_v15  ;;  %v3889_v38 = vadd.f32 %v3888_v9, %v7038_v15  ;;  %v3842_v55 = vpop.f32.mrb[3].mxu0  ;;  %v3890_v14 = vpop.f32.mrb[3].mxu1 }
 0x86a   : > { %v3843_v37 = vadd.f32 %v3842_v55, %v7040_v2  ;;  %v3891_v20 = vadd.f32 %v3890_v14, %v7040_v2 }
 0x86b   : > { %3931 = vst [vmem:[%s5735_s5 + $0x10] sm:$0xff] %v3841_v59  ;;  %3947 = vst [vmem:[%s5735_s5 + $0x90] sm:$0xff] %v3889_v38 }
 0x86c   : > { %3932 = vst [vmem:[%s5735_s5 + $0x18] sm:$0xff] %v3843_v37  ;;  %3948 = vst [vmem:[%s5735_s5 + $0x98] sm:$0xff] %v3891_v20  ;;  %v3846_v61 = vpop.f32.mrb[4].mxu0  ;;  %v3894_v13 = vpop.f32.mrb[4].mxu1 }
 0x86d   : > { %v3847_v58 = vadd.f32 %v3846_v61, %v7038_v15  ;;  %v3895_v23 = vadd.f32 %v3894_v13, %v7038_v15  ;;  %v3848_v5 = vpop.f32.mrb[5].mxu0  ;;  %v3896_v33 = vpop.f32.mrb[5].mxu1 }
 0x86e   : > { %v3849_v24 = vadd.f32 %v3848_v5, %v7040_v2  ;;  %v3897_v30 = vadd.f32 %v3896_v33, %v7040_v2 }
 0x86f   : > { %3933 = vst [vmem:[%s5735_s5 + $0x20] sm:$0xff] %v3847_v58  ;;  %3949 = vst [vmem:[%s5735_s5 + $0xa0] sm:$0xff] %v3895_v23 }
 0x870   : > { %3934 = vst [vmem:[%s5735_s5 + $0x28] sm:$0xff] %v3849_v24  ;;  %3950 = vst [vmem:[%s5735_s5 + $0xa8] sm:$0xff] %v3897_v30  ;;  %v3852_v43 = vpop.f32.mrb[6].mxu0  ;;  %v3900_v3 = vpop.f32.mrb[6].mxu1 }
 0x871   : > { %v3853_v22 = vadd.f32 %v3852_v43, %v7038_v15  ;;  %v3901_v31 = vadd.f32 %v3900_v3, %v7038_v15  ;;  %v3854_v48 = vpop.f32.mrb[7].mxu0  ;;  %v3902_v10 = vpop.f32.mrb[7].mxu1 }
 0x872   : > { %v3855_v17 = vadd.f32 %v3854_v48, %v7040_v2  ;;  %v3903_v6 = vadd.f32 %v3902_v10, %v7040_v2 }
 0x873   : > { %3935 = vst [vmem:[%s5735_s5 + $0x30] sm:$0xff] %v3853_v22  ;;  %3951 = vst [vmem:[%s5735_s5 + $0xb0] sm:$0xff] %v3901_v31 }
 0x874   : > { %3936 = vst [vmem:[%s5735_s5 + $0x38] sm:$0xff] %v3855_v17  ;;  %3952 = vst [vmem:[%s5735_s5 + $0xb8] sm:$0xff] %v3903_v6  ;;  %v3858_v21 = vpop.f32.mrb[8].mxu0  ;;  %v3906_v51 = vpop.f32.mrb[8].mxu1 }
 0x875   : > { %v3859_v8 = vadd.f32 %v3858_v21, %v7038_v15  ;;  %v3907_v28 = vadd.f32 %v3906_v51, %v7038_v15  ;;  %v3860_v12 = vpop.f32.mrb[9].mxu0  ;;  %v3908_v57 = vpop.f32.mrb[9].mxu1 }
 0x876   : > { %v3861_v46 = vadd.f32 %v3860_v12, %v7040_v2  ;;  %v3909_v56 = vadd.f32 %v3908_v57, %v7040_v2 }
 0x877   : > { %3937 = vst [vmem:[%s5735_s5 + $0x40] sm:$0xff] %v3859_v8  ;;  %3953 = vst [vmem:[%s5735_s5 + $0xc0] sm:$0xff] %v3907_v28 }
 0x878   : > { %3938 = vst [vmem:[%s5735_s5 + $0x48] sm:$0xff] %v3861_v46  ;;  %3954 = vst [vmem:[%s5735_s5 + $0xc8] sm:$0xff] %v3909_v56  ;;  %v3864_v53 = vpop.f32.mrb[10].mxu0  ;;  %v3912_v26 = vpop.f32.mrb[10].mxu1 }
 0x879   : > { %v3865_v16 = vadd.f32 %v3864_v53, %v7038_v15  ;;  %v3913_v19 = vadd.f32 %v3912_v26, %v7038_v15  ;;  %v3866_v62 = vpop.f32.mrb[11].mxu0  ;;  %v3914_v27 = vpop.f32.mrb[11].mxu1 }
 0x87a   : > { %v3867_v52 = vadd.f32 %v3866_v62, %v7040_v2  ;;  %v3915_v44 = vadd.f32 %v3914_v27, %v7040_v2 }
 0x87b   : > { %3939 = vst [vmem:[%s5735_s5 + $0x50] sm:$0xff] %v3865_v16  ;;  %3955 = vst [vmem:[%s5735_s5 + $0xd0] sm:$0xff] %v3913_v19 }
 0x87c   : > { %3940 = vst [vmem:[%s5735_s5 + $0x58] sm:$0xff] %v3867_v52  ;;  %3956 = vst [vmem:[%s5735_s5 + $0xd8] sm:$0xff] %v3915_v44  ;;  %v3870_v50 = vpop.f32.mrb[12].mxu0  ;;  %v3918_v42 = vpop.f32.mrb[12].mxu1 }
 0x87d   : > { %v3871_v60 = vadd.f32 %v3870_v50, %v7038_v15  ;;  %v3919_v11 = vadd.f32 %v3918_v42, %v7038_v15  ;;  %v3872_v54 = vpop.f32.mrb[13].mxu0  ;;  %v3920_v45 = vpop.f32.mrb[13].mxu1 }
 0x87e   : > { %v3873_v34 = vadd.f32 %v3872_v54, %v7040_v2  ;;  %v3921_v35 = vadd.f32 %v3920_v45, %v7040_v2 }
 0x87f   : > { %3941 = vst [vmem:[%s5735_s5 + $0x60] sm:$0xff] %v3871_v60  ;;  %3957 = vst [vmem:[%s5735_s5 + $0xe0] sm:$0xff] %v3919_v11 }
 0x880   : > { %3942 = vst [vmem:[%s5735_s5 + $0x68] sm:$0xff] %v3873_v34  ;;  %3958 = vst [vmem:[%s5735_s5 + $0xe8] sm:$0xff] %v3921_v35  ;;  %v3876_v4 = vpop.f32.mrb[14].mxu0  ;;  %v3924_v40 = vpop.f32.mrb[14].mxu1 }
 0x881   : > { %v3877_v7 = vadd.f32 %v3876_v4, %v7038_v15  ;;  %v3925_v1 = vadd.f32 %v3924_v40, %v7038_v15  ;;  %v3878_v0 = vpop.f32.mrb[15].mxu0  ;;  %v3926_v41 = vpop.f32.mrb[15].mxu1 }
 0x882   : > { %v3879_v32 = vadd.f32 %v3878_v0, %v7040_v2  ;;  %v3927_v29 = vadd.f32 %v3926_v41, %v7040_v2 }
 0x883   : > { %3943 = vst [vmem:[%s5735_s5 + $0x70] sm:$0xff] %v3877_v7  ;;  %3959 = vst [vmem:[%s5735_s5 + $0xf0] sm:$0xff] %v3925_v1 }
 0x884   : > { %3944 = vst [vmem:[%s5735_s5 + $0x78] sm:$0xff] %v3879_v32  ;;  %3960 = vst [vmem:[%s5735_s5 + $0xf8] sm:$0xff] %v3927_v29 }
 0x885 PF: > { %s7404_s27 = sld [smem:[#allocation16_spill]]  ;;  %s7405_s20 = sld [smem:[#allocation14_spill]] }
 0x886   : > { %s3985_s30 = sshll.u32 %s5735_s5, 4  ;;  %s7407_s3 = sld [smem:[#allocation74_spill]]  ;;  %s7109_s30 = int_to_ptr.vmem [resolvable:$true] %s3985_s30 }
 0x887   : > { %s5313_s9 = scalar_lea.vmem %s7109_s30, 4096 }
 0x888   : > { %p5314_p1 = scmp.ne.s32.totalorder %s7109_s30, %s5313_s9 }
 0x88a   : > { %p5315_p2 = pnand %p5314_p1, %p5668_p5 }
 0x88b   : > { %s4347_s25 = sshll.u32 %s7404_s27, 5  ;;  %s7409_s7 = sand.u32 1, %s7405_s20  }
 0x88c   : > { %s3982_s8 = sadd.s32 %s4347_s25, %s5719_s4  ;;  %s7408_s23 = smov %s7407_s3 }
 0x88d   : > { %s4343_s18 = sshll.u32 %s3982_s8, 7  ;;  %s7118_s1 = scalar_lea.sflag [#allocation6], %s7409_s7 }
 0x88e   : > { %s7114_s29 = scalar_lea.hbm %s7407_s3, %s4343_s18  ;;  %p5316_p3 = pneg %p5315_p2 }
 0x88f   : > { %s5468_s4 = smov [#allocation5]  }
 0x890   : > { %s5317_s5 = sshll.u32 %s5468_s4, 4  ;;  %s5318_s5 = int_to_ptr.vmem [resolvable:$false] %s5317_s5 }
 0x891   : > { %s5319_s27 = scalar_lea.vmem %s5318_s5, 8192  ;;  %p5320_p4 = scmp.lt.s32.totalorder %s7109_s30, %s5318_s5 }
 0x892   : > { %p5321_p6 = scmp.lt.s32.totalorder %s5319_s27, %s5313_s9 }
 0x894   : > { %p5322_p7 = por %p5321_p6, %p5320_p4 }
 0x896   : > { %p5323_p9 = pnand %p5322_p7, %p5316_p3 }
 0x898   : > { %5326 = shalt.err (!%p5323_p9)
}
 0x899   : > { %s5327_s20 = scalar_lea.hbm %s7114_s29, 4096  ;;  %s5331_s18 = scalar_lea.hbm %s7408_s23, 8192 }
 0x89a   : > { %p5328_p11 = scmp.ne.s32.totalorder %s7114_s29, %s5327_s20  ;;  %p5332_p1 = scmp.lt.u32.totalorder %s7114_s29, %s7408_s23 }
 0x89b   : > { %p5333_p2 = scmp.lt.u32.totalorder %s5331_s18, %s5327_s20  ;;  %p5335_p4 = scmp.lt.u32.totalorder %s5327_s20, %s7114_s29 }
 0x89c   : > { %p5329_p12 = pnand %p5328_p11, %p5668_p5 }
 0x89d   : > { %p5334_p3 = por %p5333_p2, %p5332_p1 }
 0x89e   : > { %p5330_p13 = pneg %p5329_p12 }
 0x89f   : > { %p5336_p6 = por %p5335_p4, %p5334_p3 }
 0x8a1   : > { %p5337_p7 = pnand %p5336_p6, %p5330_p13 }
 0x8a3   : > { %5340 = shalt.err (!%p5337_p7)
}
 0x8a4   : > { %s5469_s9 = smov 256   ;;  %s7410_s3 = sld [smem:[#allocation28_spill]] }
 0x8a5   : > { %s5470_s4 = smov 16   ;;  %s7412_s25 = sld [smem:[#allocation75_spill]] }
 0x8a6   : > { %5110 = dma.vmem_to_hbm [thread:$0]  (%p5668_p5), %s7109_s30, 4096, %s7114_s29, %s7118_s1, %s5469_s9, %s5469_s9, %s5470_s4  }
 0x8a7   : > { %s4001_s20 = sshll.u32 %s5739_s6, 4  ;;  %s7413_s18 = sand.u32 1, %s5427_s26   ;;  %s4002_s20 = int_to_ptr.vmem [resolvable:$true] %s4001_s20 }
 0x8a8   : > { %s3967_s2 = scalar_lea.sflag [#allocation8], %s7413_s18  ;;  %s5341_s28 = scalar_lea.vmem %s4002_s20, 16 }
 0x8a9   : > { %p5342_p9 = scmp.ne.s32.totalorder %s4002_s20, %s5341_s28  ;;  %s5471_s10 = smov [#allocation7]  }
 0x8aa   : > { %s5345_s11 = sshll.u32 %s5471_s10, 4  ;;  %s5346_s11 = int_to_ptr.vmem [resolvable:$false] %s5345_s11 }
 0x8ab   : > { %s7146_s8 = scalar_lea.hbm %s7412_s25, %s7410_s3  ;;  %p5343_p11 = pnand %p5342_p9, %p5685_p10 }
 0x8ac   : > { %s5347_s12 = scalar_lea.vmem %s5346_s11, 32  ;;  %p5348_p13 = scmp.lt.s32.totalorder %s4002_s20, %s5346_s11 }
 0x8ad   : > { %p5344_p12 = pneg %p5343_p11  ;;  %p5349_p5 = scmp.lt.s32.totalorder %s5347_s12, %s5341_s28 }
 0x8af   : > { %p5350_p1 = por %p5349_p5, %p5348_p13 }
 0x8b1   : > { %p5351_p2 = pnand %p5350_p1, %p5344_p12 }
 0x8b3   : > { %5354 = shalt.err (!%p5351_p2)
}
 0x8b4   : > { %s5355_s6 = scalar_lea.hbm %s7146_s8, 16  ;;  %s5359_s10 = scalar_lea.hbm %s7412_s25, 32 }
 0x8b5   : > { %p5356_p3 = scmp.ne.s32.totalorder %s7146_s8, %s5355_s6  ;;  %p5360_p7 = scmp.lt.u32.totalorder %s7146_s8, %s7412_s25 }
 0x8b6   : > { %p5361_p9 = scmp.lt.u32.totalorder %s5359_s10, %s5355_s6  ;;  %p5363_p12 = scmp.lt.u32.totalorder %s5355_s6, %s7146_s8 }
 0x8b7   : > { %p5357_p4 = pnand %p5356_p3, %p5685_p10 }
 0x8b8   : > { %p5362_p11 = por %p5361_p9, %p5360_p7 }
 0x8b9   : > { %p5358_p6 = pneg %p5357_p4 }
 0x8ba   : > { %p5364_p13 = por %p5363_p12, %p5362_p11 }
 0x8bc   : > { %p5365_p5 = pnand %p5364_p13, %p5358_p6 }
 0x8be   : > { %5368 = shalt.err (!%p5365_p5)
}
 0x8bf   : > { %5111 = dma.vmem_to_hbm [thread:$0]  (%p5685_p10), %s4002_s20, 16, %s7146_s8, %s3967_s2  }
 0x8c0 PF: > { %s7414_s12 = sld [smem:[#allocation19_spill]]  ;;  %s7415_s29 = sld [smem:[#allocation13_spill]] }
 0x8c6   : > { %p5121_p1 = scmp.ge.s32.totalorder %s7414_s12, 2  ;;  %s4013_s3 = sand.u32 1, %s7415_s29  }
 0x8c7   : > { %s4014_s4 = scalar_lea.sflag [#allocation6], %s4013_s3 }
 0x8c8   : > { %p5115_p2 = pnand %p5121_p1, %p5676_p8 }
 0x8ca   : > { %5414 = dma.done.wait (!%p5115_p2), %s4014_s4, 4096  }
 0x8cb   : > { %5416 = vsyncadd (!%p5115_p2), %s4014_s4, 4294963200  ;;  %s7417_s5 = sld [smem:[#allocation11_spill]]  ;;  %p5118_p3 = pnand %p5121_p1, %p5693_p0 }
 0x8d1   : > { %s4022_s18 = sand.u32 1, %s7417_s5  }
 0x8d2   : > { %s4023_s28 = scalar_lea.sflag [#allocation8], %s4022_s18 }
 0x8d3   : > { %5418 = dma.done.wait (!%p5118_p3), %s4023_s28, 16  }
 0x8d4   : > { %5420 = vsyncadd (!%p5118_p3), %s4023_s28, 4294967280  ;;  %s41_s3 = sadd.s32 1, %s7414_s12   ;;  %s7419_s7 = sld [smem:[#allocation12_spill]] }
 0x8d5   : > { %p38_p10 = scmp.ge.s32.totalorder %s41_s3, 6   ;;  %s7420_s27 = sld [smem:[#allocation25_spill]] }
 0x8d6   : > { %s7421_s28 = sld [smem:[#allocation14_spill]]  ;;  %s7422_s6 = sld [smem:[#allocation15_spill]] }
 0x8d7   : > { %s7423_s2 = sld [smem:[#allocation23_spill]]  ;;  %s7424_s29 = sld [smem:[#allocation17_spill]] }
 0x8d8   : > { %s7425_s0 = sld [smem:[#allocation18_spill]]  ;;  %s7426_s8 = sld [smem:[#allocation20_spill]] }
 0x8d9   : > { %s7427_s30 = sld [smem:[#allocation21_spill]]  ;;  %s7428_s5 = smov %s5427_s26 }
 0x8da   : > { %s7429_s26 = smov %s7419_s7  ;;  %40 = sbr.rel (!%p38_p10) target bundleno = 28 (0x1c), region = 189 }
 0x8de   : > { %s7430_s7 = smov %s7426_s8 }
 0x8e1   :  { %4027 = vsyncpa [#allocation6], 1 }
 0x8e2   :  { %4029 = vsyncpa [#allocation6 + $0x1], 1 }
 0x8e3   :  { %4030 = vsyncpa [#allocation8], 1 }
 0x8e4   :  { %4032 = vsyncpa [#allocation8 + $0x1], 1 }

</bundles_post_ra>
